<compile_context>
chip_gen: v6e
topology: v6e:2x2x1
jax: 0.10.0
libtpu: 0.0.40
codegen_flags: <defaults>
</compile_context>

<pallas_src>
import functools

import jax
import jax.numpy as jnp
from jax import lax
from jax.experimental import pallas as pl
from jax.experimental.pallas import tpu as pltpu

# ----- synthetic model dims --------------------------------------------------
VOCAB   = 128   # transformer.num_tokens
D_MODEL = 32    # token embedding / model dim
C_IN    = 4     # image channels
S_MEM   = 16    # image memory length (4x4 pooled patches)
FFN     = 64    # transformer FFN hidden
H_LSTM  = 32    # diff_chexpert.rnn hidden size
K_HEADS = 4     # number of chexpert attention heads (observations)
A_ATTN  = 32    # chexpert attention hidden dim
N_CLS   = 4     # classes per observation
T_CAP   = 8     # caption length
EPS     = 1e-20


# ----- matmul helpers: bf16 MXU inputs, f32 accumulation ---------------------
def _mm(a, b):
    return jnp.dot(a.astype(jnp.bfloat16), b.astype(jnp.bfloat16),
                   preferred_element_type=jnp.float32)


def _mm_nt(a, b):  # a (M, D) x b (N, D) -> (M, N)   (contract last dims)
    return lax.dot_general(a.astype(jnp.bfloat16), b.astype(jnp.bfloat16),
                           (((1,), (1,)), ((), ())),
                           preferred_element_type=jnp.float32)


def _mm_tn(a, b):  # a (T, M) x b (T, N) -> (M, N)   (contract first dims)
    return lax.dot_general(a.astype(jnp.bfloat16), b.astype(jnp.bfloat16),
                           (((0,), (0,)), ((), ())),
                           preferred_element_type=jnp.float32)


def _softmax_last(x):
    m = jnp.max(x, axis=-1, keepdims=True)
    e = jnp.exp(x - m)
    return e * pl.reciprocal(jnp.sum(e, axis=-1, keepdims=True), approx=True)


# =============================================================================
# Fused kernel: transformer -> gumbel embed -> LSTM -> chexpert heads
# One grid step handles one batch element; all weights stay resident in VMEM.
# =============================================================================
def _fused_kernel(mem_ref, cap_ref, u_ref, mask_ref,
                  w_img, wqkv, wo, cq, ckv, co, w1, w2, wout, emb,
                  wih4, whh4, b4, w1a, w2bd, wc,
                  preds_ref, chex_ref, *, temperature, beta):
    T, D = cap_ref.shape[1], cap_ref.shape[2]
    H = whh4.shape[2]
    K = wc.shape[0]
    scale = 1.0 / float(D) ** 0.5

    # ---------- transformer: 1-layer causal decoder --------------------------
    x = cap_ref[0]                                       # (T, D)
    m = _mm(mem_ref[0], w_img[...])                      # (S, D) image memory

    qkv = _mm(x, wqkv[...])                              # (T, 3D) fused QKV
    q, k, v = qkv[:, 0:D], qkv[:, D:2 * D], qkv[:, 2 * D:3 * D]
    row = lax.broadcasted_iota(jnp.int32, (T, T), 0)
    col = lax.broadcasted_iota(jnp.int32, (T, T), 1)
    s = jnp.where(row >= col, _mm_nt(q, k) * scale, -1e30)   # causal mask
    x = x + _mm(_mm(_softmax_last(s), v), wo[...])

    q2 = _mm(x, cq[...])                                 # cross-attn to memory
    kv2 = _mm(m, ckv[...])                               # (S, 2D) fused KV
    k2, v2 = kv2[:, 0:D], kv2[:, D:2 * D]
    s2 = _mm_nt(q2, k2) * scale
    x = x + _mm(_mm(_softmax_last(s2), v2), co[...])

    x = x + _mm(jnp.maximum(_mm(x, w1[...]), 0.0), w2[...])  # FFN

    z = _mm(x, wout[...])                                # (T, V) vocab logits
    zmax = jnp.max(z, axis=-1, keepdims=True)
    ez = jnp.exp(z - zmax)
    denom = jnp.sum(ez, axis=-1, keepdims=True)
    preds_ref[0] = ez * pl.reciprocal(denom, approx=True)     # softmax preds
    log_p = (z - zmax) - jnp.log(denom)                  # log_softmax (shared exp)

    # ---------- gumbel-softmax sample + one_hot @ vocab_embed ----------------
    g = -jnp.log(-jnp.log(u_ref[0] + EPS) + EPS)         # sample_gumbel
    one_hot = _softmax_last((log_p + beta * g) * (1.0 / temperature))
    emb_seq = _mm(one_hot, emb[...])                     # (T, D) preds_embed

    # ---------- LSTM: input projection hoisted, T statically unrolled --------
    pi = _mm(emb_seq, wih4[0]) + b4[0]                   # (T, H) per gate
    pf = _mm(emb_seq, wih4[1]) + b4[1]
    pg = _mm(emb_seq, wih4[2]) + b4[2]
    po = _mm(emb_seq, wih4[3]) + b4[3]
    whh_i = whh4[0].astype(jnp.bfloat16)                 # hoist + pre-cast
    whh_f = whh4[1].astype(jnp.bfloat16)
    whh_g = whh4[2].astype(jnp.bfloat16)
    whh_o = whh4[3].astype(jnp.bfloat16)
    h = jnp.zeros((1, H), jnp.float32)
    c = jnp.zeros((1, H), jnp.float32)
    hs = []
    for t in range(T):                                   # static unroll (T=8)
        i_g = jax.nn.sigmoid(pi[t:t + 1] + _mm(h, whh_i))
        f_g = jax.nn.sigmoid(pf[t:t + 1] + _mm(h, whh_f))
        g_g = jnp.tanh(pg[t:t + 1] + _mm(h, whh_g))
        o_g = jax.nn.sigmoid(po[t:t + 1] + _mm(h, whh_o))
        c = f_g * c + i_g * g_g
        h = o_g * jnp.tanh(c)
        hs.append(h)
    h_seq = jnp.concatenate(hs, axis=0)                  # (T, H)

    # ---------- chexpert attention heads (K folded into 128 lanes) -----------
    e = jnp.tanh(_mm(h_seq, w1a[...]))                   # (T, K*A) all heads
    sc = _mm(e, w2bd[...]) + mask_ref[0]                 # (T, K) masked scores
    sc = sc - jnp.max(sc, axis=0, keepdims=True)
    pe = jnp.exp(sc)
    alpha = pe * pl.reciprocal(jnp.sum(pe, axis=0, keepdims=True), approx=True)
    ctx = _mm_tn(alpha, h_seq)                           # (K, H) contexts
    logits = jnp.concatenate(
        [_mm(ctx[kk:kk + 1], wc[kk]) for kk in range(K)], axis=0)   # (K, NC)
    chex_ref[0] = _softmax_last(logits)


# =============================================================================
# Parameter init (deterministic, already in fused layouts)
# =============================================================================
def init_params(key):
    ks = jax.random.split(key, 19)
    s = 0.05
    n = lambda k, shp: (s * jax.random.normal(k, shp)).astype(jnp.float32)

    wq, wk, wv = (n(ks[2], (D_MODEL, D_MODEL)), n(ks[3], (D_MODEL, D_MODEL)),
                  n(ks[4], (D_MODEL, D_MODEL)))
    ck, cv = n(ks[7], (D_MODEL, D_MODEL)), n(ks[8], (D_MODEL, D_MODEL))
    attn_w1 = n(ks[16], (K_HEADS, H_LSTM, A_ATTN))
    attn_w2 = n(ks[17], (K_HEADS, A_ATTN, 1))
    # block-diagonal (K*A, K) so one lane-dense matmul scores all heads
    w2_bd = jnp.zeros((K_HEADS * A_ATTN, K_HEADS), jnp.float32)
    for kk in range(K_HEADS):
        w2_bd = w2_bd.at[kk * A_ATTN:(kk + 1) * A_ATTN, kk].set(attn_w2[kk, :, 0])

    return {
        "token_embedding": n(ks[0], (VOCAB, D_MODEL)),
        "w_img": n(ks[1], (C_IN, D_MODEL)),
        "wqkv": jnp.concatenate([wq, wk, wv], axis=1),      # (D, 3D) fused QKV
        "wo": n(ks[5], (D_MODEL, D_MODEL)),
        "cq": n(ks[6], (D_MODEL, D_MODEL)),
        "ckv": jnp.concatenate([ck, cv], axis=1),           # (D, 2D) fused KV
        "co": n(ks[9], (D_MODEL, D_MODEL)),
        "w1": n(ks[10], (D_MODEL, FFN)),
        "w2": n(ks[11], (FFN, D_MODEL)),
        "wout": n(ks[12], (D_MODEL, VOCAB)),
        # LSTM weights split per gate (i, f, g, o) so the recurrence never
        # lane-slices; combined bias (= b_ih + b_hh of nn.LSTM).
        "wih4": n(ks[13], (4, D_MODEL, H_LSTM)),
        "whh4": n(ks[14], (4, H_LSTM, H_LSTM)),
        "b4": n(ks[15], (4, 1, H_LSTM)),
        "attn_w1_all": jnp.transpose(attn_w1, (1, 0, 2)).reshape(
            H_LSTM, K_HEADS * A_ATTN),                      # (H, K*A) = (32,128)
        "attn_w2_bd": w2_bd,                                # (K*A, K)
        "attn_wc": n(ks[18], (K_HEADS, H_LSTM, N_CLS)),
    }


# =============================================================================
# Full GumbelTransformer forward (caption != None branch)
# =============================================================================
def gumbel_transformer_forward(params, image, caption, caption_length,
                               noise_key, temperature=1.0, beta=1.0):
    B, C, Hh, Ww = image.shape
    T = caption.shape[1]

    # --- glue kept in JAX: patch pooling, embedding gather, noise, pad mask --
    patches = image.reshape(B, C, 4, Hh // 4, 4, Ww // 4).mean(axis=(3, 5))
    mem = patches.reshape(B, C, S_MEM).transpose(0, 2, 1)            # (B, S, C)
    cap_embed = params["token_embedding"][caption]                   # (B, T, D)
    U = jax.random.uniform(noise_key, (B, T, VOCAB), dtype=jnp.float32)
    pad_mask = jnp.where(jnp.arange(T)[None, :] < caption_length[:, None],
                         0.0, -1e9).astype(jnp.float32)[..., None]   # (B, T, 1)

    kernel = functools.partial(_fused_kernel, temperature=float(temperature),
                               beta=float(beta))

    def bmap(b):        # per-batch blocks
        return (b, 0, 0)

    def wmap2(b):       # shared 2-D weights (fetched once, revisited)
        return (0, 0)

    def wmap3(b):       # shared 3-D weights
        return (0, 0, 0)

    in_specs = [
        pl.BlockSpec((1, S_MEM, C_IN), bmap),
        pl.BlockSpec((1, T, D_MODEL), bmap),
        pl.BlockSpec((1, T, VOCAB), bmap),
        pl.BlockSpec((1, T, 1), bmap),
        pl.BlockSpec((C_IN, D_MODEL), wmap2),
        pl.BlockSpec((D_MODEL, 3 * D_MODEL), wmap2),
        pl.BlockSpec((D_MODEL, D_MODEL), wmap2),
        pl.BlockSpec((D_MODEL, D_MODEL), wmap2),
        pl.BlockSpec((D_MODEL, 2 * D_MODEL), wmap2),
        pl.BlockSpec((D_MODEL, D_MODEL), wmap2),
        pl.BlockSpec((D_MODEL, FFN), wmap2),
        pl.BlockSpec((FFN, D_MODEL), wmap2),
        pl.BlockSpec((D_MODEL, VOCAB), wmap2),
        pl.BlockSpec((VOCAB, D_MODEL), wmap2),
        pl.BlockSpec((4, D_MODEL, H_LSTM), wmap3),
        pl.BlockSpec((4, H_LSTM, H_LSTM), wmap3),
        pl.BlockSpec((4, 1, H_LSTM), wmap3),
        pl.BlockSpec((H_LSTM, K_HEADS * A_ATTN), wmap2),
        pl.BlockSpec((K_HEADS * A_ATTN, K_HEADS), wmap2),
        pl.BlockSpec((K_HEADS, H_LSTM, N_CLS), wmap3),
    ]
    out_specs = (pl.BlockSpec((1, T, VOCAB), bmap),
                 pl.BlockSpec((1, K_HEADS, N_CLS), bmap))

    preds, chexpert_preds = pl.pallas_call(
        kernel,
        out_shape=(jax.ShapeDtypeStruct((B, T, VOCAB), jnp.float32),
                   jax.ShapeDtypeStruct((B, K_HEADS, N_CLS), jnp.float32)),
        grid=(B,),
        in_specs=in_specs,
        out_specs=out_specs,
        compiler_params=pltpu.CompilerParams(
            dimension_semantics=("parallel",)),   # v7x: 2 TCs split the batch
    )(mem, cap_embed, U, pad_mask,
      params["w_img"], params["wqkv"], params["wo"], params["cq"],
      params["ckv"], params["co"], params["w1"], params["w2"], params["wout"],
      params["token_embedding"], params["wih4"], params["whh4"], params["b4"],
      params["attn_w1_all"], params["attn_w2_bd"], params["attn_wc"])
    return preds, chexpert_preds


if __name__ == "__main__":
    key = jax.random.PRNGKey(0)
    pkey, ckey, ikey, nkey = jax.random.split(key, 4)

    params = init_params(pkey)
    image = jax.random.normal(ikey, (2, C_IN, 16, 16), dtype=jnp.float32)
    caption = jax.random.randint(ckey, (2, T_CAP), 0, VOCAB)
    caption_length = jnp.array([8, 5], dtype=jnp.int32)

    preds, chexpert_preds = gumbel_transformer_forward(
        params, image, caption, caption_length, nkey, temperature=1.0, beta=1.0)
    jax.block_until_ready((preds, chexpert_preds))

    assert preds.shape == (2, T_CAP, VOCAB)
    assert chexpert_preds.shape == (2, K_HEADS, N_CLS)
    assert bool(jnp.all(jnp.isfinite(preds)))
    assert bool(jnp.all(jnp.isfinite(chexpert_preds)))
    print("KERNEL_OK")
</pallas_src>

<mosaic_0001>
module attributes {stable_mosaic.version = 11 : i64} {
  func.func @_fused_kernel(%arg0: i32, %arg1: memref<1x16x4xf32, #tpu.memory_space<vmem>>, %arg2: memref<1x8x32xf32, #tpu.memory_space<vmem>>, %arg3: memref<1x8x128xf32, #tpu.memory_space<vmem>>, %arg4: memref<1x8x1xf32, #tpu.memory_space<vmem>>, %arg5: memref<4x32xf32, #tpu.memory_space<vmem>>, %arg6: memref<32x96xf32, #tpu.memory_space<vmem>>, %arg7: memref<32x32xf32, #tpu.memory_space<vmem>>, %arg8: memref<32x32xf32, #tpu.memory_space<vmem>>, %arg9: memref<32x64xf32, #tpu.memory_space<vmem>>, %arg10: memref<32x32xf32, #tpu.memory_space<vmem>>, %arg11: memref<32x64xf32, #tpu.memory_space<vmem>>, %arg12: memref<64x32xf32, #tpu.memory_space<vmem>>, %arg13: memref<32x128xf32, #tpu.memory_space<vmem>>, %arg14: memref<128x32xf32, #tpu.memory_space<vmem>>, %arg15: memref<4x32x32xf32, #tpu.memory_space<vmem>>, %arg16: memref<4x32x32xf32, #tpu.memory_space<vmem>>, %arg17: memref<4x1x32xf32, #tpu.memory_space<vmem>>, %arg18: memref<32x128xf32, #tpu.memory_space<vmem>>, %arg19: memref<128x4xf32, #tpu.memory_space<vmem>>, %arg20: memref<4x32x4xf32, #tpu.memory_space<vmem>>, %arg21: memref<1x8x128xf32, #tpu.memory_space<vmem>>, %arg22: memref<1x4x4xf32, #tpu.memory_space<vmem>>) attributes {dimension_semantics = [#tpu.dimension_semantics<parallel>], iteration_bounds = array<i64: 2>, scalar_prefetch = 0 : i64, scratch_operands = 0 : i64, tpu.core_type = #tpu.core_type<tc>, window_params = [{transform_indices = @transform_0, window_bounds = array<i64: 1, 16, 4>}, {transform_indices = @transform_1, window_bounds = array<i64: 1, 8, 32>}, {transform_indices = @transform_2, window_bounds = array<i64: 1, 8, 128>}, {transform_indices = @transform_3, window_bounds = array<i64: 1, 8, 1>}, {pipeline_mode = #tpu.pipeline_mode<synchronous>, transform_indices = @transform_4, window_bounds = array<i64: 4, 32>}, {pipeline_mode = #tpu.pipeline_mode<synchronous>, transform_indices = @transform_5, window_bounds = array<i64: 32, 96>}, {pipeline_mode = #tpu.pipeline_mode<synchronous>, transform_indices = @transform_6, window_bounds = array<i64: 32, 32>}, {pipeline_mode = #tpu.pipeline_mode<synchronous>, transform_indices = @transform_7, window_bounds = array<i64: 32, 32>}, {pipeline_mode = #tpu.pipeline_mode<synchronous>, transform_indices = @transform_8, window_bounds = array<i64: 32, 64>}, {pipeline_mode = #tpu.pipeline_mode<synchronous>, transform_indices = @transform_9, window_bounds = array<i64: 32, 32>}, {pipeline_mode = #tpu.pipeline_mode<synchronous>, transform_indices = @transform_10, window_bounds = array<i64: 32, 64>}, {pipeline_mode = #tpu.pipeline_mode<synchronous>, transform_indices = @transform_11, window_bounds = array<i64: 64, 32>}, {pipeline_mode = #tpu.pipeline_mode<synchronous>, transform_indices = @transform_12, window_bounds = array<i64: 32, 128>}, {pipeline_mode = #tpu.pipeline_mode<synchronous>, transform_indices = @transform_13, window_bounds = array<i64: 128, 32>}, {pipeline_mode = #tpu.pipeline_mode<synchronous>, transform_indices = @transform_14, window_bounds = array<i64: 4, 32, 32>}, {pipeline_mode = #tpu.pipeline_mode<synchronous>, transform_indices = @transform_15, window_bounds = array<i64: 4, 32, 32>}, {pipeline_mode = #tpu.pipeline_mode<synchronous>, transform_indices = @transform_16, window_bounds = array<i64: 4, 1, 32>}, {pipeline_mode = #tpu.pipeline_mode<synchronous>, transform_indices = @transform_17, window_bounds = array<i64: 32, 128>}, {pipeline_mode = #tpu.pipeline_mode<synchronous>, transform_indices = @transform_18, window_bounds = array<i64: 128, 4>}, {pipeline_mode = #tpu.pipeline_mode<synchronous>, transform_indices = @transform_19, window_bounds = array<i64: 4, 32, 4>}, {transform_indices = @transform_20, window_bounds = array<i64: 1, 8, 128>}, {transform_indices = @transform_21, window_bounds = array<i64: 1, 4, 4>}]} {
    %c0 = arith.constant 0 : index
    %c0_0 = arith.constant 0 : index
    %c0_1 = arith.constant 0 : index
    %0 = vector.load %arg2[%c0, %c0_0, %c0_1] : memref<1x8x32xf32, #tpu.memory_space<vmem>>, vector<1x8x32xf32>
    %1 = vector.shape_cast %0 : vector<1x8x32xf32> to vector<8x32xf32>
    %c0_2 = arith.constant 0 : index
    %c0_3 = arith.constant 0 : index
    %c0_4 = arith.constant 0 : index
    %2 = vector.load %arg1[%c0_2, %c0_3, %c0_4] : memref<1x16x4xf32, #tpu.memory_space<vmem>>, vector<1x16x4xf32>
    %3 = vector.shape_cast %2 : vector<1x16x4xf32> to vector<16x4xf32>
    %c0_5 = arith.constant 0 : index
    %c0_6 = arith.constant 0 : index
    %4 = vector.load %arg5[%c0_5, %c0_6] : memref<4x32xf32, #tpu.memory_space<vmem>>, vector<4x32xf32>
    %5 = arith.truncf %3 : vector<16x4xf32> to vector<16x4xbf16>
    %6 = arith.truncf %4 : vector<4x32xf32> to vector<4x32xbf16>
    %cst = arith.constant dense<0.000000e+00> : vector<16x32xf32>
    %7 = tpu.matmul %5, %6, %cst {dimension_numbers = #tpu.dot_dimension_numbers<[1], [0], [0], [1], [0, 0, 1, 1], [], []>} : vector<16x4xbf16>, vector<4x32xbf16>, vector<16x32xf32> -> vector<16x32xf32>
    %c0_7 = arith.constant 0 : index
    %c0_8 = arith.constant 0 : index
    %8 = vector.load %arg6[%c0_7, %c0_8] : memref<32x96xf32, #tpu.memory_space<vmem>>, vector<32x96xf32>
    %9 = arith.truncf %1 : vector<8x32xf32> to vector<8x32xbf16>
    %10 = arith.truncf %8 : vector<32x96xf32> to vector<32x96xbf16>
    %cst_9 = arith.constant dense<0.000000e+00> : vector<8x96xf32>
    %11 = tpu.matmul %9, %10, %cst_9 {dimension_numbers = #tpu.dot_dimension_numbers<[1], [0], [0], [1], [0, 0, 1, 1], [], []>} : vector<8x32xbf16>, vector<32x96xbf16>, vector<8x96xf32> -> vector<8x96xf32>
    %12 = vector.extract_strided_slice %11 {offsets = [0, 0], sizes = [8, 32], strides = [1, 1]} : vector<8x96xf32> to vector<8x32xf32>
    %13 = vector.extract_strided_slice %11 {offsets = [0, 32], sizes = [8, 32], strides = [1, 1]} : vector<8x96xf32> to vector<8x32xf32>
    %14 = vector.extract_strided_slice %11 {offsets = [0, 64], sizes = [8, 32], strides = [1, 1]} : vector<8x96xf32> to vector<8x32xf32>
    %15 = tpu.iota {dimensions = array<i32: 0>} : vector<8x8xi32>
    %16 = tpu.iota {dimensions = array<i32: 1>} : vector<8x8xi32>
    %17 = arith.cmpi sge, %15, %16 : vector<8x8xi32>
    %18 = arith.truncf %12 : vector<8x32xf32> to vector<8x32xbf16>
    %19 = arith.truncf %13 : vector<8x32xf32> to vector<8x32xbf16>
    %cst_10 = arith.constant dense<0.000000e+00> : vector<8x8xf32>
    %20 = tpu.matmul %18, %19, %cst_10 {dimension_numbers = #tpu.dot_dimension_numbers<[1], [1], [0], [0], [0, 0, 1, 0], [], []>} : vector<8x32xbf16>, vector<8x32xbf16>, vector<8x8xf32> -> vector<8x8xf32>
    %cst_11 = arith.constant 0.176776692 : f32
    %21 = vector.broadcast %cst_11 : f32 to vector<8x8xf32>
    %22 = arith.mulf %20, %21 : vector<8x8xf32>
    %cst_12 = arith.constant -1.000000e+30 : f32
    %23 = vector.broadcast %cst_12 : f32 to vector<8x8xf32>
    %24 = arith.select %17, %22, %23 : vector<8x8xi1>, vector<8x8xf32>
    %cst_13 = arith.constant dense<0xFF800000> : vector<8xf32>
    %25 = vector.multi_reduction <maximumf>, %24, %cst_13 [1] : vector<8x8xf32> to vector<8xf32>
    %26 = vector.shape_cast %25 : vector<8xf32> to vector<8x1xf32>
    %27 = vector.broadcast %26 : vector<8x1xf32> to vector<8x8xf32>
    %28 = arith.subf %24, %27 : vector<8x8xf32>
    %29 = math.exp %28 : vector<8x8xf32>
    %cst_14 = arith.constant dense<0.000000e+00> : vector<8xf32>
    %30 = vector.multi_reduction <add>, %29, %cst_14 [1] : vector<8x8xf32> to vector<8xf32>
    %31 = vector.shape_cast %30 : vector<8xf32> to vector<8x1xf32>
    %32 = tpu.reciprocal %31 {approx = true} : vector<8x1xf32> -> vector<8x1xf32>
    %33 = vector.broadcast %32 : vector<8x1xf32> to vector<8x8xf32>
    %34 = arith.mulf %29, %33 : vector<8x8xf32>
    %35 = arith.truncf %34 : vector<8x8xf32> to vector<8x8xbf16>
    %36 = arith.truncf %14 : vector<8x32xf32> to vector<8x32xbf16>
    %cst_15 = arith.constant dense<0.000000e+00> : vector<8x32xf32>
    %37 = tpu.matmul %35, %36, %cst_15 {dimension_numbers = #tpu.dot_dimension_numbers<[1], [0], [0], [1], [0, 0, 1, 1], [], []>} : vector<8x8xbf16>, vector<8x32xbf16>, vector<8x32xf32> -> vector<8x32xf32>
    %c0_16 = arith.constant 0 : index
    %c0_17 = arith.constant 0 : index
    %38 = vector.load %arg7[%c0_16, %c0_17] : memref<32x32xf32, #tpu.memory_space<vmem>>, vector<32x32xf32>
    %39 = arith.truncf %37 : vector<8x32xf32> to vector<8x32xbf16>
    %40 = arith.truncf %38 : vector<32x32xf32> to vector<32x32xbf16>
    %cst_18 = arith.constant dense<0.000000e+00> : vector<8x32xf32>
    %41 = tpu.matmul %39, %40, %cst_18 {dimension_numbers = #tpu.dot_dimension_numbers<[1], [0], [0], [1], [0, 0, 1, 1], [], []>} : vector<8x32xbf16>, vector<32x32xbf16>, vector<8x32xf32> -> vector<8x32xf32>
    %42 = arith.addf %1, %41 : vector<8x32xf32>
    %c0_19 = arith.constant 0 : index
    %c0_20 = arith.constant 0 : index
    %43 = vector.load %arg8[%c0_19, %c0_20] : memref<32x32xf32, #tpu.memory_space<vmem>>, vector<32x32xf32>
    %44 = arith.truncf %42 : vector<8x32xf32> to vector<8x32xbf16>
    %45 = arith.truncf %43 : vector<32x32xf32> to vector<32x32xbf16>
    %cst_21 = arith.constant dense<0.000000e+00> : vector<8x32xf32>
    %46 = tpu.matmul %44, %45, %cst_21 {dimension_numbers = #tpu.dot_dimension_numbers<[1], [0], [0], [1], [0, 0, 1, 1], [], []>} : vector<8x32xbf16>, vector<32x32xbf16>, vector<8x32xf32> -> vector<8x32xf32>
    %c0_22 = arith.constant 0 : index
    %c0_23 = arith.constant 0 : index
    %47 = vector.load %arg9[%c0_22, %c0_23] : memref<32x64xf32, #tpu.memory_space<vmem>>, vector<32x64xf32>
    %48 = arith.truncf %7 : vector<16x32xf32> to vector<16x32xbf16>
    %49 = arith.truncf %47 : vector<32x64xf32> to vector<32x64xbf16>
    %cst_24 = arith.constant dense<0.000000e+00> : vector<16x64xf32>
    %50 = tpu.matmul %48, %49, %cst_24 {dimension_numbers = #tpu.dot_dimension_numbers<[1], [0], [0], [1], [0, 0, 1, 1], [], []>} : vector<16x32xbf16>, vector<32x64xbf16>, vector<16x64xf32> -> vector<16x64xf32>
    %51 = vector.extract_strided_slice %50 {offsets = [0, 0], sizes = [16, 32], strides = [1, 1]} : vector<16x64xf32> to vector<16x32xf32>
    %52 = vector.extract_strided_slice %50 {offsets = [0, 32], sizes = [16, 32], strides = [1, 1]} : vector<16x64xf32> to vector<16x32xf32>
    %53 = arith.truncf %46 : vector<8x32xf32> to vector<8x32xbf16>
    %54 = arith.truncf %51 : vector<16x32xf32> to vector<16x32xbf16>
    %cst_25 = arith.constant dense<0.000000e+00> : vector<8x16xf32>
    %55 = tpu.matmul %53, %54, %cst_25 {dimension_numbers = #tpu.dot_dimension_numbers<[1], [1], [0], [0], [0, 0, 1, 0], [], []>} : vector<8x32xbf16>, vector<16x32xbf16>, vector<8x16xf32> -> vector<8x16xf32>
    %cst_26 = arith.constant 0.176776692 : f32
    %56 = vector.broadcast %cst_26 : f32 to vector<8x16xf32>
    %57 = arith.mulf %55, %56 : vector<8x16xf32>
    %cst_27 = arith.constant dense<0xFF800000> : vector<8xf32>
    %58 = vector.multi_reduction <maximumf>, %57, %cst_27 [1] : vector<8x16xf32> to vector<8xf32>
    %59 = vector.shape_cast %58 : vector<8xf32> to vector<8x1xf32>
    %60 = vector.broadcast %59 : vector<8x1xf32> to vector<8x16xf32>
    %61 = arith.subf %57, %60 : vector<8x16xf32>
    %62 = math.exp %61 : vector<8x16xf32>
    %cst_28 = arith.constant dense<0.000000e+00> : vector<8xf32>
    %63 = vector.multi_reduction <add>, %62, %cst_28 [1] : vector<8x16xf32> to vector<8xf32>
    %64 = vector.shape_cast %63 : vector<8xf32> to vector<8x1xf32>
    %65 = tpu.reciprocal %64 {approx = true} : vector<8x1xf32> -> vector<8x1xf32>
    %66 = vector.broadcast %65 : vector<8x1xf32> to vector<8x16xf32>
    %67 = arith.mulf %62, %66 : vector<8x16xf32>
    %68 = arith.truncf %67 : vector<8x16xf32> to vector<8x16xbf16>
    %69 = arith.truncf %52 : vector<16x32xf32> to vector<16x32xbf16>
    %cst_29 = arith.constant dense<0.000000e+00> : vector<8x32xf32>
    %70 = tpu.matmul %68, %69, %cst_29 {dimension_numbers = #tpu.dot_dimension_numbers<[1], [0], [0], [1], [0, 0, 1, 1], [], []>} : vector<8x16xbf16>, vector<16x32xbf16>, vector<8x32xf32> -> vector<8x32xf32>
    %c0_30 = arith.constant 0 : index
    %c0_31 = arith.constant 0 : index
    %71 = vector.load %arg10[%c0_30, %c0_31] : memref<32x32xf32, #tpu.memory_space<vmem>>, vector<32x32xf32>
    %72 = arith.truncf %70 : vector<8x32xf32> to vector<8x32xbf16>
    %73 = arith.truncf %71 : vector<32x32xf32> to vector<32x32xbf16>
    %cst_32 = arith.constant dense<0.000000e+00> : vector<8x32xf32>
    %74 = tpu.matmul %72, %73, %cst_32 {dimension_numbers = #tpu.dot_dimension_numbers<[1], [0], [0], [1], [0, 0, 1, 1], [], []>} : vector<8x32xbf16>, vector<32x32xbf16>, vector<8x32xf32> -> vector<8x32xf32>
    %75 = arith.addf %42, %74 : vector<8x32xf32>
    %c0_33 = arith.constant 0 : index
    %c0_34 = arith.constant 0 : index
    %76 = vector.load %arg11[%c0_33, %c0_34] : memref<32x64xf32, #tpu.memory_space<vmem>>, vector<32x64xf32>
    %77 = arith.truncf %75 : vector<8x32xf32> to vector<8x32xbf16>
    %78 = arith.truncf %76 : vector<32x64xf32> to vector<32x64xbf16>
    %cst_35 = arith.constant dense<0.000000e+00> : vector<8x64xf32>
    %79 = tpu.matmul %77, %78, %cst_35 {dimension_numbers = #tpu.dot_dimension_numbers<[1], [0], [0], [1], [0, 0, 1, 1], [], []>} : vector<8x32xbf16>, vector<32x64xbf16>, vector<8x64xf32> -> vector<8x64xf32>
    %cst_36 = arith.constant 0.000000e+00 : f32
    %80 = vector.broadcast %cst_36 : f32 to vector<8x64xf32>
    %81 = arith.maximumf %79, %80 : vector<8x64xf32>
    %c0_37 = arith.constant 0 : index
    %c0_38 = arith.constant 0 : index
    %82 = vector.load %arg12[%c0_37, %c0_38] : memref<64x32xf32, #tpu.memory_space<vmem>>, vector<64x32xf32>
    %83 = arith.truncf %81 : vector<8x64xf32> to vector<8x64xbf16>
    %84 = arith.truncf %82 : vector<64x32xf32> to vector<64x32xbf16>
    %cst_39 = arith.constant dense<0.000000e+00> : vector<8x32xf32>
    %85 = tpu.matmul %83, %84, %cst_39 {dimension_numbers = #tpu.dot_dimension_numbers<[1], [0], [0], [1], [0, 0, 1, 1], [], []>} : vector<8x64xbf16>, vector<64x32xbf16>, vector<8x32xf32> -> vector<8x32xf32>
    %86 = arith.addf %75, %85 : vector<8x32xf32>
    %c0_40 = arith.constant 0 : index
    %c0_41 = arith.constant 0 : index
    %87 = vector.load %arg13[%c0_40, %c0_41] : memref<32x128xf32, #tpu.memory_space<vmem>>, vector<32x128xf32>
    %88 = arith.truncf %86 : vector<8x32xf32> to vector<8x32xbf16>
    %89 = arith.truncf %87 : vector<32x128xf32> to vector<32x128xbf16>
    %cst_42 = arith.constant dense<0.000000e+00> : vector<8x128xf32>
    %90 = tpu.matmul %88, %89, %cst_42 {dimension_numbers = #tpu.dot_dimension_numbers<[1], [0], [0], [1], [0, 0, 1, 1], [], []>} : vector<8x32xbf16>, vector<32x128xbf16>, vector<8x128xf32> -> vector<8x128xf32>
    %cst_43 = arith.constant dense<0xFF800000> : vector<8xf32>
    %91 = vector.multi_reduction <maximumf>, %90, %cst_43 [1] : vector<8x128xf32> to vector<8xf32>
    %92 = vector.shape_cast %91 : vector<8xf32> to vector<8x1xf32>
    %93 = vector.broadcast %92 : vector<8x1xf32> to vector<8x128xf32>
    %94 = arith.subf %90, %93 : vector<8x128xf32>
    %95 = math.exp %94 : vector<8x128xf32>
    %cst_44 = arith.constant dense<0.000000e+00> : vector<8xf32>
    %96 = vector.multi_reduction <add>, %95, %cst_44 [1] : vector<8x128xf32> to vector<8xf32>
    %97 = vector.shape_cast %96 : vector<8xf32> to vector<8x1xf32>
    %98 = tpu.reciprocal %97 {approx = true} : vector<8x1xf32> -> vector<8x1xf32>
    %99 = vector.broadcast %98 : vector<8x1xf32> to vector<8x128xf32>
    %100 = arith.mulf %95, %99 : vector<8x128xf32>
    %c0_45 = arith.constant 0 : index
    %c0_46 = arith.constant 0 : index
    %c0_47 = arith.constant 0 : index
    %101 = vector.load %arg21[%c0_45, %c0_46, %c0_47] : memref<1x8x128xf32, #tpu.memory_space<vmem>>, vector<1x8x128xf32>
    %102 = vector.shape_cast %101 : vector<1x8x128xf32> to vector<8x128xf32>
    %103 = vector.shape_cast %100 : vector<8x128xf32> to vector<1x8x128xf32>
    tpu.vector_store %arg21[%c0_45, %c0_46, %c0_47], %103 {strides = array<i32>} : memref<1x8x128xf32, #tpu.memory_space<vmem>>, vector<1x8x128xf32>,
    %104 = vector.broadcast %92 : vector<8x1xf32> to vector<8x128xf32>
    %105 = arith.subf %90, %104 : vector<8x128xf32>
    %106 = math.log %97 : vector<8x1xf32>
    %107 = vector.broadcast %106 : vector<8x1xf32> to vector<8x128xf32>
    %108 = arith.subf %105, %107 : vector<8x128xf32>
    %c0_48 = arith.constant 0 : index
    %c0_49 = arith.constant 0 : index
    %c0_50 = arith.constant 0 : index
    %109 = vector.load %arg3[%c0_48, %c0_49, %c0_50] : memref<1x8x128xf32, #tpu.memory_space<vmem>>, vector<1x8x128xf32>
    %110 = vector.shape_cast %109 : vector<1x8x128xf32> to vector<8x128xf32>
    %cst_51 = arith.constant 9.99999968E-21 : f32
    %111 = vector.broadcast %cst_51 : f32 to vector<8x128xf32>
    %112 = arith.addf %110, %111 : vector<8x128xf32>
    %113 = math.log %112 : vector<8x128xf32>
    %cst_52 = arith.constant 0.000000e+00 : f32
    %114 = vector.broadcast %cst_52 : f32 to vector<8x128xf32>
    %115 = arith.subf %114, %113 : vector<8x128xf32>
    %cst_53 = arith.constant 9.99999968E-21 : f32
    %116 = vector.broadcast %cst_53 : f32 to vector<8x128xf32>
    %117 = arith.addf %115, %116 : vector<8x128xf32>
    %118 = math.log %117 : vector<8x128xf32>
    %cst_54 = arith.constant 0.000000e+00 : f32
    %119 = vector.broadcast %cst_54 : f32 to vector<8x128xf32>
    %120 = arith.subf %119, %118 : vector<8x128xf32>
    %cst_55 = arith.constant 1.000000e+00 : f32
    %121 = vector.broadcast %cst_55 : f32 to vector<8x128xf32>
    %122 = arith.mulf %121, %120 : vector<8x128xf32>
    %123 = arith.addf %108, %122 : vector<8x128xf32>
    %cst_56 = arith.constant 1.000000e+00 : f32
    %124 = vector.broadcast %cst_56 : f32 to vector<8x128xf32>
    %125 = arith.mulf %123, %124 : vector<8x128xf32>
    %cst_57 = arith.constant dense<0xFF800000> : vector<8xf32>
    %126 = vector.multi_reduction <maximumf>, %125, %cst_57 [1] : vector<8x128xf32> to vector<8xf32>
    %127 = vector.shape_cast %126 : vector<8xf32> to vector<8x1xf32>
    %128 = vector.broadcast %127 : vector<8x1xf32> to vector<8x128xf32>
    %129 = arith.subf %125, %128 : vector<8x128xf32>
    %130 = math.exp %129 : vector<8x128xf32>
    %cst_58 = arith.constant dense<0.000000e+00> : vector<8xf32>
    %131 = vector.multi_reduction <add>, %130, %cst_58 [1] : vector<8x128xf32> to vector<8xf32>
    %132 = vector.shape_cast %131 : vector<8xf32> to vector<8x1xf32>
    %133 = tpu.reciprocal %132 {approx = true} : vector<8x1xf32> -> vector<8x1xf32>
    %134 = vector.broadcast %133 : vector<8x1xf32> to vector<8x128xf32>
    %135 = arith.mulf %130, %134 : vector<8x128xf32>
    %c0_59 = arith.constant 0 : index
    %c0_60 = arith.constant 0 : index
    %136 = vector.load %arg14[%c0_59, %c0_60] : memref<128x32xf32, #tpu.memory_space<vmem>>, vector<128x32xf32>
    %137 = arith.truncf %135 : vector<8x128xf32> to vector<8x128xbf16>
    %138 = arith.truncf %136 : vector<128x32xf32> to vector<128x32xbf16>
    %cst_61 = arith.constant dense<0.000000e+00> : vector<8x32xf32>
    %139 = tpu.matmul %137, %138, %cst_61 {dimension_numbers = #tpu.dot_dimension_numbers<[1], [0], [0], [1], [0, 0, 1, 1], [], []>} : vector<8x128xbf16>, vector<128x32xbf16>, vector<8x32xf32> -> vector<8x32xf32>
    %c0_62 = arith.constant 0 : index
    %c0_63 = arith.constant 0 : index
    %c0_64 = arith.constant 0 : index
    %140 = vector.load %arg15[%c0_62, %c0_63, %c0_64] : memref<4x32x32xf32, #tpu.memory_space<vmem>>, vector<1x32x32xf32>
    %141 = vector.shape_cast %140 : vector<1x32x32xf32> to vector<32x32xf32>
    %142 = arith.truncf %139 : vector<8x32xf32> to vector<8x32xbf16>
    %143 = arith.truncf %141 : vector<32x32xf32> to vector<32x32xbf16>
    %cst_65 = arith.constant dense<0.000000e+00> : vector<8x32xf32>
    %144 = tpu.matmul %142, %143, %cst_65 {dimension_numbers = #tpu.dot_dimension_numbers<[1], [0], [0], [1], [0, 0, 1, 1], [], []>} : vector<8x32xbf16>, vector<32x32xbf16>, vector<8x32xf32> -> vector<8x32xf32>
    %c0_66 = arith.constant 0 : index
    %c0_67 = arith.constant 0 : index
    %c0_68 = arith.constant 0 : index
    %145 = vector.load %arg17[%c0_66, %c0_67, %c0_68] : memref<4x1x32xf32, #tpu.memory_space<vmem>>, vector<1x1x32xf32>
    %146 = vector.shape_cast %145 : vector<1x1x32xf32> to vector<1x32xf32>
    %147 = vector.broadcast %146 : vector<1x32xf32> to vector<8x32xf32>
    %148 = arith.addf %144, %147 : vector<8x32xf32>
    %c1 = arith.constant 1 : index
    %c0_69 = arith.constant 0 : index
    %c0_70 = arith.constant 0 : index
    %149 = vector.load %arg15[%c1, %c0_69, %c0_70] : memref<4x32x32xf32, #tpu.memory_space<vmem>>, vector<1x32x32xf32>
    %150 = vector.shape_cast %149 : vector<1x32x32xf32> to vector<32x32xf32>
    %151 = arith.truncf %139 : vector<8x32xf32> to vector<8x32xbf16>
    %152 = arith.truncf %150 : vector<32x32xf32> to vector<32x32xbf16>
    %cst_71 = arith.constant dense<0.000000e+00> : vector<8x32xf32>
    %153 = tpu.matmul %151, %152, %cst_71 {dimension_numbers = #tpu.dot_dimension_numbers<[1], [0], [0], [1], [0, 0, 1, 1], [], []>} : vector<8x32xbf16>, vector<32x32xbf16>, vector<8x32xf32> -> vector<8x32xf32>
    %c1_72 = arith.constant 1 : index
    %c0_73 = arith.constant 0 : index
    %c0_74 = arith.constant 0 : index
    %154 = vector.load %arg17[%c1_72, %c0_73, %c0_74] : memref<4x1x32xf32, #tpu.memory_space<vmem>>, vector<1x1x32xf32>
    %155 = vector.shape_cast %154 : vector<1x1x32xf32> to vector<1x32xf32>
    %156 = vector.broadcast %155 : vector<1x32xf32> to vector<8x32xf32>
    %157 = arith.addf %153, %156 : vector<8x32xf32>
    %c2 = arith.constant 2 : index
    %c0_75 = arith.constant 0 : index
    %c0_76 = arith.constant 0 : index
    %158 = vector.load %arg15[%c2, %c0_75, %c0_76] : memref<4x32x32xf32, #tpu.memory_space<vmem>>, vector<1x32x32xf32>
    %159 = vector.shape_cast %158 : vector<1x32x32xf32> to vector<32x32xf32>
    %160 = arith.truncf %139 : vector<8x32xf32> to vector<8x32xbf16>
    %161 = arith.truncf %159 : vector<32x32xf32> to vector<32x32xbf16>
    %cst_77 = arith.constant dense<0.000000e+00> : vector<8x32xf32>
    %162 = tpu.matmul %160, %161, %cst_77 {dimension_numbers = #tpu.dot_dimension_numbers<[1], [0], [0], [1], [0, 0, 1, 1], [], []>} : vector<8x32xbf16>, vector<32x32xbf16>, vector<8x32xf32> -> vector<8x32xf32>
    %c2_78 = arith.constant 2 : index
    %c0_79 = arith.constant 0 : index
    %c0_80 = arith.constant 0 : index
    %163 = vector.load %arg17[%c2_78, %c0_79, %c0_80] : memref<4x1x32xf32, #tpu.memory_space<vmem>>, vector<1x1x32xf32>
    %164 = vector.shape_cast %163 : vector<1x1x32xf32> to vector<1x32xf32>
    %165 = vector.broadcast %164 : vector<1x32xf32> to vector<8x32xf32>
    %166 = arith.addf %162, %165 : vector<8x32xf32>
    %c3 = arith.constant 3 : index
    %c0_81 = arith.constant 0 : index
    %c0_82 = arith.constant 0 : index
    %167 = vector.load %arg15[%c3, %c0_81, %c0_82] : memref<4x32x32xf32, #tpu.memory_space<vmem>>, vector<1x32x32xf32>
    %168 = vector.shape_cast %167 : vector<1x32x32xf32> to vector<32x32xf32>
    %169 = arith.truncf %139 : vector<8x32xf32> to vector<8x32xbf16>
    %170 = arith.truncf %168 : vector<32x32xf32> to vector<32x32xbf16>
    %cst_83 = arith.constant dense<0.000000e+00> : vector<8x32xf32>
    %171 = tpu.matmul %169, %170, %cst_83 {dimension_numbers = #tpu.dot_dimension_numbers<[1], [0], [0], [1], [0, 0, 1, 1], [], []>} : vector<8x32xbf16>, vector<32x32xbf16>, vector<8x32xf32> -> vector<8x32xf32>
    %c3_84 = arith.constant 3 : index
    %c0_85 = arith.constant 0 : index
    %c0_86 = arith.constant 0 : index
    %172 = vector.load %arg17[%c3_84, %c0_85, %c0_86] : memref<4x1x32xf32, #tpu.memory_space<vmem>>, vector<1x1x32xf32>
    %173 = vector.shape_cast %172 : vector<1x1x32xf32> to vector<1x32xf32>
    %174 = vector.broadcast %173 : vector<1x32xf32> to vector<8x32xf32>
    %175 = arith.addf %171, %174 : vector<8x32xf32>
    %c0_87 = arith.constant 0 : index
    %c0_88 = arith.constant 0 : index
    %c0_89 = arith.constant 0 : index
    %176 = vector.load %arg16[%c0_87, %c0_88, %c0_89] : memref<4x32x32xf32, #tpu.memory_space<vmem>>, vector<1x32x32xf32>
    %177 = vector.shape_cast %176 : vector<1x32x32xf32> to vector<32x32xf32>
    %178 = arith.truncf %177 : vector<32x32xf32> to vector<32x32xbf16>
    %c1_90 = arith.constant 1 : index
    %c0_91 = arith.constant 0 : index
    %c0_92 = arith.constant 0 : index
    %179 = vector.load %arg16[%c1_90, %c0_91, %c0_92] : memref<4x32x32xf32, #tpu.memory_space<vmem>>, vector<1x32x32xf32>
    %180 = vector.shape_cast %179 : vector<1x32x32xf32> to vector<32x32xf32>
    %181 = arith.truncf %180 : vector<32x32xf32> to vector<32x32xbf16>
    %c2_93 = arith.constant 2 : index
    %c0_94 = arith.constant 0 : index
    %c0_95 = arith.constant 0 : index
    %182 = vector.load %arg16[%c2_93, %c0_94, %c0_95] : memref<4x32x32xf32, #tpu.memory_space<vmem>>, vector<1x32x32xf32>
    %183 = vector.shape_cast %182 : vector<1x32x32xf32> to vector<32x32xf32>
    %184 = arith.truncf %183 : vector<32x32xf32> to vector<32x32xbf16>
    %c3_96 = arith.constant 3 : index
    %c0_97 = arith.constant 0 : index
    %c0_98 = arith.constant 0 : index
    %185 = vector.load %arg16[%c3_96, %c0_97, %c0_98] : memref<4x32x32xf32, #tpu.memory_space<vmem>>, vector<1x32x32xf32>
    %186 = vector.shape_cast %185 : vector<1x32x32xf32> to vector<32x32xf32>
    %187 = arith.truncf %186 : vector<32x32xf32> to vector<32x32xbf16>
    %cst_99 = arith.constant 0.000000e+00 : f32
    %188 = vector.broadcast %cst_99 : f32 to vector<1x32xf32>
    %cst_100 = arith.constant 0.000000e+00 : f32
    %189 = vector.broadcast %cst_100 : f32 to vector<1x32xf32>
    %190 = vector.extract_strided_slice %148 {offsets = [0, 0], sizes = [1, 32], strides = [1, 1]} : vector<8x32xf32> to vector<1x32xf32>
    %191 = arith.truncf %188 : vector<1x32xf32> to vector<1x32xbf16>
    %cst_101 = arith.constant dense<0.000000e+00> : vector<1x32xf32>
    %192 = tpu.matmul %191, %178, %cst_101 {dimension_numbers = #tpu.dot_dimension_numbers<[1], [0], [0], [1], [0, 0, 1, 1], [], []>} : vector<1x32xbf16>, vector<32x32xbf16>, vector<1x32xf32> -> vector<1x32xf32>
    %193 = arith.addf %190, %192 : vector<1x32xf32>
    %194 = arith.negf %193 : vector<1x32xf32>
    %195 = math.exp %194 : vector<1x32xf32>
    %cst_102 = arith.constant 1.000000e+00 : f32
    %196 = vector.broadcast %cst_102 : f32 to vector<1x32xf32>
    %197 = arith.addf %196, %195 : vector<1x32xf32>
    %198 = arith.divf %196, %197 : vector<1x32xf32>
    %199 = vector.extract_strided_slice %157 {offsets = [0, 0], sizes = [1, 32], strides = [1, 1]} : vector<8x32xf32> to vector<1x32xf32>
    %200 = arith.truncf %188 : vector<1x32xf32> to vector<1x32xbf16>
    %cst_103 = arith.constant dense<0.000000e+00> : vector<1x32xf32>
    %201 = tpu.matmul %200, %181, %cst_103 {dimension_numbers = #tpu.dot_dimension_numbers<[1], [0], [0], [1], [0, 0, 1, 1], [], []>} : vector<1x32xbf16>, vector<32x32xbf16>, vector<1x32xf32> -> vector<1x32xf32>
    %202 = arith.addf %199, %201 : vector<1x32xf32>
    %203 = arith.negf %202 : vector<1x32xf32>
    %204 = math.exp %203 : vector<1x32xf32>
    %cst_104 = arith.constant 1.000000e+00 : f32
    %205 = vector.broadcast %cst_104 : f32 to vector<1x32xf32>
    %206 = arith.addf %205, %204 : vector<1x32xf32>
    %207 = arith.divf %205, %206 : vector<1x32xf32>
    %208 = vector.extract_strided_slice %166 {offsets = [0, 0], sizes = [1, 32], strides = [1, 1]} : vector<8x32xf32> to vector<1x32xf32>
    %209 = arith.truncf %188 : vector<1x32xf32> to vector<1x32xbf16>
    %cst_105 = arith.constant dense<0.000000e+00> : vector<1x32xf32>
    %210 = tpu.matmul %209, %184, %cst_105 {dimension_numbers = #tpu.dot_dimension_numbers<[1], [0], [0], [1], [0, 0, 1, 1], [], []>} : vector<1x32xbf16>, vector<32x32xbf16>, vector<1x32xf32> -> vector<1x32xf32>
    %211 = arith.addf %208, %210 : vector<1x32xf32>
    %212 = math.tanh %211 : vector<1x32xf32>
    %213 = vector.extract_strided_slice %175 {offsets = [0, 0], sizes = [1, 32], strides = [1, 1]} : vector<8x32xf32> to vector<1x32xf32>
    %214 = arith.truncf %188 : vector<1x32xf32> to vector<1x32xbf16>
    %cst_106 = arith.constant dense<0.000000e+00> : vector<1x32xf32>
    %215 = tpu.matmul %214, %187, %cst_106 {dimension_numbers = #tpu.dot_dimension_numbers<[1], [0], [0], [1], [0, 0, 1, 1], [], []>} : vector<1x32xbf16>, vector<32x32xbf16>, vector<1x32xf32> -> vector<1x32xf32>
    %216 = arith.addf %213, %215 : vector<1x32xf32>
    %217 = arith.negf %216 : vector<1x32xf32>
    %218 = math.exp %217 : vector<1x32xf32>
    %cst_107 = arith.constant 1.000000e+00 : f32
    %219 = vector.broadcast %cst_107 : f32 to vector<1x32xf32>
    %220 = arith.addf %219, %218 : vector<1x32xf32>
    %221 = arith.divf %219, %220 : vector<1x32xf32>
    %222 = arith.mulf %207, %189 : vector<1x32xf32>
    %223 = arith.mulf %198, %212 : vector<1x32xf32>
    %224 = arith.addf %222, %223 : vector<1x32xf32>
    %225 = math.tanh %224 : vector<1x32xf32>
    %226 = arith.mulf %221, %225 : vector<1x32xf32>
    %227 = vector.extract_strided_slice %148 {offsets = [1, 0], sizes = [1, 32], strides = [1, 1]} : vector<8x32xf32> to vector<1x32xf32>
    %228 = arith.truncf %226 : vector<1x32xf32> to vector<1x32xbf16>
    %cst_108 = arith.constant dense<0.000000e+00> : vector<1x32xf32>
    %229 = tpu.matmul %228, %178, %cst_108 {dimension_numbers = #tpu.dot_dimension_numbers<[1], [0], [0], [1], [0, 0, 1, 1], [], []>} : vector<1x32xbf16>, vector<32x32xbf16>, vector<1x32xf32> -> vector<1x32xf32>
    %230 = arith.addf %227, %229 : vector<1x32xf32>
    %231 = arith.negf %230 : vector<1x32xf32>
    %232 = math.exp %231 : vector<1x32xf32>
    %cst_109 = arith.constant 1.000000e+00 : f32
    %233 = vector.broadcast %cst_109 : f32 to vector<1x32xf32>
    %234 = arith.addf %233, %232 : vector<1x32xf32>
    %235 = arith.divf %233, %234 : vector<1x32xf32>
    %236 = vector.extract_strided_slice %157 {offsets = [1, 0], sizes = [1, 32], strides = [1, 1]} : vector<8x32xf32> to vector<1x32xf32>
    %237 = arith.truncf %226 : vector<1x32xf32> to vector<1x32xbf16>
    %cst_110 = arith.constant dense<0.000000e+00> : vector<1x32xf32>
    %238 = tpu.matmul %237, %181, %cst_110 {dimension_numbers = #tpu.dot_dimension_numbers<[1], [0], [0], [1], [0, 0, 1, 1], [], []>} : vector<1x32xbf16>, vector<32x32xbf16>, vector<1x32xf32> -> vector<1x32xf32>
    %239 = arith.addf %236, %238 : vector<1x32xf32>
    %240 = arith.negf %239 : vector<1x32xf32>
    %241 = math.exp %240 : vector<1x32xf32>
    %cst_111 = arith.constant 1.000000e+00 : f32
    %242 = vector.broadcast %cst_111 : f32 to vector<1x32xf32>
    %243 = arith.addf %242, %241 : vector<1x32xf32>
    %244 = arith.divf %242, %243 : vector<1x32xf32>
    %245 = vector.extract_strided_slice %166 {offsets = [1, 0], sizes = [1, 32], strides = [1, 1]} : vector<8x32xf32> to vector<1x32xf32>
    %246 = arith.truncf %226 : vector<1x32xf32> to vector<1x32xbf16>
    %cst_112 = arith.constant dense<0.000000e+00> : vector<1x32xf32>
    %247 = tpu.matmul %246, %184, %cst_112 {dimension_numbers = #tpu.dot_dimension_numbers<[1], [0], [0], [1], [0, 0, 1, 1], [], []>} : vector<1x32xbf16>, vector<32x32xbf16>, vector<1x32xf32> -> vector<1x32xf32>
    %248 = arith.addf %245, %247 : vector<1x32xf32>
    %249 = math.tanh %248 : vector<1x32xf32>
    %250 = vector.extract_strided_slice %175 {offsets = [1, 0], sizes = [1, 32], strides = [1, 1]} : vector<8x32xf32> to vector<1x32xf32>
    %251 = arith.truncf %226 : vector<1x32xf32> to vector<1x32xbf16>
    %cst_113 = arith.constant dense<0.000000e+00> : vector<1x32xf32>
    %252 = tpu.matmul %251, %187, %cst_113 {dimension_numbers = #tpu.dot_dimension_numbers<[1], [0], [0], [1], [0, 0, 1, 1], [], []>} : vector<1x32xbf16>, vector<32x32xbf16>, vector<1x32xf32> -> vector<1x32xf32>
    %253 = arith.addf %250, %252 : vector<1x32xf32>
    %254 = arith.negf %253 : vector<1x32xf32>
    %255 = math.exp %254 : vector<1x32xf32>
    %cst_114 = arith.constant 1.000000e+00 : f32
    %256 = vector.broadcast %cst_114 : f32 to vector<1x32xf32>
    %257 = arith.addf %256, %255 : vector<1x32xf32>
    %258 = arith.divf %256, %257 : vector<1x32xf32>
    %259 = arith.mulf %244, %224 : vector<1x32xf32>
    %260 = arith.mulf %235, %249 : vector<1x32xf32>
    %261 = arith.addf %259, %260 : vector<1x32xf32>
    %262 = math.tanh %261 : vector<1x32xf32>
    %263 = arith.mulf %258, %262 : vector<1x32xf32>
    %264 = vector.extract_strided_slice %148 {offsets = [2, 0], sizes = [1, 32], strides = [1, 1]} : vector<8x32xf32> to vector<1x32xf32>
    %265 = arith.truncf %263 : vector<1x32xf32> to vector<1x32xbf16>
    %cst_115 = arith.constant dense<0.000000e+00> : vector<1x32xf32>
    %266 = tpu.matmul %265, %178, %cst_115 {dimension_numbers = #tpu.dot_dimension_numbers<[1], [0], [0], [1], [0, 0, 1, 1], [], []>} : vector<1x32xbf16>, vector<32x32xbf16>, vector<1x32xf32> -> vector<1x32xf32>
    %267 = arith.addf %264, %266 : vector<1x32xf32>
    %268 = arith.negf %267 : vector<1x32xf32>
    %269 = math.exp %268 : vector<1x32xf32>
    %cst_116 = arith.constant 1.000000e+00 : f32
    %270 = vector.broadcast %cst_116 : f32 to vector<1x32xf32>
    %271 = arith.addf %270, %269 : vector<1x32xf32>
    %272 = arith.divf %270, %271 : vector<1x32xf32>
    %273 = vector.extract_strided_slice %157 {offsets = [2, 0], sizes = [1, 32], strides = [1, 1]} : vector<8x32xf32> to vector<1x32xf32>
    %274 = arith.truncf %263 : vector<1x32xf32> to vector<1x32xbf16>
    %cst_117 = arith.constant dense<0.000000e+00> : vector<1x32xf32>
    %275 = tpu.matmul %274, %181, %cst_117 {dimension_numbers = #tpu.dot_dimension_numbers<[1], [0], [0], [1], [0, 0, 1, 1], [], []>} : vector<1x32xbf16>, vector<32x32xbf16>, vector<1x32xf32> -> vector<1x32xf32>
    %276 = arith.addf %273, %275 : vector<1x32xf32>
    %277 = arith.negf %276 : vector<1x32xf32>
    %278 = math.exp %277 : vector<1x32xf32>
    %cst_118 = arith.constant 1.000000e+00 : f32
    %279 = vector.broadcast %cst_118 : f32 to vector<1x32xf32>
    %280 = arith.addf %279, %278 : vector<1x32xf32>
    %281 = arith.divf %279, %280 : vector<1x32xf32>
    %282 = vector.extract_strided_slice %166 {offsets = [2, 0], sizes = [1, 32], strides = [1, 1]} : vector<8x32xf32> to vector<1x32xf32>
    %283 = arith.truncf %263 : vector<1x32xf32> to vector<1x32xbf16>
    %cst_119 = arith.constant dense<0.000000e+00> : vector<1x32xf32>
    %284 = tpu.matmul %283, %184, %cst_119 {dimension_numbers = #tpu.dot_dimension_numbers<[1], [0], [0], [1], [0, 0, 1, 1], [], []>} : vector<1x32xbf16>, vector<32x32xbf16>, vector<1x32xf32> -> vector<1x32xf32>
    %285 = arith.addf %282, %284 : vector<1x32xf32>
    %286 = math.tanh %285 : vector<1x32xf32>
    %287 = vector.extract_strided_slice %175 {offsets = [2, 0], sizes = [1, 32], strides = [1, 1]} : vector<8x32xf32> to vector<1x32xf32>
    %288 = arith.truncf %263 : vector<1x32xf32> to vector<1x32xbf16>
    %cst_120 = arith.constant dense<0.000000e+00> : vector<1x32xf32>
    %289 = tpu.matmul %288, %187, %cst_120 {dimension_numbers = #tpu.dot_dimension_numbers<[1], [0], [0], [1], [0, 0, 1, 1], [], []>} : vector<1x32xbf16>, vector<32x32xbf16>, vector<1x32xf32> -> vector<1x32xf32>
    %290 = arith.addf %287, %289 : vector<1x32xf32>
    %291 = arith.negf %290 : vector<1x32xf32>
    %292 = math.exp %291 : vector<1x32xf32>
    %cst_121 = arith.constant 1.000000e+00 : f32
    %293 = vector.broadcast %cst_121 : f32 to vector<1x32xf32>
    %294 = arith.addf %293, %292 : vector<1x32xf32>
    %295 = arith.divf %293, %294 : vector<1x32xf32>
    %296 = arith.mulf %281, %261 : vector<1x32xf32>
    %297 = arith.mulf %272, %286 : vector<1x32xf32>
    %298 = arith.addf %296, %297 : vector<1x32xf32>
    %299 = math.tanh %298 : vector<1x32xf32>
    %300 = arith.mulf %295, %299 : vector<1x32xf32>
    %301 = vector.extract_strided_slice %148 {offsets = [3, 0], sizes = [1, 32], strides = [1, 1]} : vector<8x32xf32> to vector<1x32xf32>
    %302 = arith.truncf %300 : vector<1x32xf32> to vector<1x32xbf16>
    %cst_122 = arith.constant dense<0.000000e+00> : vector<1x32xf32>
    %303 = tpu.matmul %302, %178, %cst_122 {dimension_numbers = #tpu.dot_dimension_numbers<[1], [0], [0], [1], [0, 0, 1, 1], [], []>} : vector<1x32xbf16>, vector<32x32xbf16>, vector<1x32xf32> -> vector<1x32xf32>
    %304 = arith.addf %301, %303 : vector<1x32xf32>
    %305 = arith.negf %304 : vector<1x32xf32>
    %306 = math.exp %305 : vector<1x32xf32>
    %cst_123 = arith.constant 1.000000e+00 : f32
    %307 = vector.broadcast %cst_123 : f32 to vector<1x32xf32>
    %308 = arith.addf %307, %306 : vector<1x32xf32>
    %309 = arith.divf %307, %308 : vector<1x32xf32>
    %310 = vector.extract_strided_slice %157 {offsets = [3, 0], sizes = [1, 32], strides = [1, 1]} : vector<8x32xf32> to vector<1x32xf32>
    %311 = arith.truncf %300 : vector<1x32xf32> to vector<1x32xbf16>
    %cst_124 = arith.constant dense<0.000000e+00> : vector<1x32xf32>
    %312 = tpu.matmul %311, %181, %cst_124 {dimension_numbers = #tpu.dot_dimension_numbers<[1], [0], [0], [1], [0, 0, 1, 1], [], []>} : vector<1x32xbf16>, vector<32x32xbf16>, vector<1x32xf32> -> vector<1x32xf32>
    %313 = arith.addf %310, %312 : vector<1x32xf32>
    %314 = arith.negf %313 : vector<1x32xf32>
    %315 = math.exp %314 : vector<1x32xf32>
    %cst_125 = arith.constant 1.000000e+00 : f32
    %316 = vector.broadcast %cst_125 : f32 to vector<1x32xf32>
    %317 = arith.addf %316, %315 : vector<1x32xf32>
    %318 = arith.divf %316, %317 : vector<1x32xf32>
    %319 = vector.extract_strided_slice %166 {offsets = [3, 0], sizes = [1, 32], strides = [1, 1]} : vector<8x32xf32> to vector<1x32xf32>
    %320 = arith.truncf %300 : vector<1x32xf32> to vector<1x32xbf16>
    %cst_126 = arith.constant dense<0.000000e+00> : vector<1x32xf32>
    %321 = tpu.matmul %320, %184, %cst_126 {dimension_numbers = #tpu.dot_dimension_numbers<[1], [0], [0], [1], [0, 0, 1, 1], [], []>} : vector<1x32xbf16>, vector<32x32xbf16>, vector<1x32xf32> -> vector<1x32xf32>
    %322 = arith.addf %319, %321 : vector<1x32xf32>
    %323 = math.tanh %322 : vector<1x32xf32>
    %324 = vector.extract_strided_slice %175 {offsets = [3, 0], sizes = [1, 32], strides = [1, 1]} : vector<8x32xf32> to vector<1x32xf32>
    %325 = arith.truncf %300 : vector<1x32xf32> to vector<1x32xbf16>
    %cst_127 = arith.constant dense<0.000000e+00> : vector<1x32xf32>
    %326 = tpu.matmul %325, %187, %cst_127 {dimension_numbers = #tpu.dot_dimension_numbers<[1], [0], [0], [1], [0, 0, 1, 1], [], []>} : vector<1x32xbf16>, vector<32x32xbf16>, vector<1x32xf32> -> vector<1x32xf32>
    %327 = arith.addf %324, %326 : vector<1x32xf32>
    %328 = arith.negf %327 : vector<1x32xf32>
    %329 = math.exp %328 : vector<1x32xf32>
    %cst_128 = arith.constant 1.000000e+00 : f32
    %330 = vector.broadcast %cst_128 : f32 to vector<1x32xf32>
    %331 = arith.addf %330, %329 : vector<1x32xf32>
    %332 = arith.divf %330, %331 : vector<1x32xf32>
    %333 = arith.mulf %318, %298 : vector<1x32xf32>
    %334 = arith.mulf %309, %323 : vector<1x32xf32>
    %335 = arith.addf %333, %334 : vector<1x32xf32>
    %336 = math.tanh %335 : vector<1x32xf32>
    %337 = arith.mulf %332, %336 : vector<1x32xf32>
    %338 = vector.extract_strided_slice %148 {offsets = [4, 0], sizes = [1, 32], strides = [1, 1]} : vector<8x32xf32> to vector<1x32xf32>
    %339 = arith.truncf %337 : vector<1x32xf32> to vector<1x32xbf16>
    %cst_129 = arith.constant dense<0.000000e+00> : vector<1x32xf32>
    %340 = tpu.matmul %339, %178, %cst_129 {dimension_numbers = #tpu.dot_dimension_numbers<[1], [0], [0], [1], [0, 0, 1, 1], [], []>} : vector<1x32xbf16>, vector<32x32xbf16>, vector<1x32xf32> -> vector<1x32xf32>
    %341 = arith.addf %338, %340 : vector<1x32xf32>
    %342 = arith.negf %341 : vector<1x32xf32>
    %343 = math.exp %342 : vector<1x32xf32>
    %cst_130 = arith.constant 1.000000e+00 : f32
    %344 = vector.broadcast %cst_130 : f32 to vector<1x32xf32>
    %345 = arith.addf %344, %343 : vector<1x32xf32>
    %346 = arith.divf %344, %345 : vector<1x32xf32>
    %347 = vector.extract_strided_slice %157 {offsets = [4, 0], sizes = [1, 32], strides = [1, 1]} : vector<8x32xf32> to vector<1x32xf32>
    %348 = arith.truncf %337 : vector<1x32xf32> to vector<1x32xbf16>
    %cst_131 = arith.constant dense<0.000000e+00> : vector<1x32xf32>
    %349 = tpu.matmul %348, %181, %cst_131 {dimension_numbers = #tpu.dot_dimension_numbers<[1], [0], [0], [1], [0, 0, 1, 1], [], []>} : vector<1x32xbf16>, vector<32x32xbf16>, vector<1x32xf32> -> vector<1x32xf32>
    %350 = arith.addf %347, %349 : vector<1x32xf32>
    %351 = arith.negf %350 : vector<1x32xf32>
    %352 = math.exp %351 : vector<1x32xf32>
    %cst_132 = arith.constant 1.000000e+00 : f32
    %353 = vector.broadcast %cst_132 : f32 to vector<1x32xf32>
    %354 = arith.addf %353, %352 : vector<1x32xf32>
    %355 = arith.divf %353, %354 : vector<1x32xf32>
    %356 = vector.extract_strided_slice %166 {offsets = [4, 0], sizes = [1, 32], strides = [1, 1]} : vector<8x32xf32> to vector<1x32xf32>
    %357 = arith.truncf %337 : vector<1x32xf32> to vector<1x32xbf16>
    %cst_133 = arith.constant dense<0.000000e+00> : vector<1x32xf32>
    %358 = tpu.matmul %357, %184, %cst_133 {dimension_numbers = #tpu.dot_dimension_numbers<[1], [0], [0], [1], [0, 0, 1, 1], [], []>} : vector<1x32xbf16>, vector<32x32xbf16>, vector<1x32xf32> -> vector<1x32xf32>
    %359 = arith.addf %356, %358 : vector<1x32xf32>
    %360 = math.tanh %359 : vector<1x32xf32>
    %361 = vector.extract_strided_slice %175 {offsets = [4, 0], sizes = [1, 32], strides = [1, 1]} : vector<8x32xf32> to vector<1x32xf32>
    %362 = arith.truncf %337 : vector<1x32xf32> to vector<1x32xbf16>
    %cst_134 = arith.constant dense<0.000000e+00> : vector<1x32xf32>
    %363 = tpu.matmul %362, %187, %cst_134 {dimension_numbers = #tpu.dot_dimension_numbers<[1], [0], [0], [1], [0, 0, 1, 1], [], []>} : vector<1x32xbf16>, vector<32x32xbf16>, vector<1x32xf32> -> vector<1x32xf32>
    %364 = arith.addf %361, %363 : vector<1x32xf32>
    %365 = arith.negf %364 : vector<1x32xf32>
    %366 = math.exp %365 : vector<1x32xf32>
    %cst_135 = arith.constant 1.000000e+00 : f32
    %367 = vector.broadcast %cst_135 : f32 to vector<1x32xf32>
    %368 = arith.addf %367, %366 : vector<1x32xf32>
    %369 = arith.divf %367, %368 : vector<1x32xf32>
    %370 = arith.mulf %355, %335 : vector<1x32xf32>
    %371 = arith.mulf %346, %360 : vector<1x32xf32>
    %372 = arith.addf %370, %371 : vector<1x32xf32>
    %373 = math.tanh %372 : vector<1x32xf32>
    %374 = arith.mulf %369, %373 : vector<1x32xf32>
    %375 = vector.extract_strided_slice %148 {offsets = [5, 0], sizes = [1, 32], strides = [1, 1]} : vector<8x32xf32> to vector<1x32xf32>
    %376 = arith.truncf %374 : vector<1x32xf32> to vector<1x32xbf16>
    %cst_136 = arith.constant dense<0.000000e+00> : vector<1x32xf32>
    %377 = tpu.matmul %376, %178, %cst_136 {dimension_numbers = #tpu.dot_dimension_numbers<[1], [0], [0], [1], [0, 0, 1, 1], [], []>} : vector<1x32xbf16>, vector<32x32xbf16>, vector<1x32xf32> -> vector<1x32xf32>
    %378 = arith.addf %375, %377 : vector<1x32xf32>
    %379 = arith.negf %378 : vector<1x32xf32>
    %380 = math.exp %379 : vector<1x32xf32>
    %cst_137 = arith.constant 1.000000e+00 : f32
    %381 = vector.broadcast %cst_137 : f32 to vector<1x32xf32>
    %382 = arith.addf %381, %380 : vector<1x32xf32>
    %383 = arith.divf %381, %382 : vector<1x32xf32>
    %384 = vector.extract_strided_slice %157 {offsets = [5, 0], sizes = [1, 32], strides = [1, 1]} : vector<8x32xf32> to vector<1x32xf32>
    %385 = arith.truncf %374 : vector<1x32xf32> to vector<1x32xbf16>
    %cst_138 = arith.constant dense<0.000000e+00> : vector<1x32xf32>
    %386 = tpu.matmul %385, %181, %cst_138 {dimension_numbers = #tpu.dot_dimension_numbers<[1], [0], [0], [1], [0, 0, 1, 1], [], []>} : vector<1x32xbf16>, vector<32x32xbf16>, vector<1x32xf32> -> vector<1x32xf32>
    %387 = arith.addf %384, %386 : vector<1x32xf32>
    %388 = arith.negf %387 : vector<1x32xf32>
    %389 = math.exp %388 : vector<1x32xf32>
    %cst_139 = arith.constant 1.000000e+00 : f32
    %390 = vector.broadcast %cst_139 : f32 to vector<1x32xf32>
    %391 = arith.addf %390, %389 : vector<1x32xf32>
    %392 = arith.divf %390, %391 : vector<1x32xf32>
    %393 = vector.extract_strided_slice %166 {offsets = [5, 0], sizes = [1, 32], strides = [1, 1]} : vector<8x32xf32> to vector<1x32xf32>
    %394 = arith.truncf %374 : vector<1x32xf32> to vector<1x32xbf16>
    %cst_140 = arith.constant dense<0.000000e+00> : vector<1x32xf32>
    %395 = tpu.matmul %394, %184, %cst_140 {dimension_numbers = #tpu.dot_dimension_numbers<[1], [0], [0], [1], [0, 0, 1, 1], [], []>} : vector<1x32xbf16>, vector<32x32xbf16>, vector<1x32xf32> -> vector<1x32xf32>
    %396 = arith.addf %393, %395 : vector<1x32xf32>
    %397 = math.tanh %396 : vector<1x32xf32>
    %398 = vector.extract_strided_slice %175 {offsets = [5, 0], sizes = [1, 32], strides = [1, 1]} : vector<8x32xf32> to vector<1x32xf32>
    %399 = arith.truncf %374 : vector<1x32xf32> to vector<1x32xbf16>
    %cst_141 = arith.constant dense<0.000000e+00> : vector<1x32xf32>
    %400 = tpu.matmul %399, %187, %cst_141 {dimension_numbers = #tpu.dot_dimension_numbers<[1], [0], [0], [1], [0, 0, 1, 1], [], []>} : vector<1x32xbf16>, vector<32x32xbf16>, vector<1x32xf32> -> vector<1x32xf32>
    %401 = arith.addf %398, %400 : vector<1x32xf32>
    %402 = arith.negf %401 : vector<1x32xf32>
    %403 = math.exp %402 : vector<1x32xf32>
    %cst_142 = arith.constant 1.000000e+00 : f32
    %404 = vector.broadcast %cst_142 : f32 to vector<1x32xf32>
    %405 = arith.addf %404, %403 : vector<1x32xf32>
    %406 = arith.divf %404, %405 : vector<1x32xf32>
    %407 = arith.mulf %392, %372 : vector<1x32xf32>
    %408 = arith.mulf %383, %397 : vector<1x32xf32>
    %409 = arith.addf %407, %408 : vector<1x32xf32>
    %410 = math.tanh %409 : vector<1x32xf32>
    %411 = arith.mulf %406, %410 : vector<1x32xf32>
    %412 = vector.extract_strided_slice %148 {offsets = [6, 0], sizes = [1, 32], strides = [1, 1]} : vector<8x32xf32> to vector<1x32xf32>
    %413 = arith.truncf %411 : vector<1x32xf32> to vector<1x32xbf16>
    %cst_143 = arith.constant dense<0.000000e+00> : vector<1x32xf32>
    %414 = tpu.matmul %413, %178, %cst_143 {dimension_numbers = #tpu.dot_dimension_numbers<[1], [0], [0], [1], [0, 0, 1, 1], [], []>} : vector<1x32xbf16>, vector<32x32xbf16>, vector<1x32xf32> -> vector<1x32xf32>
    %415 = arith.addf %412, %414 : vector<1x32xf32>
    %416 = arith.negf %415 : vector<1x32xf32>
    %417 = math.exp %416 : vector<1x32xf32>
    %cst_144 = arith.constant 1.000000e+00 : f32
    %418 = vector.broadcast %cst_144 : f32 to vector<1x32xf32>
    %419 = arith.addf %418, %417 : vector<1x32xf32>
    %420 = arith.divf %418, %419 : vector<1x32xf32>
    %421 = vector.extract_strided_slice %157 {offsets = [6, 0], sizes = [1, 32], strides = [1, 1]} : vector<8x32xf32> to vector<1x32xf32>
    %422 = arith.truncf %411 : vector<1x32xf32> to vector<1x32xbf16>
    %cst_145 = arith.constant dense<0.000000e+00> : vector<1x32xf32>
    %423 = tpu.matmul %422, %181, %cst_145 {dimension_numbers = #tpu.dot_dimension_numbers<[1], [0], [0], [1], [0, 0, 1, 1], [], []>} : vector<1x32xbf16>, vector<32x32xbf16>, vector<1x32xf32> -> vector<1x32xf32>
    %424 = arith.addf %421, %423 : vector<1x32xf32>
    %425 = arith.negf %424 : vector<1x32xf32>
    %426 = math.exp %425 : vector<1x32xf32>
    %cst_146 = arith.constant 1.000000e+00 : f32
    %427 = vector.broadcast %cst_146 : f32 to vector<1x32xf32>
    %428 = arith.addf %427, %426 : vector<1x32xf32>
    %429 = arith.divf %427, %428 : vector<1x32xf32>
    %430 = vector.extract_strided_slice %166 {offsets = [6, 0], sizes = [1, 32], strides = [1, 1]} : vector<8x32xf32> to vector<1x32xf32>
    %431 = arith.truncf %411 : vector<1x32xf32> to vector<1x32xbf16>
    %cst_147 = arith.constant dense<0.000000e+00> : vector<1x32xf32>
    %432 = tpu.matmul %431, %184, %cst_147 {dimension_numbers = #tpu.dot_dimension_numbers<[1], [0], [0], [1], [0, 0, 1, 1], [], []>} : vector<1x32xbf16>, vector<32x32xbf16>, vector<1x32xf32> -> vector<1x32xf32>
    %433 = arith.addf %430, %432 : vector<1x32xf32>
    %434 = math.tanh %433 : vector<1x32xf32>
    %435 = vector.extract_strided_slice %175 {offsets = [6, 0], sizes = [1, 32], strides = [1, 1]} : vector<8x32xf32> to vector<1x32xf32>
    %436 = arith.truncf %411 : vector<1x32xf32> to vector<1x32xbf16>
    %cst_148 = arith.constant dense<0.000000e+00> : vector<1x32xf32>
    %437 = tpu.matmul %436, %187, %cst_148 {dimension_numbers = #tpu.dot_dimension_numbers<[1], [0], [0], [1], [0, 0, 1, 1], [], []>} : vector<1x32xbf16>, vector<32x32xbf16>, vector<1x32xf32> -> vector<1x32xf32>
    %438 = arith.addf %435, %437 : vector<1x32xf32>
    %439 = arith.negf %438 : vector<1x32xf32>
    %440 = math.exp %439 : vector<1x32xf32>
    %cst_149 = arith.constant 1.000000e+00 : f32
    %441 = vector.broadcast %cst_149 : f32 to vector<1x32xf32>
    %442 = arith.addf %441, %440 : vector<1x32xf32>
    %443 = arith.divf %441, %442 : vector<1x32xf32>
    %444 = arith.mulf %429, %409 : vector<1x32xf32>
    %445 = arith.mulf %420, %434 : vector<1x32xf32>
    %446 = arith.addf %444, %445 : vector<1x32xf32>
    %447 = math.tanh %446 : vector<1x32xf32>
    %448 = arith.mulf %443, %447 : vector<1x32xf32>
    %449 = vector.extract_strided_slice %148 {offsets = [7, 0], sizes = [1, 32], strides = [1, 1]} : vector<8x32xf32> to vector<1x32xf32>
    %450 = arith.truncf %448 : vector<1x32xf32> to vector<1x32xbf16>
    %cst_150 = arith.constant dense<0.000000e+00> : vector<1x32xf32>
    %451 = tpu.matmul %450, %178, %cst_150 {dimension_numbers = #tpu.dot_dimension_numbers<[1], [0], [0], [1], [0, 0, 1, 1], [], []>} : vector<1x32xbf16>, vector<32x32xbf16>, vector<1x32xf32> -> vector<1x32xf32>
    %452 = arith.addf %449, %451 : vector<1x32xf32>
    %453 = arith.negf %452 : vector<1x32xf32>
    %454 = math.exp %453 : vector<1x32xf32>
    %cst_151 = arith.constant 1.000000e+00 : f32
    %455 = vector.broadcast %cst_151 : f32 to vector<1x32xf32>
    %456 = arith.addf %455, %454 : vector<1x32xf32>
    %457 = arith.divf %455, %456 : vector<1x32xf32>
    %458 = vector.extract_strided_slice %157 {offsets = [7, 0], sizes = [1, 32], strides = [1, 1]} : vector<8x32xf32> to vector<1x32xf32>
    %459 = arith.truncf %448 : vector<1x32xf32> to vector<1x32xbf16>
    %cst_152 = arith.constant dense<0.000000e+00> : vector<1x32xf32>
    %460 = tpu.matmul %459, %181, %cst_152 {dimension_numbers = #tpu.dot_dimension_numbers<[1], [0], [0], [1], [0, 0, 1, 1], [], []>} : vector<1x32xbf16>, vector<32x32xbf16>, vector<1x32xf32> -> vector<1x32xf32>
    %461 = arith.addf %458, %460 : vector<1x32xf32>
    %462 = arith.negf %461 : vector<1x32xf32>
    %463 = math.exp %462 : vector<1x32xf32>
    %cst_153 = arith.constant 1.000000e+00 : f32
    %464 = vector.broadcast %cst_153 : f32 to vector<1x32xf32>
    %465 = arith.addf %464, %463 : vector<1x32xf32>
    %466 = arith.divf %464, %465 : vector<1x32xf32>
    %467 = vector.extract_strided_slice %166 {offsets = [7, 0], sizes = [1, 32], strides = [1, 1]} : vector<8x32xf32> to vector<1x32xf32>
    %468 = arith.truncf %448 : vector<1x32xf32> to vector<1x32xbf16>
    %cst_154 = arith.constant dense<0.000000e+00> : vector<1x32xf32>
    %469 = tpu.matmul %468, %184, %cst_154 {dimension_numbers = #tpu.dot_dimension_numbers<[1], [0], [0], [1], [0, 0, 1, 1], [], []>} : vector<1x32xbf16>, vector<32x32xbf16>, vector<1x32xf32> -> vector<1x32xf32>
    %470 = arith.addf %467, %469 : vector<1x32xf32>
    %471 = math.tanh %470 : vector<1x32xf32>
    %472 = vector.extract_strided_slice %175 {offsets = [7, 0], sizes = [1, 32], strides = [1, 1]} : vector<8x32xf32> to vector<1x32xf32>
    %473 = arith.truncf %448 : vector<1x32xf32> to vector<1x32xbf16>
    %cst_155 = arith.constant dense<0.000000e+00> : vector<1x32xf32>
    %474 = tpu.matmul %473, %187, %cst_155 {dimension_numbers = #tpu.dot_dimension_numbers<[1], [0], [0], [1], [0, 0, 1, 1], [], []>} : vector<1x32xbf16>, vector<32x32xbf16>, vector<1x32xf32> -> vector<1x32xf32>
    %475 = arith.addf %472, %474 : vector<1x32xf32>
    %476 = arith.negf %475 : vector<1x32xf32>
    %477 = math.exp %476 : vector<1x32xf32>
    %cst_156 = arith.constant 1.000000e+00 : f32
    %478 = vector.broadcast %cst_156 : f32 to vector<1x32xf32>
    %479 = arith.addf %478, %477 : vector<1x32xf32>
    %480 = arith.divf %478, %479 : vector<1x32xf32>
    %481 = arith.mulf %466, %446 : vector<1x32xf32>
    %482 = arith.mulf %457, %471 : vector<1x32xf32>
    %483 = arith.addf %481, %482 : vector<1x32xf32>
    %484 = math.tanh %483 : vector<1x32xf32>
    %485 = arith.mulf %480, %484 : vector<1x32xf32>
    %486 = tpu.concatenate %226, %263, %300, %337, %374, %411, %448, %485 in 0 : vector<1x32xf32>, vector<1x32xf32>, vector<1x32xf32>, vector<1x32xf32>, vector<1x32xf32>, vector<1x32xf32>, vector<1x32xf32>, vector<1x32xf32> -> vector<8x32xf32>
    %c0_157 = arith.constant 0 : index
    %c0_158 = arith.constant 0 : index
    %487 = vector.load %arg18[%c0_157, %c0_158] : memref<32x128xf32, #tpu.memory_space<vmem>>, vector<32x128xf32>
    %488 = arith.truncf %486 : vector<8x32xf32> to vector<8x32xbf16>
    %489 = arith.truncf %487 : vector<32x128xf32> to vector<32x128xbf16>
    %cst_159 = arith.constant dense<0.000000e+00> : vector<8x128xf32>
    %490 = tpu.matmul %488, %489, %cst_159 {dimension_numbers = #tpu.dot_dimension_numbers<[1], [0], [0], [1], [0, 0, 1, 1], [], []>} : vector<8x32xbf16>, vector<32x128xbf16>, vector<8x128xf32> -> vector<8x128xf32>
    %491 = math.tanh %490 : vector<8x128xf32>
    %c0_160 = arith.constant 0 : index
    %c0_161 = arith.constant 0 : index
    %492 = vector.load %arg19[%c0_160, %c0_161] : memref<128x4xf32, #tpu.memory_space<vmem>>, vector<128x4xf32>
    %493 = arith.truncf %491 : vector<8x128xf32> to vector<8x128xbf16>
    %494 = arith.truncf %492 : vector<128x4xf32> to vector<128x4xbf16>
    %cst_162 = arith.constant dense<0.000000e+00> : vector<8x4xf32>
    %495 = tpu.matmul %493, %494, %cst_162 {dimension_numbers = #tpu.dot_dimension_numbers<[1], [0], [0], [1], [0, 0, 1, 1], [], []>} : vector<8x128xbf16>, vector<128x4xbf16>, vector<8x4xf32> -> vector<8x4xf32>
    %c0_163 = arith.constant 0 : index
    %c0_164 = arith.constant 0 : index
    %c0_165 = arith.constant 0 : index
    %496 = vector.load %arg4[%c0_163, %c0_164, %c0_165] : memref<1x8x1xf32, #tpu.memory_space<vmem>>, vector<1x8x1xf32>
    %497 = vector.shape_cast %496 : vector<1x8x1xf32> to vector<8x1xf32>
    %498 = vector.broadcast %497 : vector<8x1xf32> to vector<8x4xf32>
    %499 = arith.addf %495, %498 : vector<8x4xf32>
    %cst_166 = arith.constant dense<0xFF800000> : vector<4xf32>
    %500 = vector.multi_reduction <maximumf>, %499, %cst_166 [0] : vector<8x4xf32> to vector<4xf32>
    %501 = vector.shape_cast %500 : vector<4xf32> to vector<1x4xf32>
    %502 = vector.broadcast %501 : vector<1x4xf32> to vector<8x4xf32>
    %503 = arith.subf %499, %502 : vector<8x4xf32>
    %504 = math.exp %503 : vector<8x4xf32>
    %cst_167 = arith.constant dense<0.000000e+00> : vector<4xf32>
    %505 = vector.multi_reduction <add>, %504, %cst_167 [0] : vector<8x4xf32> to vector<4xf32>
    %506 = vector.shape_cast %505 : vector<4xf32> to vector<1x4xf32>
    %507 = tpu.reciprocal %506 {approx = true} : vector<1x4xf32> -> vector<1x4xf32>
    %508 = vector.broadcast %507 : vector<1x4xf32> to vector<8x4xf32>
    %509 = arith.mulf %504, %508 : vector<8x4xf32>
    %510 = arith.truncf %509 : vector<8x4xf32> to vector<8x4xbf16>
    %511 = arith.truncf %486 : vector<8x32xf32> to vector<8x32xbf16>
    %cst_168 = arith.constant dense<0.000000e+00> : vector<4x32xf32>
    %512 = tpu.matmul %510, %511, %cst_168 {dimension_numbers = #tpu.dot_dimension_numbers<[0], [0], [1], [1], [0, 1, 1, 1], [], []>} : vector<8x4xbf16>, vector<8x32xbf16>, vector<4x32xf32> -> vector<4x32xf32>
    %513 = vector.extract_strided_slice %512 {offsets = [0, 0], sizes = [1, 32], strides = [1, 1]} : vector<4x32xf32> to vector<1x32xf32>
    %c0_169 = arith.constant 0 : index
    %c0_170 = arith.constant 0 : index
    %c0_171 = arith.constant 0 : index
    %514 = vector.load %arg20[%c0_169, %c0_170, %c0_171] : memref<4x32x4xf32, #tpu.memory_space<vmem>>, vector<1x32x4xf32>
    %515 = vector.shape_cast %514 : vector<1x32x4xf32> to vector<32x4xf32>
    %516 = arith.truncf %513 : vector<1x32xf32> to vector<1x32xbf16>
    %517 = arith.truncf %515 : vector<32x4xf32> to vector<32x4xbf16>
    %cst_172 = arith.constant dense<0.000000e+00> : vector<1x4xf32>
    %518 = tpu.matmul %516, %517, %cst_172 {dimension_numbers = #tpu.dot_dimension_numbers<[1], [0], [0], [1], [0, 0, 1, 1], [], []>} : vector<1x32xbf16>, vector<32x4xbf16>, vector<1x4xf32> -> vector<1x4xf32>
    %519 = vector.extract_strided_slice %512 {offsets = [1, 0], sizes = [1, 32], strides = [1, 1]} : vector<4x32xf32> to vector<1x32xf32>
    %c1_173 = arith.constant 1 : index
    %c0_174 = arith.constant 0 : index
    %c0_175 = arith.constant 0 : index
    %520 = vector.load %arg20[%c1_173, %c0_174, %c0_175] : memref<4x32x4xf32, #tpu.memory_space<vmem>>, vector<1x32x4xf32>
    %521 = vector.shape_cast %520 : vector<1x32x4xf32> to vector<32x4xf32>
    %522 = arith.truncf %519 : vector<1x32xf32> to vector<1x32xbf16>
    %523 = arith.truncf %521 : vector<32x4xf32> to vector<32x4xbf16>
    %cst_176 = arith.constant dense<0.000000e+00> : vector<1x4xf32>
    %524 = tpu.matmul %522, %523, %cst_176 {dimension_numbers = #tpu.dot_dimension_numbers<[1], [0], [0], [1], [0, 0, 1, 1], [], []>} : vector<1x32xbf16>, vector<32x4xbf16>, vector<1x4xf32> -> vector<1x4xf32>
    %525 = vector.extract_strided_slice %512 {offsets = [2, 0], sizes = [1, 32], strides = [1, 1]} : vector<4x32xf32> to vector<1x32xf32>
    %c2_177 = arith.constant 2 : index
    %c0_178 = arith.constant 0 : index
    %c0_179 = arith.constant 0 : index
    %526 = vector.load %arg20[%c2_177, %c0_178, %c0_179] : memref<4x32x4xf32, #tpu.memory_space<vmem>>, vector<1x32x4xf32>
    %527 = vector.shape_cast %526 : vector<1x32x4xf32> to vector<32x4xf32>
    %528 = arith.truncf %525 : vector<1x32xf32> to vector<1x32xbf16>
    %529 = arith.truncf %527 : vector<32x4xf32> to vector<32x4xbf16>
    %cst_180 = arith.constant dense<0.000000e+00> : vector<1x4xf32>
    %530 = tpu.matmul %528, %529, %cst_180 {dimension_numbers = #tpu.dot_dimension_numbers<[1], [0], [0], [1], [0, 0, 1, 1], [], []>} : vector<1x32xbf16>, vector<32x4xbf16>, vector<1x4xf32> -> vector<1x4xf32>
    %531 = vector.extract_strided_slice %512 {offsets = [3, 0], sizes = [1, 32], strides = [1, 1]} : vector<4x32xf32> to vector<1x32xf32>
    %c3_181 = arith.constant 3 : index
    %c0_182 = arith.constant 0 : index
    %c0_183 = arith.constant 0 : index
    %532 = vector.load %arg20[%c3_181, %c0_182, %c0_183] : memref<4x32x4xf32, #tpu.memory_space<vmem>>, vector<1x32x4xf32>
    %533 = vector.shape_cast %532 : vector<1x32x4xf32> to vector<32x4xf32>
    %534 = arith.truncf %531 : vector<1x32xf32> to vector<1x32xbf16>
    %535 = arith.truncf %533 : vector<32x4xf32> to vector<32x4xbf16>
    %cst_184 = arith.constant dense<0.000000e+00> : vector<1x4xf32>
    %536 = tpu.matmul %534, %535, %cst_184 {dimension_numbers = #tpu.dot_dimension_numbers<[1], [0], [0], [1], [0, 0, 1, 1], [], []>} : vector<1x32xbf16>, vector<32x4xbf16>, vector<1x4xf32> -> vector<1x4xf32>
    %537 = tpu.concatenate %518, %524, %530, %536 in 0 : vector<1x4xf32>, vector<1x4xf32>, vector<1x4xf32>, vector<1x4xf32> -> vector<4x4xf32>
    %cst_185 = arith.constant dense<0xFF800000> : vector<4xf32>
    %538 = vector.multi_reduction <maximumf>, %537, %cst_185 [1] : vector<4x4xf32> to vector<4xf32>
    %539 = vector.shape_cast %538 : vector<4xf32> to vector<4x1xf32>
    %540 = vector.broadcast %539 : vector<4x1xf32> to vector<4x4xf32>
    %541 = arith.subf %537, %540 : vector<4x4xf32>
    %542 = math.exp %541 : vector<4x4xf32>
    %cst_186 = arith.constant dense<0.000000e+00> : vector<4xf32>
    %543 = vector.multi_reduction <add>, %542, %cst_186 [1] : vector<4x4xf32> to vector<4xf32>
    %544 = vector.shape_cast %543 : vector<4xf32> to vector<4x1xf32>
    %545 = tpu.reciprocal %544 {approx = true} : vector<4x1xf32> -> vector<4x1xf32>
    %546 = vector.broadcast %545 : vector<4x1xf32> to vector<4x4xf32>
    %547 = arith.mulf %542, %546 : vector<4x4xf32>
    %c0_187 = arith.constant 0 : index
    %c0_188 = arith.constant 0 : index
    %c0_189 = arith.constant 0 : index
    %548 = vector.load %arg22[%c0_187, %c0_188, %c0_189] : memref<1x4x4xf32, #tpu.memory_space<vmem>>, vector<1x4x4xf32>
    %549 = vector.shape_cast %548 : vector<1x4x4xf32> to vector<4x4xf32>
    %550 = vector.shape_cast %547 : vector<4x4xf32> to vector<1x4x4xf32>
    tpu.vector_store %arg22[%c0_187, %c0_188, %c0_189], %550 {strides = array<i32>} : memref<1x4x4xf32, #tpu.memory_space<vmem>>, vector<1x4x4xf32>,
    return
  }
  func.func @transform_0(%arg0: i32) -> (i32, i32, i32) {
    %c0_i32 = arith.constant 0 : i32
    %c0_i32_0 = arith.constant 0 : i32
    %c0_i32_1 = arith.constant 0 : i32
    return %arg0, %c0_i32, %c0_i32_0 : i32, i32, i32
  }
  func.func @transform_1(%arg0: i32) -> (i32, i32, i32) {
    %c0_i32 = arith.constant 0 : i32
    %c0_i32_0 = arith.constant 0 : i32
    %c0_i32_1 = arith.constant 0 : i32
    return %arg0, %c0_i32, %c0_i32_0 : i32, i32, i32
  }
  func.func @transform_2(%arg0: i32) -> (i32, i32, i32) {
    %c0_i32 = arith.constant 0 : i32
    %c0_i32_0 = arith.constant 0 : i32
    %c0_i32_1 = arith.constant 0 : i32
    return %arg0, %c0_i32, %c0_i32_0 : i32, i32, i32
  }
  func.func @transform_3(%arg0: i32) -> (i32, i32, i32) {
    %c0_i32 = arith.constant 0 : i32
    %c0_i32_0 = arith.constant 0 : i32
    %c0_i32_1 = arith.constant 0 : i32
    return %arg0, %c0_i32, %c0_i32_0 : i32, i32, i32
  }
  func.func @transform_4(%arg0: i32) -> (i32, i32) {
    %c0_i32 = arith.constant 0 : i32
    %c0_i32_0 = arith.constant 0 : i32
    %c0_i32_1 = arith.constant 0 : i32
    return %c0_i32, %c0_i32_0 : i32, i32
  }
  func.func @transform_5(%arg0: i32) -> (i32, i32) {
    %c0_i32 = arith.constant 0 : i32
    %c0_i32_0 = arith.constant 0 : i32
    %c0_i32_1 = arith.constant 0 : i32
    return %c0_i32, %c0_i32_0 : i32, i32
  }
  func.func @transform_6(%arg0: i32) -> (i32, i32) {
    %c0_i32 = arith.constant 0 : i32
    %c0_i32_0 = arith.constant 0 : i32
    %c0_i32_1 = arith.constant 0 : i32
    return %c0_i32, %c0_i32_0 : i32, i32
  }
  func.func @transform_7(%arg0: i32) -> (i32, i32) {
    %c0_i32 = arith.constant 0 : i32
    %c0_i32_0 = arith.constant 0 : i32
    %c0_i32_1 = arith.constant 0 : i32
    return %c0_i32, %c0_i32_0 : i32, i32
  }
  func.func @transform_8(%arg0: i32) -> (i32, i32) {
    %c0_i32 = arith.constant 0 : i32
    %c0_i32_0 = arith.constant 0 : i32
    %c0_i32_1 = arith.constant 0 : i32
    return %c0_i32, %c0_i32_0 : i32, i32
  }
  func.func @transform_9(%arg0: i32) -> (i32, i32) {
    %c0_i32 = arith.constant 0 : i32
    %c0_i32_0 = arith.constant 0 : i32
    %c0_i32_1 = arith.constant 0 : i32
    return %c0_i32, %c0_i32_0 : i32, i32
  }
  func.func @transform_10(%arg0: i32) -> (i32, i32) {
    %c0_i32 = arith.constant 0 : i32
    %c0_i32_0 = arith.constant 0 : i32
    %c0_i32_1 = arith.constant 0 : i32
    return %c0_i32, %c0_i32_0 : i32, i32
  }
  func.func @transform_11(%arg0: i32) -> (i32, i32) {
    %c0_i32 = arith.constant 0 : i32
    %c0_i32_0 = arith.constant 0 : i32
    %c0_i32_1 = arith.constant 0 : i32
    return %c0_i32, %c0_i32_0 : i32, i32
  }
  func.func @transform_12(%arg0: i32) -> (i32, i32) {
    %c0_i32 = arith.constant 0 : i32
    %c0_i32_0 = arith.constant 0 : i32
    %c0_i32_1 = arith.constant 0 : i32
    return %c0_i32, %c0_i32_0 : i32, i32
  }
  func.func @transform_13(%arg0: i32) -> (i32, i32) {
    %c0_i32 = arith.constant 0 : i32
    %c0_i32_0 = arith.constant 0 : i32
    %c0_i32_1 = arith.constant 0 : i32
    return %c0_i32, %c0_i32_0 : i32, i32
  }
  func.func @transform_14(%arg0: i32) -> (i32, i32, i32) {
    %c0_i32 = arith.constant 0 : i32
    %c0_i32_0 = arith.constant 0 : i32
    %c0_i32_1 = arith.constant 0 : i32
    %c0_i32_2 = arith.constant 0 : i32
    return %c0_i32, %c0_i32_0, %c0_i32_1 : i32, i32, i32
  }
  func.func @transform_15(%arg0: i32) -> (i32, i32, i32) {
    %c0_i32 = arith.constant 0 : i32
    %c0_i32_0 = arith.constant 0 : i32
    %c0_i32_1 = arith.constant 0 : i32
    %c0_i32_2 = arith.constant 0 : i32
    return %c0_i32, %c0_i32_0, %c0_i32_1 : i32, i32, i32
  }
  func.func @transform_16(%arg0: i32) -> (i32, i32, i32) {
    %c0_i32 = arith.constant 0 : i32
    %c0_i32_0 = arith.constant 0 : i32
    %c0_i32_1 = arith.constant 0 : i32
    %c0_i32_2 = arith.constant 0 : i32
    return %c0_i32, %c0_i32_0, %c0_i32_1 : i32, i32, i32
  }
  func.func @transform_17(%arg0: i32) -> (i32, i32) {
    %c0_i32 = arith.constant 0 : i32
    %c0_i32_0 = arith.constant 0 : i32
    %c0_i32_1 = arith.constant 0 : i32
    return %c0_i32, %c0_i32_0 : i32, i32
  }
  func.func @transform_18(%arg0: i32) -> (i32, i32) {
    %c0_i32 = arith.constant 0 : i32
    %c0_i32_0 = arith.constant 0 : i32
    %c0_i32_1 = arith.constant 0 : i32
    return %c0_i32, %c0_i32_0 : i32, i32
  }
  func.func @transform_19(%arg0: i32) -> (i32, i32, i32) {
    %c0_i32 = arith.constant 0 : i32
    %c0_i32_0 = arith.constant 0 : i32
    %c0_i32_1 = arith.constant 0 : i32
    %c0_i32_2 = arith.constant 0 : i32
    return %c0_i32, %c0_i32_0, %c0_i32_1 : i32, i32, i32
  }
  func.func @transform_20(%arg0: i32) -> (i32, i32, i32) {
    %c0_i32 = arith.constant 0 : i32
    %c0_i32_0 = arith.constant 0 : i32
    %c0_i32_1 = arith.constant 0 : i32
    return %arg0, %c0_i32, %c0_i32_0 : i32, i32, i32
  }
  func.func @transform_21(%arg0: i32) -> (i32, i32, i32) {
    %c0_i32 = arith.constant 0 : i32
    %c0_i32_0 = arith.constant 0 : i32
    %c0_i32_1 = arith.constant 0 : i32
    return %arg0, %c0_i32, %c0_i32_0 : i32, i32, i32
  }
}

</mosaic_0001>

<bundles_post_ra>
// kernel: tpu_custom_call.1
= control target key start
LH: loop header
LB: loop body
LE: loop exit
PB: predicated region body
PF: predicated region fallthrough
CT: control target
= control target key end

     0   :  { %s6562_s0 = inlined_call_operand.vmem [shape: f32[2,16,4], index: 0, kind: input, shape index: {}]   ;;  %s6563_s1 = inlined_call_operand.hbm [shape: f32[2,8,32], index: 1, kind: input, shape index: {}]   ;;  %s6564_s2 = inlined_call_operand.hbm [shape: f32[2,8,128], index: 2, kind: input, shape index: {}]   ;;  %s6565_s3 = inlined_call_operand.vmem [shape: f32[2,8,1], index: 3, kind: input, shape index: {}]   ;;  %s6566_s4 = inlined_call_operand.hbm [shape: f32[4,32], index: 4, kind: input, shape index: {}]   ;;  %s6567_s5 = inlined_call_operand.vmem [shape: f32[32,96], index: 5, kind: input, shape index: {}]   ;;  %s6568_s6 = inlined_call_operand.vmem [shape: f32[32,32], index: 6, kind: input, shape index: {}]   ;;  %s6569_s7 = inlined_call_operand.vmem [shape: f32[32,32], index: 7, kind: input, shape index: {}]   ;;  %s6570_s8 = inlined_call_operand.vmem [shape: f32[32,64], index: 8, kind: input, shape index: {}]   ;;  %s6571_s9 = inlined_call_operand.vmem [shape: f32[32,32], index: 9, kind: input, shape index: {}]   ;;  %s6572_s10 = inlined_call_operand.vmem [shape: f32[32,64], index: 10, kind: input, shape index: {}]   ;;  %s6573_s11 = inlined_call_operand.vmem [shape: f32[64,32], index: 11, kind: input, shape index: {}]   ;;  %s6574_s12 = inlined_call_operand.vmem [shape: f32[32,128], index: 12, kind: input, shape index: {}]   ;;  %s6575_s13 = inlined_call_operand.vmem [shape: f32[128,32], index: 13, kind: input, shape index: {}]   ;;  %s6576_s14 = inlined_call_operand.vmem [shape: f32[4,32,32], index: 14, kind: input, shape index: {}]   ;;  %s6577_s15 = inlined_call_operand.vmem [shape: f32[4,32,32], index: 15, kind: input, shape index: {}]   ;;  %s6578_s16 = inlined_call_operand.vmem [shape: f32[4,1,32], index: 16, kind: input, shape index: {}]   ;;  %s6579_s17 = inlined_call_operand.vmem [shape: f32[32,128], index: 17, kind: input, shape index: {}]   ;;  %s6580_s18 = inlined_call_operand.vmem [shape: f32[128,4], index: 18, kind: input, shape index: {}]   ;;  %s6581_s19 = inlined_call_operand.vmem [shape: f32[4,32,4], index: 19, kind: input, shape index: {}]   ;;  %s6582_s20 = inlined_call_operand.hbm [shape: f32[2,8,128], index: 20, kind: output, shape index: {0}]   ;;  %s6583_s21 = inlined_call_operand.hbm [shape: f32[2,4,4], index: 21, kind: output, shape index: {1}]  }
   0x1   :  { %6610 = sst [smem:[#allocation22_spill]] %s6562_s0 }
   0x2   :  { %6611 = sst [smem:[#allocation23_spill]] %s6563_s1 }
   0x3   :  { %6612 = sst [smem:[#allocation24_spill]] %s6564_s2 }
   0x4   :  { %6613 = sst [smem:[#allocation25_spill]] %s6565_s3 }
   0x5   :  { %6614 = sst [smem:[#allocation26_spill]] %s6566_s4 }
   0x6   :  { %6615 = sst [smem:[#allocation27_spill]] %s6567_s5 }
   0x7   :  { %6616 = sst [smem:[#allocation28_spill]] %s6568_s6 }
   0x8   :  { %6617 = sst [smem:[#allocation29_spill]] %s6569_s7 }
   0x9   :  { %6618 = sst [smem:[#allocation30_spill]] %s6576_s14 }
   0xa   :  { %6619 = sst [smem:[#allocation31_spill]] %s6577_s15 }
   0xb   :  { %6620 = sst [smem:[#allocation32_spill]] %s6578_s16 }
   0xc   :  { %6621 = sst [smem:[#allocation33_spill]] %s6579_s17 }
   0xd   :  { %6622 = sst [smem:[#allocation34_spill]] %s6580_s18 }
   0xe   :  { %6623 = sst [smem:[#allocation35_spill]] %s6581_s19 }
   0xf   :  { %6624 = sst [smem:[#allocation36_spill]] %s6582_s20 }
  0x10   :  { %6625 = sst [smem:[#allocation37_spill]] %s6583_s21 }
  0x11   :  { %27 = vsyncpa [#allocation3], 0 }
  0x12   :  { %29 = vsyncpa [#allocation3 + $0x1], 0 }
  0x13   :  { %30 = vsyncpa [#allocation6], 0 }
  0x14   :  { %32 = vsyncpa [#allocation6 + $0x1], 0 }
  0x15   :  { %33 = vsyncpa [#allocation4], 0 }
  0x16   :  { %35 = vsyncpa [#allocation4 + $0x1], 0 }
  0x17   :  { %36 = vsyncpa [#allocation10], 0 }
  0x18   :  { %38 = vsyncpa [#allocation10 + $0x1], 0  ;;  %s5437_s2 = smov 0   ;;  %s5439_s25 = smov 0  }
  0x19   :  { %s5441_s26 = smov 0   ;;  %s5443_s27 = smov 0  }
  0x1a LB: > { %6626 = sst [smem:[#allocation16_spill]] %s5303_s2  ;;  %s5458_s3 = sadd.s32 4294967295, %s5315_s27   ;;  %s5315_s27 = sphi %s5443_s27, %s6668_s27   ;;  %s5311_s26 = sphi %s5441_s26, %s6670_s26   ;;  %s5307_s25 = sphi %s5439_s25, %s6672_s25   ;;  %s5303_s2 = sphi %s5437_s2, %s6671_s2  }
  0x1b   : > { %6627 = sst [smem:[#allocation17_spill]] %s5311_s26  ;;  %s4104_s28 = sadd.s32 4294967294, %s5315_s27  }
  0x1c   : > { %p90_p0 = scmp.ne.s32.totalorder %s5307_s25, %s5303_s2  ;;  %p6587_p1 = scmp.eq.s32.totalorder %s5458_s3, 0 }
  0x1d   : > { %p508_p3 = scmp.eq.s32.totalorder %s4104_s28, 1  ;;  %p4105_p5 = scmp.ge.s32.totalorder %s5315_s27, 1 }
  0x1e   : > { %p5467_p4 = por %p6587_p1, %p90_p0  ;;  %p541_p7 = scmp.lt.s32.totalorder %s5315_s27, 3 }
  0x1f   : > { %p5472_p6 = por %p508_p3, %p90_p0  ;;  %s5317_s30 = smov [#allocation7]  }
  0x20   : > { %s6628_s29 = scalar_select %p5467_p4, 1, 0 }
  0x21   : > { %s6629_s0 = scalar_select %p5472_p6, 1, 0 }
  0x22   : > { %p5477_p8 = pnand %p4105_p5, %p541_p7  ;;  %s554_s5 = sshll.u32 %s5317_s30, 4  ;;  %s555_s5 = int_to_ptr.vmem [resolvable:$true] %s554_s5 }
  0x23   : > { %6630 = sst [smem:[#allocation18_spill]] %s6629_s0  ;;  %s5485_s22 = sadd.s32 1, %s5315_s27  }
  0x24   : > { %s6631_s4 = scalar_select %p5477_p8, 1, 0 }
  0x25   : > { %p4909_p10 = pneg %p5477_p8  ;;  %6632 = sst [smem:[#allocation19_spill]] %s5485_s22 }
  0x26   : > { %s74_s1 = ssub.s32 %s5315_s27, %s5485_s22  ;;  %s77_s28 = sadd.s32 1, %s5311_s26 }
  0x27   : > { %p5489_p11 = pnand %p4909_p10, %p6587_p1  ;;  %p5495_p12 = scmp.eq.s32.totalorder %s74_s1, 0 }
  0x28   : > { %p84_p13 = scmp.ne.s32.totalorder %s5311_s26, %s5307_s25  ;;  %s5142_s30 = scalar_lea.vmem %s555_s5, 64 }
  0x29   : > { %p5133_p0 = pneg %p5489_p11  ;;  %p5143_p3 = scmp.ne.s32.totalorder %s555_s5, %s5142_s30 }
  0x2a   : > { %p5150_p9 = scmp.lt.s32.totalorder %s555_s5, %s555_s5  ;;  %p5151_p2 = scmp.lt.s32.totalorder %s5142_s30, %s5142_s30 }
  0x2b   : > { %p5145_p5 = pnand %p5143_p3, %p5133_p0 }
  0x2c   : > { %p5152_p10 = por %p5151_p2, %p5150_p9 }
  0x2d   : > { %p5146_p7 = pneg %p5145_p5 }
  0x2f   : > { %p5153_p1 = pnand %p5152_p10, %p5146_p7 }
  0x31   : > { %5156 = shalt.err (!%p5153_p1)
}
  0x32   : > { %s6635_s0 = sld [smem:[#allocation26_spill]]  ;;  %p85_p1 = scmp.eq.s32.totalorder %s5315_s27, 0 }
  0x33   : > { %s5512_s30 = scalar_select %p5495_p12, %s5311_s26, %s77_s28  }
  0x34   : > { %p6637_p2 = scmp.eq.s32.totalorder %s5458_s3, 1  ;;  %p4928_p0 = scmp.lt.s32.totalorder %s5315_s27, 2 }
  0x35   : > { %6636 = sst [smem:[#allocation20_spill]] %s5512_s30  ;;  %s618_s23 = sand.u32 1, %s5311_s26  }
  0x36   : > { %p5520_p9 = por %p6637_p2, %p84_p13  ;;  %p86_p3 = por %p85_p1, %p84_p13 }
  0x37   : > { %s5529_s1 = sshll.u32 %s618_s23, 3  ;;  %s4109_s2 = sshll.u32 %s5315_s27, 7 }
  0x38   : > { %4912 = dma.hbm_to_vmem [thread:$0]  (!%p5489_p11), %s6635_s0, 64, %s555_s5, [#allocation6]  }
  0x39   : > { %s6638_s22 = scalar_select %p5520_p9, 1, 0 }
  0x3a   : > { %s6640_s5 = sld [smem:[#allocation23_spill]]  ;;  %s622_s28 = scalar_lea.vmem [#allocation2], %s5529_s1 }
  0x3b   : > { %6639 = sst [smem:[#allocation21_spill]] %s6638_s22  ;;  %s629_s30 = sshll.u32 %s622_s28, 4  ;;  %s630_s30 = int_to_ptr.vmem [resolvable:$true] %s629_s30 }
  0x3c   : > { %p5538_p11 = pnand %p4928_p0, %p86_p3  ;;  %s6642_s19 = sld [smem:[#allocation24_spill]] }
  0x3d   : > { %s619_s21 = scalar_lea.sflag [#allocation3], %s618_s23 }
  0x3e   : > { %p5159_p13 = pneg %p5538_p11 }
  0x40   : > { %s5535_s24 = scalar_lea.hbm %s6640_s5, %s4109_s2  ;;  %s5162_s16 = scalar_lea.hbm %s6640_s5, 256 }
  0x41   : > { %s5157_s0 = scalar_lea.hbm %s5535_s24, 128  ;;  %p5163_p10 = scmp.lt.s32.totalorder %s5535_s24, %s6640_s5 }
  0x42   : > { %s5545_s18 = scalar_lea.hbm %s6642_s19, %s4109_s2  ;;  %p5158_p12 = scmp.ne.s32.totalorder %s5535_s24, %s5157_s0 }
  0x43   : > { %p5164_p1 = scmp.lt.s32.totalorder %s5162_s16, %s5157_s0 }
  0x44   : > { %p5160_p5 = pnand %p5159_p13, %p5158_p12 }
  0x45   : > { %p5165_p2 = por %p5164_p1, %p5163_p10 }
  0x46   : > { %p5161_p7 = pneg %p5160_p5 }
  0x48   : > { %p5166_p0 = pnand %p5165_p2, %p5161_p7 }
  0x4a   : > { %5169 = shalt.err (!%p5166_p0)
}
  0x4b   : > { %s5170_s2 = scalar_lea.vmem %s630_s30, 128  ;;  %s5318_s26 = smov [#allocation2]  }
  0x4c   : > { %p5171_p3 = scmp.ne.s32.totalorder %s630_s30, %s5170_s2  ;;  %s5175_s22 = sshll.u32 %s5318_s26, 4  ;;  %s5176_s22 = int_to_ptr.vmem [resolvable:$false] %s5175_s22 }
  0x4d   : > { %s5177_s17 = scalar_lea.vmem %s5176_s22, 256  ;;  %p5178_p5 = scmp.lt.s32.totalorder %s630_s30, %s5176_s22 }
  0x4e   : > { %p5173_p6 = pnand %p5171_p3, %p5159_p13  ;;  %p5179_p9 = scmp.lt.s32.totalorder %s5177_s17, %s5170_s2 }
  0x50   : > { %p5174_p12 = pneg %p5173_p6  ;;  %p5180_p4 = por %p5179_p9, %p5178_p5 }
  0x52   : > { %p5181_p8 = pnand %p5180_p4, %p5174_p12 }
  0x54   : > { %5184 = shalt.err (!%p5181_p8)
}
  0x55   : > { %4916 = dma.hbm_to_vmem [thread:$0]  (!%p5538_p11), %s5535_s24, 128, %s630_s30, %s619_s21  }
  0x56   : > { %s636_s14 = sand.u32 1, %s5315_s27   ;;  %s640_s15 = scalar_lea.vmem [#allocation5], %s5529_s1 }
  0x57   : > { %s647_s16 = sshll.u32 %s640_s15, 4  ;;  %s637_s23 = scalar_lea.sflag [#allocation6], %s636_s14  ;;  %s648_s16 = int_to_ptr.vmem [resolvable:$true] %s647_s16 }
  0x58   : > { %s5185_s0 = scalar_lea.hbm %s5545_s18, 128  ;;  %s5190_s26 = scalar_lea.hbm %s6642_s19, 256 }
  0x59   : > { %p5186_p6 = scmp.ne.s32.totalorder %s5545_s18, %s5185_s0  ;;  %p5191_p9 = scmp.lt.s32.totalorder %s5545_s18, %s6642_s19 }
  0x5a   : > { %p5192_p7 = scmp.lt.s32.totalorder %s5190_s26, %s5185_s0 }
  0x5b   : > { %p5188_p4 = pnand %p5186_p6, %p5159_p13 }
  0x5c   : > { %p5193_p10 = por %p5192_p7, %p5191_p9 }
  0x5d   : > { %p5189_p8 = pneg %p5188_p4 }
  0x5f   : > { %p5194_p1 = pnand %p5193_p10, %p5189_p8 }
  0x61   : > { %5197 = shalt.err (!%p5194_p1)
}
  0x62   : > { %s5198_s30 = scalar_lea.vmem %s648_s16, 128  ;;  %s5319_s1 = smov [#allocation5]  }
  0x63   : > { %p5199_p2 = scmp.ne.s32.totalorder %s648_s16, %s5198_s30  ;;  %s5203_s24 = sshll.u32 %s5319_s1, 4  ;;  %s5204_s24 = int_to_ptr.vmem [resolvable:$false] %s5203_s24 }
  0x64   : > { %s5205_s21 = scalar_lea.vmem %s5204_s24, 256  ;;  %p5206_p12 = scmp.lt.s32.totalorder %s648_s16, %s5204_s24 }
  0x65   : > { %p5201_p0 = pnand %p5199_p2, %p5159_p13  ;;  %p5207_p5 = scmp.lt.s32.totalorder %s5205_s21, %s5198_s30 }
  0x67   : > { %p5202_p3 = pneg %p5201_p0  ;;  %p5208_p6 = por %p5207_p5, %p5206_p12 }
  0x69   : > { %p5209_p4 = pnand %p5208_p6, %p5202_p3 }
  0x6b   : > { %5212 = shalt.err (!%p5209_p4)
}
  0x6c   : > { %4919 = dma.hbm_to_vmem [thread:$0]  (!%p5538_p11), %s5545_s18, 128, %s648_s16, %s637_s23  }
  0x6d   : > { %p6643_p8 = scmp.ne.s32.totalorder %s6631_s4, 0 }
  0x6e   : > { %s5590_s14 = sand.u32 (!%p6643_p8), 1, %s5307_s25   ;;  %p6644_p13 = scmp.ne.s32.totalorder (!%p6643_p8), %s6628_s29, 0 }
  0x6f   : > { %663 = sbr.rel (%p6643_p8) target bundleno = 7224 (0x1c38), region = 100  ;;  %s5593_s15 = sshll.u32 (!%p6643_p8), %s5590_s14, 3 }
  0x70   : > { %s666_s0 = scalar_lea.sflag (!%p6643_p8), [#allocation3], %s5590_s14  ;;  %s669_s28 = scalar_lea.vmem (!%p6643_p8), [#allocation2], %s5593_s15 }
  0x74   : > { %5282 = dma.done.wait (%p6644_p13), %s666_s0, 128  }
  0x75   : > { %5284 = vsyncadd (%p6644_p13), %s666_s0, 4294967168  ;;  %s674_s18 = sand.u32 1, %s5458_s3   ;;  %s678_s4 = scalar_lea.vmem [#allocation5], %s5593_s15 }
  0x76   : > { %s675_s20 = scalar_lea.sflag [#allocation6], %s674_s18 }
  0x77   : > { %5286 = dma.done.wait (%p6644_p13), %s675_s20, 128  }
  0x78   : > { %5288 = vsyncadd (%p6644_p13), %s675_s20, 4294967168  ;;  %p6645_p11 = scmp.eq.s32.totalorder %s5458_s3, 0 }
  0x7a   : > { %5290 = dma.done.wait (%p6645_p11), [#allocation6], 64   ;;  %p6646_p9 = pmov %p6645_p11 }
  0x7b   : > { %v5320_v0 = vmov 0.0   ;;  %vm5321_vm0 = vmmov 0   ;;  %s6647_s23 = sld [smem:[#allocation27_spill]]  ;;  %v5629_v7 = vld [vmem:[%s669_s28] sm:$0xff]  ;;  %vm832_vm1 = vcmask 261120   ;;  %vm780_vm2 = vcmask 1041408  }
  0x7c   : > { %5292 = vsyncadd (%p6646_p9), [#allocation6], 4294967232  ;;  %4431 = vmatprep.subr.bf16.mxu1 %v5320_v0  ;;  %4435 = vmatprep.mubr.msk.bf16.mxu1 %vm5321_vm0, %v5320_v0  ;;  %v829_v8 = vpack.c.bf16 %v5629_v7, %v5629_v7  ;;  %v773_v9 = vld [vmem:[#allocation7] sm:$0xf]  ;;  %p760_p7 = scmp.lt.s32.totalorder %s5458_s3, 1  ;;  %s6648_s18 = sld [smem:[#allocation22_spill]]  ;;  %v876_v27 = vlaneseq }
  0x7d   : > { %4425 = vmatprep.subr.bf16.mxu0 %v5320_v0  ;;  %4427 = vmatprep.mubr.msk.bf16.mxu0 %vm5321_vm0, %v5320_v0  ;;  %v775_v10 = vpack.c.bf16 %v773_v9, %v773_v9  ;;  %vm776_vm3 = vcmask 31744   ;;  %s5322_s29 = smov 96   ;;  %vm933_vm5 = vcmask 64512   ;;  %s5323_s16 = smov 64   ;;  %vm951_vm6 = vcmask 1043456   ;;  %v1098_v57 = vld [vmem:[%s6570_s8 + $0x10] sm:$0xff] }
  0x7e   : > { %s5640_s24 = scalar_select %p760_p7, %s5458_s3, 1  ;;  %v877_v28 = vshrl.u32 %v876_v27, 7  ;;  %v879_v29 = vand.u32 127, %v876_v27  ;;  %v1099_v58 = vld [vmem:[%s6570_s8 + $0x18] sm:$0xff]  ;;  %v1096_v62 = vld [vmem:[%s6570_s8] sm:$0xff]  ;;  %v1097_v63 = vld [vmem:[%s6570_s8 + $0x8] sm:$0xff] }
  0x7f   : > { %v782_v11 = vsel %vm780_vm2, %v775_v10, 0  ;;  %s6649_s6 = sld [smem:[#allocation28_spill]]  ;;  %v1102_v60 = vpack.c.bf16 %v1099_v58, %v1098_v57  ;;  %vm1196_vm7 = vcmask 130048   ;;  %v1364_v58 = vld [vmem:[%s6573_s11 + $0x30] sm:$0xff]  ;;  %vm1371_vm8 = vcmask 523264  }
  0x80   : > { %4426 = vmatpush3.bf16.msra.mxu0 %v782_v11  ;;  %s4245_s21 = sshll.u32 %s5640_s24, 4  ;;  %vm880_vm4 = vcmp.ge.s32.totalorder %v877_v28, %v879_v29  ;;  %s6650_s7 = sld [smem:[#allocation29_spill]]  ;;  %vm3469_vm9 = vcmask 1040384   ;;  %vm3472_vm10 = vcmask 1042432   ;;  %vm3475_vm11 = vcmask 1044480  }
  0x81   : > { %v827_v1 = vld [vmem:[%s6647_s23 + $0x10] sm:$0xff]  ;;  %v828_v2 = vld [vmem:[%s6647_s23 + $0x18] sm:$0xff]  ;;  %v825_v3 = vld [vmem:[%s6647_s23] sm:$0xff]  ;;  %4439 = vmatprep.subr.bf16.mxu0 %v5320_v0  ;;  %s6651_s28 = sld [smem:[#allocation30_spill]]  ;;  %vm3477_vm12 = vcmask 1045504   ;;  %vm3479_vm13 = vcmask 1046528  }
  0x82   : > { %v831_v4 = vpack.c.bf16 %v828_v2, %v827_v1  ;;  %v826_v5 = vld [vmem:[%s6647_s23 + $0x8] sm:$0xff]  ;;  %s764_s20 = scalar_lea.vmem %s6648_s18, %s4245_s21  ;;  %s6652_s26 = sld [smem:[#allocation31_spill]]  ;;  %vm3901_vm14 = vcmask 27648  }
  0x83   : > { %v830_v6 = vpack.c.bf16 %v826_v5, %v825_v3  ;;  %v771_v12 = vld [vmem:[%s764_s20] sm:$0xff]  ;;  %v772_v13 = vld [vmem:[%s764_s20 + $0x8] sm:$0xff]  ;;  %v1101_v3 = vpack.c.bf16 %v1097_v63, %v1096_v62  ;;  %s6654_s0 = sld [smem:[#allocation32_spill]]  ;;  %s6661_s18 = scalar_lea.vmem [#allocation8], %s5593_s15 }
  0x84   : > { %4432 = vmatpush3.bf16.msra.mxu1 %v831_v4  ;;  %v774_v14 = vpack.c.bf16 %v772_v13, %v771_v12  ;;  %v1363_v62 = vld [vmem:[%s6573_s11 + $0x28] sm:$0xff]  ;;  %s6655_s1 = sld [smem:[#allocation33_spill]]  ;;  %s3933_s20 = sshll.u32 %s6661_s18, 4  ;;  %s3934_s20 = int_to_ptr.vmem [resolvable:$true] %s3933_s20 }
  0x85   : > { %4433 = vmatprep.subr.bf16.mxu1 %v5320_v0  ;;  %v997_v42 = vld [vmem:[%s6649_s6 + $0x10] sm:$0xff]  ;;  %v998_v43 = vld [vmem:[%s6649_s6 + $0x18] sm:$0xff]  ;;  %v995_v51 = vld [vmem:[%s6649_s6] sm:$0xff]  ;;  %s6656_s30 = sld [smem:[#allocation34_spill]] }
  0x86   : > { %4428 = vmatmul.mubr.msk.bf16.vlgmr.msra.gmra.mxu0 %vm776_vm3, %v774_v14  ;;  %v1001_v44 = vpack.c.bf16 %v998_v43, %v997_v42  ;;  %v996_v52 = vld [vmem:[%s6649_s6 + $0x8] sm:$0xff]  ;;  %v1048_v54 = vld [vmem:[%s6650_s7 + $0x10] sm:$0xff]  ;;  %v1049_v55 = vld [vmem:[%s6650_s7 + $0x18] sm:$0xff]  ;;  %s6658_s21 = sld [smem:[#allocation35_spill]] }
  0x87   : > { %4441 = vmatprep.mubr.msk.bf16.mxu0 %vm5321_vm0, %v5320_v0  ;;  %v1000_v53 = vpack.c.bf16 %v996_v52, %v995_v51  ;;  %v1052_v56 = vpack.c.bf16 %v1049_v55, %v1048_v54  ;;  %v1046_v5 = vld [vmem:[%s6650_s7] sm:$0xff]  ;;  %s6659_s2 = sld [smem:[#allocation21_spill]] }
  0x88   : > { %4434 = vmatpush3.bf16.msra.mxu1 %v830_v6  ;;  %v1047_v6 = vld [vmem:[%s6650_s7 + $0x8] sm:$0xff]  ;;  %v1307_v55 = vld [vmem:[%s6572_s10] sm:$0xff]  ;;  %s6653_s22 = smov %s6652_s26 }
  0x89   : > { %4445 = vmatprep.subr.bf16.mxu1 %v5320_v0 }
  0x8b   : > { %4436 = vmatmul.mubr.msk.bf16.vlgmr.msra.gmra.mxu1 %vm832_vm1, %v829_v8  ;;  %v1051_v8 = vpack.c.bf16 %v1047_v6, %v1046_v5 }
  0x8c   : > { %4447 = vmatprep.mubr.msk.bf16.mxu1 %vm5321_vm0, %v5320_v0 }
  0x8d   : > { %p6662_p1 = scmp.ne.s32.totalorder %s6659_s2, 0 }
 0x146   : > { %v5652_v20 = vpop.f32.mrf.mxu0 }
 0x148   : > { %v4429_v21 = vpop.f32.mrf.mxu0 }
 0x14a   : > { %v5654_v22 = vpop.f32.mrf.mxu0 }
 0x14b   : > { %v870_v15 = vpop.f32.mrf.mxu1  ;;  %v1100_v23 = vpack.c.bf16 %v5654_v22, %v5652_v20 }
 0x14c   : > { %v881_v16 = vpack.c.bf16 %v870_v15, %v870_v15  ;;  %v4430_v24 = vpop.f32.mrf.mxu0 }
 0x14d   : > { %v4437_v17 = vpop.f32.mrf.mxu1 }
 0x14e   : > { %883 = vrot.lane.b32.xlu0 %v881_v16, %s5322_s29 }
 0x14f   : > { %v873_v18 = vpop.f32.mrf.mxu1 }
 0x151   : > { %v4438_v19 = vpop.f32.mrf.mxu1 }
 0x1c0   : > { %v884_v25 = vpop.permute.xlu0 %883 }
 0x1c1   : > { %v889_v26 = vsel %vm832_vm1, %v884_v25, 0 }
 0x1c2   : > { %4440 = vmatpush3.bf16.xpose.msra.mxu0 %v889_v26 }
 0x1c3   : > { %4451 = vmatprep.subr.bf16.mxu0 %v5320_v0 }
 0x1c9   : > { %4442 = vmatmul.mubr.msk.bf16.vlgmr.msra.gmra.mxu0 %vm832_vm1, %v881_v16 }
 0x1ca   : > { %4455 = vmatprep.mubr.msk.bf16.mxu0 %vm5321_vm0, %v5320_v0  ;;  %4452 = vmatpush3.bf16.msra.mxu0 %v1001_v44  ;;  %v1256_v44 = vld [vmem:[%s6571_s9] sm:$0xff] }
 0x1cb   : > { %4453 = vmatprep.subr.bf16.mxu0 %v5320_v0 }
 0x1ce   : > { %4454 = vmatpush3.bf16.msra.mxu0 %v1000_v53 }
 0x1cf   : > { %4467 = vmatprep.subr.bf16.mxu0 %v5320_v0 }
 0x289   : > { %v925_v30 = vpop.f32.mrf.mxu0 }
 0x28a   : > { %v931_v31 = vmul.f32 0.17677669, %v925_v30 }
 0x28b   : > { %v4443_v32 = vpop.f32.mrf.mxu0 }
 0x28c   : > { %v932_v33 = vsel %vm880_vm4, %v931_v31, -1e+30 }
 0x28d   : > { %v928_v34 = vpop.f32.mrf.mxu0  ;;  %v934_v35 = vsel %vm933_vm5, %v932_v33, -inf }
 0x28e   : > { %935 = vmax.xlane.f32.xlu0 %v934_v35 }
 0x28f   : > { %v4444_v36 = vpop.f32.mrf.mxu0 }
 0x290   : > { %v1258_v36 = vld [vmem:[%s6571_s9 + $0x10] sm:$0xff] }
 0x317   : > { %v936_v37 = vpop.xlane.xlu0 %935 }
 0x318   : > { %v937_v38 = vsub.f32 %v932_v33, %v936_v37  ;;  %v1259_v37 = vld [vmem:[%s6571_s9 + $0x18] sm:$0xff] }
 0x31a   : > { %v938_v39 = vmul.f32 1.442695, %v937_v38  ;;  %v1262_v38 = vpack.c.bf16 %v1259_v37, %v1258_v36 }
 0x31c   : > { %4971 = vpow2.f32 %v938_v39 }
 0x329   : > { %v4972_v40 = vpop.eup %4971 }
 0x32a   : > { %v940_v41 = vsel %vm933_vm5, %v4972_v40, 0.0 }
 0x32b   : > { %941 = vadd.xlane.f32.xlu1 %v940_v41 }
 0x33c   : > { %946 = vrot.lane.b32.xlu1 %v881_v16, %s5323_s16  ;;  %s4120_s16 = sshll.u32 %s5640_s24, 3  ;;  %s6660_s24 = sld [smem:[#allocation36_spill]] }
 0x3b4   : > { %v942_v45 = vpop.xlane.xlu1 %941 }
 0x3b5   : > { %4973 = vrcp.f32 %v942_v45  ;;  %v1257_v45 = vld [vmem:[%s6571_s9 + $0x8] sm:$0xff] }
 0x3b8   : > { %v947_v46 = vpop.permute.xlu1 %946 }
 0x3b9   : > { %v953_v47 = vsel %vm951_vm6, %v947_v46, 0  ;;  %v1261_v46 = vpack.c.bf16 %v1257_v45, %v1256_v44 }
 0x3ba   : > { %4446 = vmatpush3.bf16.msra.mxu1 %v953_v47  ;;  %v1309_v47 = vld [vmem:[%s6572_s10 + $0x10] sm:$0xff] }
 0x3bb   : > { %4459 = vmatprep.subr.bf16.mxu1 %v5320_v0 }
 0x3c2   : > { %v4974_v48 = vpop.eup %4973 }
 0x3c3   : > { %v944_v49 = vmul.f32 %v4974_v48, %v4972_v40  ;;  %v1310_v48 = vld [vmem:[%s6572_s10 + $0x18] sm:$0xff] }
 0x3c5   : > { %v945_v50 = vpack.c.bf16 %v944_v49, %v944_v49  ;;  %v1313_v49 = vpack.c.bf16 %v1310_v48, %v1309_v47 }
 0x3c7   : > { %4448 = vmatmul.mubr.msk.bf16.vlgmr.msra.gmra.mxu1 %vm933_vm5, %v945_v50 }
 0x3c8   : > { %4463 = vmatprep.mubr.msk.bf16.mxu1 %vm5321_vm0, %v5320_v0  ;;  %4460 = vmatpush3.bf16.msra.mxu1 %v1052_v56  ;;  %v1308_v56 = vld [vmem:[%s6572_s10 + $0x8] sm:$0xff] }
 0x3c9   : > { %4461 = vmatprep.subr.bf16.mxu1 %v5320_v0  ;;  %v1312_v57 = vpack.c.bf16 %v1308_v56, %v1307_v55  ;;  %v1512_v55 = vld [vmem:[%s6575_s13 + $0x70] sm:$0xff]  ;;  %v1513_v56 = vld [vmem:[%s6575_s13 + $0x78] sm:$0xff] }
 0x3cc   : > { %4462 = vmatpush3.bf16.msra.mxu1 %v1051_v8 }
 0x3cd   : > { %4475 = vmatprep.subr.bf16.mxu1 %v5320_v0 }
 0x487   : > { %v989_v59 = vpop.f32.mrf.mxu1 }
 0x488   : > { %v999_v61 = vpack.c.bf16 %v989_v59, %v989_v59  ;;  %v1365_v59 = vld [vmem:[%s6573_s11 + $0x38] sm:$0xff] }
 0x489   : > { %v4449_v1 = vpop.f32.mrf.mxu1 }
 0x48a   : > { %4456 = vmatmul.mubr.msk.bf16.vlgmr.msra.gmra.mxu0 %vm832_vm1, %v999_v61  ;;  %v1370_v61 = vpack.c.bf16 %v1365_v59, %v1364_v58  ;;  %v1360_v1 = vld [vmem:[%s6573_s11 + $0x10] sm:$0xff]  ;;  %v1522_v58 = vpack.c.bf16 %v1513_v56, %v1512_v55  ;;  %v1511_v59 = vld [vmem:[%s6575_s13 + $0x68] sm:$0xff] }
 0x48b   : > { %v992_v2 = vpop.f32.mrf.mxu1  ;;  %4468 = vmatpush3.bf16.msra.mxu0 %v1102_v60  ;;  %4471 = vmatprep.mubr.msk.bf16.mxu0 %vm5321_vm0, %v5320_v0  ;;  %v1362_v60 = vld [vmem:[%s6573_s11 + $0x20] sm:$0xff] }
 0x48c   : > { %4469 = vmatprep.subr.bf16.mxu0 %v5320_v0  ;;  %v1369_v63 = vpack.c.bf16 %v1363_v62, %v1362_v60  ;;  %v1361_v2 = vld [vmem:[%s6573_s11 + $0x18] sm:$0xff] }
 0x48d   : > { %v4450_v4 = vpop.f32.mrf.mxu1  ;;  %v1509_v62 = vld [vmem:[%s6575_s13 + $0x58] sm:$0xff] }
 0x48f   : > { %4470 = vmatpush3.bf16.msra.mxu0 %v1101_v3  ;;  %v1368_v3 = vpack.c.bf16 %v1361_v2, %v1360_v1  ;;  %v1506_v1 = vld [vmem:[%s6575_s13 + $0x40] sm:$0xff]  ;;  %v1507_v2 = vld [vmem:[%s6575_s13 + $0x48] sm:$0xff] }
 0x490   : > { %4481 = vmatprep.subr.bf16.mxu0 %v5320_v0 }
 0x492   : > { %4472 = vmatmul.mubr.msk.bf16.vlgmr.msra.gmra.mxu0 %vm832_vm1, %v1100_v23 }
 0x493   : > { %4483 = vmatprep.mubr.msk.bf16.mxu0 %vm5321_vm0, %v5320_v0 }
 0x54a   : > { %v1039_v9 = vpop.f32.mrf.mxu0 }
 0x54b   : > { %v5722_v10 = vadd.f32 %v1039_v9, %v5629_v7 }
 0x54c   : > { %v4457_v11 = vpop.f32.mrf.mxu0 }
 0x54d   : > { %v1050_v12 = vpack.c.bf16 %v5722_v10, %v5722_v10 }
 0x54e   : > { %v1042_v13 = vpop.f32.mrf.mxu0 }
 0x54f   : > { %4464 = vmatmul.mubr.msk.bf16.vlgmr.msra.gmra.mxu1 %vm832_vm1, %v1050_v12  ;;  %v1358_v12 = vld [vmem:[%s6573_s11] sm:$0xff]  ;;  %v1359_v13 = vld [vmem:[%s6573_s11 + $0x8] sm:$0xff] }
 0x550   : > { %v4458_v14 = vpop.f32.mrf.mxu0  ;;  %4477 = vmatprep.mubr.msk.bf16.mxu1 %vm5321_vm0, %v5320_v0 }
 0x551   : > { %v1367_v14 = vpack.c.bf16 %v1359_v13, %v1358_v12  ;;  %v1502_v12 = vld [vmem:[%s6575_s13 + $0x20] sm:$0xff] }
 0x552   : > { %v1140_v15 = vpop.f32.mrf.mxu0 }
 0x554   : > { %v4473_v16 = vpop.f32.mrf.mxu0 }
 0x556   : > { %v1143_v17 = vpop.f32.mrf.mxu0 }
 0x557   : > { %v1148_v18 = vpack.c.bf16 %v1143_v17, %v1140_v15  ;;  %v1419_v15 = vld [vmem:[%s6574_s12 + $0x18] sm:$0xff] }
 0x558   : > { %v4474_v19 = vpop.f32.mrf.mxu0 }
 0x559   : > { %v1153_v20 = vsel %vm832_vm1, %v1148_v18, 0 }
 0x55a   : > { %4476 = vmatpush3.bf16.xpose.msra.mxu1 %v1153_v20 }
 0x55b   : > { %4487 = vmatprep.subr.bf16.mxu1 %v5320_v0 }
 0x60f   : > { %v1090_v7 = vpop.f32.mrf.mxu1 }
 0x610   : > { %v1147_v21 = vpack.c.bf16 %v1090_v7, %v1090_v7 }
 0x611   : > { %v4465_v22 = vpop.f32.mrf.mxu1 }
 0x612   : > { %4478 = vmatmul.mubr.msk.bf16.vlgmr.msra.gmra.mxu1 %vm832_vm1, %v1147_v21  ;;  %v1416_v22 = vld [vmem:[%s6574_s12] sm:$0xff] }
 0x613   : > { %v1093_v23 = vpop.f32.mrf.mxu1  ;;  %4491 = vmatprep.mubr.msk.bf16.mxu1 %vm5321_vm0, %v5320_v0  ;;  %4488 = vmatpush3.bf16.msra.mxu1 %v1262_v38 }
 0x614   : > { %4489 = vmatprep.subr.bf16.mxu1 %v5320_v0  ;;  %v1417_v23 = vld [vmem:[%s6574_s12 + $0x8] sm:$0xff] }
 0x615   : > { %v4466_v24 = vpop.f32.mrf.mxu1 }
 0x616   : > { %v1421_v24 = vpack.c.bf16 %v1417_v23, %v1416_v22 }
 0x617   : > { %4490 = vmatpush3.bf16.msra.mxu1 %v1261_v46 }
 0x618   : > { %4503 = vmatprep.subr.bf16.mxu1 %v5320_v0 }
 0x6d2   : > { %v1189_v25 = vpop.f32.mrf.mxu1 }
 0x6d3   : > { %v1195_v26 = vmul.f32 0.17677669, %v1189_v25 }
 0x6d4   : > { %v4479_v27 = vpop.f32.mrf.mxu1 }
 0x6d5   : > { %v1197_v28 = vsel %vm1196_vm7, %v1195_v26, -inf }
 0x6d6   : > { %1198 = vmax.xlane.f32.xlu1 %v1197_v28  ;;  %v1192_v29 = vpop.f32.mrf.mxu1 }
 0x6d8   : > { %v4480_v30 = vpop.f32.mrf.mxu1 }
 0x75f   : > { %v1199_v31 = vpop.xlane.xlu1 %1198 }
 0x760   : > { %v1200_v32 = vsub.f32 %v1195_v26, %v1199_v31 }
 0x762   : > { %v1201_v33 = vmul.f32 1.442695, %v1200_v32 }
 0x764   : > { %4975 = vpow2.f32 %v1201_v33 }
 0x771   : > { %v4976_v34 = vpop.eup %4975 }
 0x772   : > { %v1203_v35 = vsel %vm1196_vm7, %v4976_v34, 0.0 }
 0x773   : > { %1204 = vadd.xlane.f32.xlu0 %v1203_v35 }
 0x789   : > { %1210 = vrot.lane.b32.xlu0 %v1148_v18, %s5322_s29 }
 0x7fc   : > { %v1205_v39 = vpop.xlane.xlu0 %1204 }
 0x7fd   : > { %4977 = vrcp.f32 %v1205_v39  ;;  %v1479_v39 = vld [vmem:[%s678_s4] sm:$0xff]  ;;  %s6606_s4 = scalar_lea.vmem [#allocation8], %s5593_s15 }
 0x800   : > { %v1211_v40 = vpop.permute.xlu0 %1210 }
 0x801   : > { %4482 = vmatpush3.bf16.msra.mxu0 %v1211_v40  ;;  %v1480_v40 = vadd.f32 1e-20, %v1479_v39 }
 0x802   : > { %4495 = vmatprep.subr.bf16.mxu0 %v5320_v0 }
 0x80a   : > { %v4978_v41 = vpop.eup %4977 }
 0x80b   : > { %v1207_v42 = vmul.f32 %v4978_v41, %v4976_v34 }
 0x80d   : > { %v1208_v43 = vpack.c.bf16 %v1207_v42, %v1207_v42 }
 0x80f   : > { %4484 = vmatmul.mubr.msk.bf16.vlgmr.msra.gmra.mxu0 %vm1196_vm7, %v1208_v43 }
 0x810   : > { %4499 = vmatprep.mubr.msk.bf16.mxu0 %vm5321_vm0, %v5320_v0  ;;  %4496 = vmatpush3.bf16.msra.mxu0 %v1313_v49 }
 0x811   : > { %4497 = vmatprep.subr.bf16.mxu0 %v5320_v0 }
 0x814   : > { %4498 = vmatpush3.bf16.msra.mxu0 %v1312_v57  ;;  %v1510_v57 = vld [vmem:[%s6575_s13 + $0x60] sm:$0xff] }
 0x815   : > { %4515 = vmatprep.subr.bf16.mxu0 %v5320_v0  ;;  %v1521_v60 = vpack.c.bf16 %v1511_v59, %v1510_v57  ;;  %v4143_v57 = vld [vmem:[%s6651_s28 + $0x40] sm:$0xff] }
 0x8cf   : > { %v1250_v50 = vpop.f32.mrf.mxu0 }
 0x8d0   : > { %v1260_v51 = vpack.c.bf16 %v1250_v50, %v1250_v50 }
 0x8d1   : > { %v4485_v52 = vpop.f32.mrf.mxu0 }
 0x8d2   : > { %4492 = vmatmul.mubr.msk.bf16.vlgmr.msra.gmra.mxu1 %vm832_vm1, %v1260_v51 }
 0x8d3   : > { %v1253_v53 = vpop.f32.mrf.mxu0  ;;  %4511 = vmatprep.mubr.msk.bf16.mxu1 %vm5321_vm0, %v5320_v0  ;;  %4504 = vmatpush3.bf16.msra.mxu1 %v1370_v61  ;;  %v1508_v61 = vld [vmem:[%s6575_s13 + $0x50] sm:$0xff] }
 0x8d4   : > { %4505 = vmatprep.subr.bf16.mxu1 %v5320_v0 }
 0x8d5   : > { %v4486_v54 = vpop.f32.mrf.mxu0 }
 0x8d7   : > { %4506 = vmatpush3.bf16.msra.mxu1 %v1369_v63  ;;  %v1520_v63 = vpack.c.bf16 %v1509_v62, %v1508_v61  ;;  %v4153_v61 = vld [vmem:[%s6651_s28 + $0x78] sm:$0xff] }
 0x8d8   : > { %4507 = vmatprep.subr.bf16.mxu1 %v5320_v0 }
 0x8db   : > { %4508 = vmatpush3.bf16.msra.mxu1 %v1368_v3  ;;  %v1519_v3 = vpack.c.bf16 %v1507_v2, %v1506_v1  ;;  %v4151_v1 = vld [vmem:[%s6651_s28 + $0x68] sm:$0xff] }
 0x8dc   : > { %4509 = vmatprep.subr.bf16.mxu1 %v5320_v0 }
 0x8df   : > { %4510 = vmatpush3.bf16.msra.mxu1 %v1367_v14  ;;  %v1503_v14 = vld [vmem:[%s6575_s13 + $0x28] sm:$0xff] }
 0x8e0   : > { %4543 = vmatprep.subr.bf16.mxu1 %v5320_v0 }
 0x992   : > { %v1300_v4 = vpop.f32.mrf.mxu1 }
 0x993   : > { %v1306_v5 = vadd.f32 %v1300_v4, %v5722_v10  ;;  %v1418_v10 = vld [vmem:[%s6574_s12 + $0x10] sm:$0xff] }
 0x994   : > { %v4493_v6 = vpop.f32.mrf.mxu1  ;;  %v1422_v16 = vpack.c.bf16 %v1419_v15, %v1418_v10  ;;  %v1517_v10 = vpack.c.bf16 %v1503_v14, %v1502_v12  ;;  %v1500_v15 = vld [vmem:[%s6575_s13 + $0x10] sm:$0xff]  ;;  %v4168_v12 = vld [vmem:[%s6653_s22 + $0x78] sm:$0xff]  ;;  %v4165_v14 = vld [vmem:[%s6653_s22 + $0x60] sm:$0xff] }
 0x995   : > { %v1311_v8 = vpack.c.bf16 %v1306_v5, %v1306_v5 }
 0x996   : > { %v1303_v9 = vpop.f32.mrf.mxu1 }
 0x997   : > { %4500 = vmatmul.mubr.msk.bf16.vlgmr.msra.gmra.mxu0 %vm832_vm1, %v1311_v8  ;;  %v1504_v9 = vld [vmem:[%s6575_s13 + $0x30] sm:$0xff] }
 0x998   : > { %v4494_v11 = vpop.f32.mrf.mxu1  ;;  %4519 = vmatprep.mubr.msk.bf16.mxu0 %vm5321_vm0, %v5320_v0  ;;  %4516 = vmatpush3.bf16.msra.mxu0 %v1422_v16  ;;  %v1501_v16 = vld [vmem:[%s6575_s13 + $0x18] sm:$0xff] }
 0x999   : > { %4517 = vmatprep.subr.bf16.mxu0 %v5320_v0  ;;  %v1505_v11 = vld [vmem:[%s6575_s13 + $0x38] sm:$0xff] }
 0x99a   : > { %v1518_v13 = vpack.c.bf16 %v1505_v11, %v1504_v9  ;;  %v4167_v11 = vld [vmem:[%s6653_s22 + $0x70] sm:$0xff] }
 0x99c   : > { %4518 = vmatpush3.bf16.msra.mxu0 %v1421_v24  ;;  %v1787_v24 = vld [vmem:[%s6652_s26 + $0x10] sm:$0xff]  ;;  %s6657_s26 = sld [smem:[#allocation25_spill]] }
 0x99d   : > { %4523 = vmatprep.subr.bf16.mxu0 %v5320_v0 }
 0x9a2   : > { %s768_s17 = scalar_lea.vmem %s6657_s26, %s4120_s16  ;;  %s3915_s16 = scalar_lea.sflag [#allocation4], %s5590_s14 }
 0xa57   : > { %v1351_v17 = vpop.f32.mrf.mxu0 }
 0xa58   : > { %v1357_v18 = vmax.f32 %v1351_v17, 0.0  ;;  %v1516_v17 = vpack.c.bf16 %v1501_v16, %v1500_v15 }
 0xa59   : > { %v4501_v19 = vpop.f32.mrf.mxu0 }
 0xa5a   : > { %v1366_v20 = vpack.c.bf16 %v1357_v18, %v1357_v18  ;;  %v1498_v18 = vld [vmem:[%s6575_s13] sm:$0xff]  ;;  %v1499_v19 = vld [vmem:[%s6575_s13 + $0x8] sm:$0xff] }
 0xa5b   : > { %v1354_v7 = vpop.f32.mrf.mxu0 }
 0xa5c   : > { %4512 = vmatmul.mubr.msk.bf16.vlgmr.msra.gmra.mxu1 %vm1371_vm8, %v1366_v20  ;;  %v1515_v20 = vpack.c.bf16 %v1499_v19, %v1498_v18  ;;  %v1565_v7 = vld [vmem:[%s6651_s28 + $0x10] sm:$0xff] }
 0xa5d   : > { %v4502_v21 = vpop.f32.mrf.mxu0  ;;  %4547 = vmatprep.mubr.msk.bf16.mxu1 %vm5321_vm0, %v5320_v0 }
 0xa5e   : > { %v1566_v21 = vld [vmem:[%s6651_s28 + $0x18] sm:$0xff] }
 0xa5f   : > { %v1569_v22 = vpack.c.bf16 %v1566_v21, %v1565_v7 }
 0xa61   : > { %4544 = vmatpush3.bf16.msra.mxu1 %v1569_v22 }
 0xa62   : > { %4545 = vmatprep.subr.bf16.mxu1 %v5320_v0 }
 0xb1c   : > { %v1409_v25 = vpop.f32.mrf.mxu1 }
 0xb1d   : > { %v1415_v26 = vadd.f32 %v1409_v25, %v1306_v5  ;;  %v1788_v25 = vld [vmem:[%s6653_s22 + $0x18] sm:$0xff] }
 0xb1e   : > { %v4513_v27 = vpop.f32.mrf.mxu1 }
 0xb1f   : > { %v1420_v28 = vpack.c.bf16 %v1415_v26, %v1415_v26 }
 0xb20   : > { %v1412_v29 = vpop.f32.mrf.mxu1 }
 0xb21   : > { %4520 = vmatmul.mubr.msk.bf16.vlgmr.msra.gmra.mxu0 %vm832_vm1, %v1420_v28  ;;  %v5897_v28 = vpack.c.bf16 %v1788_v25, %v1787_v24 }
 0xb22   : > { %v4514_v30 = vpop.f32.mrf.mxu1  ;;  %4539 = vmatprep.mubr.msk.bf16.mxu0 %vm5321_vm0, %v5320_v0  ;;  %4524 = vmatpush3.bf16.msra.mxu0 %v1522_v58  ;;  %v4144_v58 = vld [vmem:[%s6651_s28 + $0x48] sm:$0xff] }
 0xb23   : > { %4525 = vmatprep.subr.bf16.mxu0 %v5320_v0  ;;  %v1563_v30 = vld [vmem:[%s6651_s28] sm:$0xff]  ;;  %v1680_v59 = vpack.c.bf16 %v4144_v58, %v4143_v57 }
 0xb24   : > { %v4148_v58 = vld [vmem:[%s6654_s0 + $0x2] ss:$0 sm:$0xff] }
 0xb26   : > { %4526 = vmatpush3.bf16.msra.mxu0 %v1521_v60  ;;  %v4152_v60 = vld [vmem:[%s6651_s28 + $0x70] sm:$0xff] }
 0xb27   : > { %4527 = vmatprep.subr.bf16.mxu0 %v5320_v0  ;;  %v1736_v62 = vpack.c.bf16 %v4153_v61, %v4152_v60 }
 0xb2a   : > { %4528 = vmatpush3.bf16.msra.mxu0 %v1520_v63  ;;  %v4150_v63 = vld [vmem:[%s6651_s28 + $0x60] sm:$0xff] }
 0xb2b   : > { %4529 = vmatprep.subr.bf16.mxu0 %v5320_v0  ;;  %v1735_v2 = vpack.c.bf16 %v4151_v1, %v4150_v63 }
 0xb2e   : > { %4530 = vmatpush3.bf16.msra.mxu0 %v1519_v3  ;;  %v4159_v3 = vld [vmem:[%s6653_s22 + $0x30] sm:$0xff] }
 0xb2f   : > { %4531 = vmatprep.subr.bf16.mxu0 %v5320_v0 }
 0xb32   : > { %4532 = vmatpush3.bf16.msra.mxu0 %v1518_v13  ;;  %v6031_v13 = vpack.c.bf16 %v4168_v12, %v4167_v11 }
 0xb33   : > { %4533 = vmatprep.subr.bf16.mxu0 %v5320_v0 }
 0xb36   : > { %4534 = vmatpush3.bf16.msra.mxu0 %v1517_v10  ;;  %v4166_v10 = vld [vmem:[%s6653_s22 + $0x68] sm:$0xff] }
 0xb37   : > { %4535 = vmatprep.subr.bf16.mxu0 %v5320_v0  ;;  %v6042_v15 = vpack.c.bf16 %v4166_v10, %v4165_v14 }
 0xb3a   : > { %4536 = vmatpush3.bf16.msra.mxu0 %v1516_v17 }
 0xb3b   : > { %4537 = vmatprep.subr.bf16.mxu0 %v5320_v0 }
 0xb3e   : > { %4538 = vmatpush3.bf16.msra.mxu0 %v1515_v20 }
 0xb3f   : > { %4575 = vmatprep.subr.bf16.mxu0 %v5320_v0 }
 0xbe1   : > { %v1460_v31 = vpop.f32.mrf.mxu0 }
 0xbe2   : > { %1466 = vmax.xlane.f32.xlu1 %v1460_v31 }
 0xbe3   : > { %v4521_v32 = vpop.f32.mrf.mxu0 }
 0xbe5   : > { %v1463_v33 = vpop.f32.mrf.mxu0 }
 0xbe6   : > { %v1785_v33 = vld [vmem:[%s6653_s22] sm:$0xff] }
 0xbe7   : > { %v4522_v34 = vpop.f32.mrf.mxu0 }
 0xbe8   : > { %v1786_v34 = vld [vmem:[%s6653_s22 + $0x8] sm:$0xff] }
 0xc6b   : > { %v1467_v35 = vpop.xlane.xlu1 %1466 }
 0xc6c   : > { %v1468_v36 = vsub.f32 %v1460_v31, %v1467_v35  ;;  %v1564_v31 = vld [vmem:[%s6651_s28 + $0x8] sm:$0xff]  ;;  %v5915_v35 = vpack.c.bf16 %v1786_v34, %v1785_v33 }
 0xc6d   : > { %v1568_v32 = vpack.c.bf16 %v1564_v31, %v1563_v30 }
 0xc6e   : > { %v1469_v37 = vmul.f32 1.442695, %v1468_v36 }
 0xc6f   : > { %4546 = vmatpush3.bf16.msra.mxu1 %v1568_v32  ;;  %v4134_v32 = vld [vmem:[%s6654_s0] ss:$0 sm:$0xff] }
 0xc70   : > { %4979 = vpow2.f32 %v1469_v37  ;;  %4551 = vmatprep.subr.bf16.mxu1 %v5320_v0  ;;  %v4163_v37 = vld [vmem:[%s6653_s22 + $0x50] sm:$0xff] }
 0xc71   : > { %4981 = vlog2.f32 %v1480_v40  ;;  %v4161_v40 = vld [vmem:[%s6653_s22 + $0x40] sm:$0xff] }
 0xc7d   : > { %v4980_v38 = vpop.eup %4979 }
 0xc7e   : > { %1471 = vadd.xlane.f32.xlu0 %v4980_v38  ;;  %v4982_v41 = vpop.eup %4981 }
 0xc7f   : > { %v1482_v42 = vmul.f32 0.6931472, %v4982_v41  ;;  %v4162_v41 = vld [vmem:[%s6653_s22 + $0x48] sm:$0xff] }
 0xc81   : > { %v1483_v43 = vsub.f32 0.0, %v1482_v42  ;;  %v5941_v42 = vpack.c.bf16 %v4162_v41, %v4161_v40 }
 0xc83   : > { %v1484_v44 = vadd.f32 1e-20, %v1483_v43  ;;  %v4138_v43 = vld [vmem:[%s6651_s28 + $0x30] sm:$0xff] }
 0xc85   : > { %4983 = vlog2.f32 %v1484_v44  ;;  %v4139_v44 = vld [vmem:[%s6651_s28 + $0x38] sm:$0xff] }
 0xc92   : > { %v4984_v46 = vpop.eup %4983 }
 0xc93   : > { %v1486_v47 = vmul.f32 0.6931472, %v4984_v46  ;;  %v1626_v46 = vpack.c.bf16 %v4139_v44, %v4138_v43 }
 0xc95   : > { %v1487_v52 = vsub.f32 0.0, %v1486_v47 }
 0xd07   : > { %v1472_v45 = vpop.xlane.xlu0 %1471 }
 0xd08   : > { %4985 = vrcp.f32 %v1472_v45 }
 0xd09   : > { %4987 = vlog2.f32 %v1472_v45 }
 0xd15   : > { %v4986_v48 = vpop.eup %4985 }
 0xd16   : > { %v4988_v49 = vpop.eup %4987  ;;  %v1474_v50 = vmul.f32 %v4986_v48, %v4980_v38  ;;  %v4164_v38 = vld [vmem:[%s6653_s22 + $0x58] sm:$0xff]  ;;  %v4136_v48 = vld [vmem:[%s6651_s28 + $0x20] sm:$0xff] }
 0xd17   : > { %v1477_v51 = vmul.f32 0.6931472, %v4988_v49  ;;  %v5931_v39 = vpack.c.bf16 %v4164_v38, %v4163_v37  ;;  %v4137_v49 = vld [vmem:[%s6651_s28 + $0x28] sm:$0xff] }
 0xd18   : > { %1475 = vst [vmem:[%s6606_s4] sm:$0xff] %v1474_v50  ;;  %s4241_s4 = sshll.u32 %s5458_s3, 7 }
 0xd19   : > { %v1478_v53 = vsub.f32 %v1468_v36, %v1477_v51  ;;  %v5324_v36 = vmov 0   ;;  %s3931_s29 = scalar_lea.hbm %s6660_s24, %s4241_s4 }
 0xd1a   : > { %4969 = vset.pattern.permute.xlu1 %v5324_v36  ;;  %4970 = vset.pattern.permute.xlu0 %v5324_v36 }
 0xd1b   : > { %v1488_v54 = vadd.f32 %v1487_v52, %v1478_v53  ;;  %v1625_v52 = vpack.c.bf16 %v4137_v49, %v4136_v48  ;;  %v4145_v53 = vld [vmem:[%s6651_s28 + $0x50] sm:$0xff] }
 0xd1d   : > { %1489 = vmax.xlane.f32.xlu1 %v1488_v54 }
 0xda6   : > { %v1490_v4 = vpop.xlane.xlu1 %1489 }
 0xda7   : > { %v1491_v5 = vsub.f32 %v1488_v54, %v1490_v4  ;;  %v4146_v54 = vld [vmem:[%s6651_s28 + $0x58] sm:$0xff] }
 0xda8   : > { %v1681_v56 = vpack.c.bf16 %v4146_v54, %v4145_v53  ;;  %v4160_v4 = vld [vmem:[%s6653_s22 + $0x38] sm:$0xff]  ;;  %v4155_v54 = vld [vmem:[%s6654_s0 + $0x3] ss:$0 sm:$0xff] }
 0xda9   : > { %v1492_v6 = vmul.f32 1.442695, %v1491_v5  ;;  %v6008_v5 = vpack.c.bf16 %v4160_v4, %v4159_v3 }
 0xdab   : > { %4989 = vpow2.f32 %v1492_v6  ;;  %v4157_v6 = vld [vmem:[%s6653_s22 + $0x20] sm:$0xff] }
 0xdb8   : > { %v4990_v8 = vpop.eup %4989 }
 0xdb9   : > { %1494 = vadd.xlane.f32.xlu1 %v4990_v8 }
 0xe42   : > { %v1495_v23 = vpop.xlane.xlu1 %1494 }
 0xe43   : > { %4991 = vrcp.f32 %v1495_v23 }
 0xe50   : > { %v4992_v26 = vpop.eup %4991 }
 0xe51   : > { %v1497_v27 = vmul.f32 %v4992_v26, %v4990_v8  ;;  %v4158_v8 = vld [vmem:[%s6653_s22 + $0x28] sm:$0xff] }
 0xe52   : > { %v6019_v9 = vpack.c.bf16 %v4158_v8, %v4157_v6 }
 0xe53   : > { %v1514_v29 = vpack.c.bf16 %v1497_v27, %v1497_v27 }
 0xe55   : > { %4540 = vmatmul.mubr.bf16.vlgmr.msra.gmra.mxu0 %v1514_v29 }
 0xe56   : > { %4576 = vmatpush3.bf16.msra.mxu0 %v5897_v28  ;;  %4579 = vmatprep.mubr.msk.bf16.mxu0 %vm5321_vm0, %v5320_v0 }
 0xe57   : > { %4577 = vmatprep.subr.bf16.mxu0 %v5320_v0 }
 0xe5a   : > { %4578 = vmatpush3.bf16.msra.mxu0 %v5915_v35 }
 0xe5b   : > { %4591 = vmatprep.subr.bf16.mxu0 %v5320_v0 }
 0xe5d   : > { %4580 = vmatmul.mubr.bf16.vlgmr.msra.gmra.mxu0 %v5324_v36 }
 0xe5e   : > { %4595 = vmatprep.mubr.msk.bf16.mxu0 %vm5321_vm0, %v5320_v0  ;;  %4592 = vmatpush3.bf16.msra.mxu0 %v5931_v39 }
 0xe5f   : > { %4593 = vmatprep.subr.bf16.mxu0 %v5320_v0 }
 0xe62   : > { %4594 = vmatpush3.bf16.msra.mxu0 %v5941_v42 }
 0xe63   : > { %4607 = vmatprep.subr.bf16.mxu0 %v5320_v0 }
 0xe65   : > { %4596 = vmatmul.mubr.bf16.vlgmr.msra.gmra.mxu0 %v5324_v36 }
 0xe66   : > { %4608 = vmatpush3.bf16.msra.mxu0 %v5897_v28  ;;  %4611 = vmatprep.mubr.msk.bf16.mxu0 %vm5321_vm0, %v5320_v0 }
 0xe67   : > { %4609 = vmatprep.subr.bf16.mxu0 %v5320_v0 }
 0xe6a   : > { %4610 = vmatpush3.bf16.msra.mxu0 %v5915_v35 }
 0xe6b   : > { %4623 = vmatprep.subr.bf16.mxu0 %v5320_v0 }
 0xf15   : > { %v1557_v45 = vpop.f32.mrf.mxu0 }
 0xf16   : > { %v1567_v47 = vpack.c.bf16 %v1557_v45, %v1557_v45  ;;  %v4141_v45 = vld [vmem:[%s6654_s0 + $0x1] ss:$0 sm:$0xff]  ;;  %s5213_s0 = scalar_lea.vmem %s3934_s20, 128 }
 0xf17   : > { %v4541_v50 = vpop.f32.mrf.mxu0  ;;  %p5214_p10 = scmp.ne.s32.totalorder %s3934_s20, %s5213_s0 }
 0xf18   : > { %4548 = vmatmul.mubr.msk.bf16.vlgmr.msra.gmra.mxu1 %vm832_vm1, %v1567_v47 }
 0xf19   : > { %v1560_v51 = vpop.f32.mrf.mxu0  ;;  %4552 = vmatpush3.bf16.msra.mxu1 %v1626_v46  ;;  %4555 = vmatprep.mubr.msk.bf16.mxu1 %vm5321_vm0, %v5320_v0  ;;  %p5215_p2 = pnand %p5214_p10, %p6662_p1 }
 0xf1a   : > { %4553 = vmatprep.subr.bf16.mxu1 %v5320_v0 }
 0xf1b   : > { %v4542_v55 = vpop.f32.mrf.mxu0  ;;  %p5216_p0 = pneg %p5215_p2 }
 0xf1d   : > { %4554 = vmatpush3.bf16.msra.mxu1 %v1625_v52  ;;  %v1849_v16 = vpop.f32.mrf.mxu0 }
 0xf1e   : > { %4559 = vmatprep.subr.bf16.mxu1 %v5320_v0 }
 0xf1f   : > { %v4581_v17 = vpop.f32.mrf.mxu0 }
 0xf20   : > { %4556 = vmatmul.mubr.msk.bf16.vlgmr.msra.gmra.mxu1 %vm832_vm1, %v1567_v47 }
 0xf21   : > { %4560 = vmatpush3.bf16.msra.mxu1 %v1681_v56  ;;  %4563 = vmatprep.mubr.msk.bf16.mxu1 %vm5321_vm0, %v5320_v0  ;;  %v1852_v18 = vpop.f32.mrf.mxu0 }
 0xf22   : > { %4561 = vmatprep.subr.bf16.mxu1 %v5320_v0 }
 0xf23   : > { %v4582_v19 = vpop.f32.mrf.mxu0 }
 0xf25   : > { %4562 = vmatpush3.bf16.msra.mxu1 %v1680_v59  ;;  %v1943_v20 = vpop.f32.mrf.mxu0 }
 0xf26   : > { %4567 = vmatprep.subr.bf16.mxu1 %v5320_v0 }
 0xf27   : > { %v4597_v7 = vpop.f32.mrf.mxu0 }
 0xf28   : > { %4564 = vmatmul.mubr.msk.bf16.vlgmr.msra.gmra.mxu1 %vm832_vm1, %v1567_v47 }
 0xf29   : > { %4568 = vmatpush3.bf16.msra.mxu1 %v1736_v62  ;;  %4571 = vmatprep.mubr.msk.bf16.mxu1 %vm5321_vm0, %v5320_v0  ;;  %v1946_v21 = vpop.f32.mrf.mxu0 }
 0xf2a   : > { %4569 = vmatprep.subr.bf16.mxu1 %v5320_v0 }
 0xf2b   : > { %v4598_v22 = vpop.f32.mrf.mxu0 }
 0xf2d   : > { %4570 = vmatpush3.bf16.msra.mxu1 %v1735_v2 }
 0xf2e   : > { %4583 = vmatprep.subr.bf16.mxu1 %v5320_v0 }
 0xf30   : > { %4572 = vmatmul.mubr.msk.bf16.vlgmr.msra.gmra.mxu1 %vm832_vm1, %v1567_v47 }
 0xf31   : > { %4584 = vmatpush3.bf16.msra.mxu1 %v6008_v5  ;;  %4587 = vmatprep.mubr.msk.bf16.mxu1 %vm5321_vm0, %v5320_v0 }
 0xf32   : > { %4585 = vmatprep.subr.bf16.mxu1 %v5320_v0 }
 0xf35   : > { %4586 = vmatpush3.bf16.msra.mxu1 %v6019_v9 }
 0xf36   : > { %4599 = vmatprep.subr.bf16.mxu1 %v5320_v0 }
 0xf38   : > { %4588 = vmatmul.mubr.bf16.vlgmr.msra.gmra.mxu1 %v5324_v36 }
 0xf39   : > { %4600 = vmatpush3.bf16.msra.mxu1 %v6031_v13  ;;  %4603 = vmatprep.mubr.msk.bf16.mxu1 %vm5321_vm0, %v5320_v0 }
 0xf3a   : > { %4601 = vmatprep.subr.bf16.mxu1 %v5320_v0 }
 0xf3d   : > { %4602 = vmatpush3.bf16.msra.mxu1 %v6042_v15 }
 0xf3e   : > { %4615 = vmatprep.subr.bf16.mxu1 %v5320_v0 }
 0xf40   : > { %4604 = vmatmul.mubr.bf16.vlgmr.msra.gmra.mxu1 %v5324_v36 }
 0xf41   : > { %4616 = vmatpush3.bf16.msra.mxu1 %v6008_v5  ;;  %4619 = vmatprep.mubr.msk.bf16.mxu1 %vm5321_vm0, %v5320_v0 }
 0xf42   : > { %4617 = vmatprep.subr.bf16.mxu1 %v5320_v0 }
 0xf45   : > { %4618 = vmatpush3.bf16.msra.mxu1 %v6019_v9 }
 0xf46   : > { %4631 = vmatprep.subr.bf16.mxu1 %v5320_v0 }
 0xfd8   : > { %v1614_v23 = vpop.f32.mrf.mxu1 }
 0xfd9   : > { %v6059_v36 = vadd.f32 %v4134_v32, %v1614_v23 }
 0xfda   : > { %v4549_v24 = vpop.f32.mrf.mxu1 }
 0xfdb   : > { %v1855_v40 = vadd.f32 %v1849_v16, %v6059_v36 }
 0xfdc   : > { %v1617_v25 = vpop.f32.mrf.mxu1 }
 0xfdd   : > { %v4169_v44 = vmul.f32 -1.442695, %v1855_v40 }
 0xfde   : > { %v4550_v26 = vpop.f32.mrf.mxu1 }
 0xfdf   : > { %4993 = vpow2.f32 %v4169_v44 }
 0xfe0   : > { %v1669_v27 = vpop.f32.mrf.mxu1 }
 0xfe1   : > { %v6065_v48 = vadd.f32 %v4141_v45, %v1669_v27 }
 0xfe2   : > { %v4557_v29 = vpop.f32.mrf.mxu1 }
 0xfe4   : > { %v1672_v30 = vpop.f32.mrf.mxu1 }
 0xfe6   : > { %v4558_v31 = vpop.f32.mrf.mxu1 }
 0xfe8   : > { %v1724_v33 = vpop.f32.mrf.mxu1 }
 0xfe9   : > { %v6077_v62 = vadd.f32 %v4148_v58, %v1724_v33 }
 0xfea   : > { %v4565_v34 = vpop.f32.mrf.mxu1 }
 0xfeb   : > { %v1949_v4 = vadd.f32 %v1943_v20, %v6077_v62 }
 0xfec   : > { %v1727_v37 = vpop.f32.mrf.mxu1  ;;  %v4994_v61 = vpop.eup %4993 }
 0xfed   : > { %v1859_v3 = vadd.f32 1.0, %v4994_v61 }
 0xfee   : > { %v4566_v38 = vpop.f32.mrf.mxu1 }
 0xff0   : > { %v1779_v41 = vpop.f32.mrf.mxu1 }
 0xff1   : > { %v6071_v56 = vadd.f32 %v4155_v54, %v1779_v41 }
 0xff2   : > { %v4573_v43 = vpop.f32.mrf.mxu1 }
 0xff4   : > { %v1782_v46 = vpop.f32.mrf.mxu1 }
 0xff6   : > { %v4574_v47 = vpop.f32.mrf.mxu1 }
 0xff8   : > { %v1896_v49 = vpop.f32.mrf.mxu1 }
 0xff9   : > { %v1902_v50 = vadd.f32 %v1896_v49, %v6065_v48 }
 0xffa   : > { %v4589_v51 = vpop.f32.mrf.mxu1 }
 0xffb   : > { %v4170_v52 = vmul.f32 -1.442695, %v1902_v50 }
 0xffc   : > { %v1899_v53 = vpop.f32.mrf.mxu1 }
 0xffd   : > { %4995 = vpow2.f32 %v4170_v52 }
 0xffe   : > { %v4590_v55 = vpop.f32.mrf.mxu1 }
0x1000   : > { %v1985_v57 = vpop.f32.mrf.mxu1 }
0x1001   : > { %v1991_v59 = vadd.f32 %v1985_v57, %v6071_v56 }
0x1002   : > { %v4605_v60 = vpop.f32.mrf.mxu1 }
0x1003   : > { %v4171_v1 = vmul.f32 -1.442695, %v1991_v59 }
0x1004   : > { %v1988_v63 = vpop.f32.mrf.mxu1 }
0x1005   : > { %4997 = vpow2.f32 %v4171_v1 }
0x1006   : > { %v4606_v2 = vpop.f32.mrf.mxu1  ;;  %4999 = vrcp.f32 %v1859_v3 }
0x1007   : > { %5001 = vtanh.f32 %v1949_v4 }
0x100a   : > { %v4996_v6 = vpop.eup %4995 }
0x100b   : > { %v1906_v8 = vadd.f32 1.0, %v4996_v6 }
0x100d   : > { %5003 = vrcp.f32 %v1906_v8 }
0x1012   : > { %v4998_v11 = vpop.eup %4997 }
0x1013   : > { %v5000_v12 = vpop.eup %4999  ;;  %v1995_v16 = vadd.f32 1.0, %v4998_v11 }
0x1014   : > { %v5002_v14 = vpop.eup %5001 }
0x1015   : > { %v1999_v18 = vmul.f32 %v5002_v14, %v5000_v12  ;;  %5005 = vrcp.f32 %v1995_v16 }
0x101a   : > { %v5004_v10 = vpop.eup %5003 }
0x101b   : > { %v1998_v17 = vmul.f32 0.0, %v5004_v10 }
0x101d   : > { %v6080_v19 = vadd.f32 %v1999_v18, %v1998_v17 }
0x101f   : > { %5007 = vtanh.f32 %v6080_v19  ;;  %v2203_v2 = vrot.slane %v6080_v19, 7 }
0x1022   : > { %v5006_v7 = vpop.eup %5005 }
0x102c   : > { %v5008_v20 = vpop.eup %5007 }
0x102d   : > { %v6083_v21 = vmul.f32 %v5008_v20, %v5006_v7 }
0x102f   : > { %v2003_v22 = vpack.c.bf16 %v6083_v21, %v6083_v21 }
0x1031   : > { %4612 = vmatmul.mubr.msk.bf16.vlgmr.msra.gmra.mxu0 %vm832_vm1, %v2003_v22  ;;  %4620 = vmatmul.mubr.msk.bf16.vlgmr.msra.gmra.mxu1 %vm832_vm1, %v2003_v22 }
0x1032   : > { %4624 = vmatpush3.bf16.msra.mxu0 %v5931_v39  ;;  %4632 = vmatpush3.bf16.msra.mxu1 %v6031_v13 }
0x1033   : > { %4625 = vmatprep.subr.bf16.mxu0 %v5320_v0  ;;  %4633 = vmatprep.subr.bf16.mxu1 %v5320_v0 }
0x1034   : > { %4627 = vmatprep.mubr.msk.bf16.mxu0 %vm5321_vm0, %v5320_v0  ;;  %4635 = vmatprep.mubr.msk.bf16.mxu1 %vm5321_vm0, %v5320_v0 }
0x1036   : > { %4626 = vmatpush3.bf16.msra.mxu0 %v5941_v42  ;;  %4634 = vmatpush3.bf16.msra.mxu1 %v6042_v15 }
0x1037   : > { %4639 = vmatprep.subr.bf16.mxu0 %v5320_v0  ;;  %4647 = vmatprep.subr.bf16.mxu1 %v5320_v0 }
0x1039   : > { %4628 = vmatmul.mubr.msk.bf16.vlgmr.msra.gmra.mxu0 %vm832_vm1, %v2003_v22  ;;  %4636 = vmatmul.mubr.msk.bf16.vlgmr.msra.gmra.mxu1 %vm832_vm1, %v2003_v22 }
0x103a   : > { %4640 = vmatpush3.bf16.msra.mxu0 %v5897_v28  ;;  %4648 = vmatpush3.bf16.msra.mxu1 %v6008_v5 }
0x103b   : > { %4641 = vmatprep.subr.bf16.mxu0 %v5320_v0  ;;  %4649 = vmatprep.subr.bf16.mxu1 %v5320_v0 }
0x103c   : > { %4643 = vmatprep.mubr.msk.bf16.mxu0 %vm5321_vm0, %v5320_v0  ;;  %4651 = vmatprep.mubr.msk.bf16.mxu1 %vm5321_vm0, %v5320_v0 }
0x103e   : > { %4642 = vmatpush3.bf16.msra.mxu0 %v5915_v35  ;;  %4650 = vmatpush3.bf16.msra.mxu1 %v6019_v9 }
0x103f   : > { %4655 = vmatprep.subr.bf16.mxu0 %v5320_v0  ;;  %4663 = vmatprep.subr.bf16.mxu1 %v5320_v0 }
0x10f1   : > { %v2041_v23 = vpop.f32.mrf.mxu0  ;;  %v2091_v24 = vpop.f32.mrf.mxu1 }
0x10f2   : > { %v2048_v25 = vrot.slane %v2041_v23, 7  ;;  %v2098_v26 = vrot.slane %v2091_v24, 7 }
0x10f3   : > { %v4613_v27 = vpop.f32.mrf.mxu0  ;;  %v4621_v29 = vpop.f32.mrf.mxu1 }
0x10f4   : > { %v2050_v30 = vadd.f32 %v2048_v25, %v6059_v36  ;;  %v2100_v31 = vadd.f32 %v2098_v26, %v6065_v48 }
0x10f5   : > { %v2044_v32 = vpop.f32.mrf.mxu0  ;;  %v2094_v33 = vpop.f32.mrf.mxu1 }
0x10f6   : > { %v4173_v34 = vmul.f32 -1.442695, %v2050_v30  ;;  %v4175_v37 = vmul.f32 -1.442695, %v2100_v31 }
0x10f7   : > { %v4614_v38 = vpop.f32.mrf.mxu0  ;;  %v4622_v40 = vpop.f32.mrf.mxu1 }
0x10f8   : > { %5009 = vpow2.f32 %v4173_v34 }
0x10f9   : > { %5011 = vpow2.f32 %v4175_v37  ;;  %v2141_v41 = vpop.f32.mrf.mxu0  ;;  %v2186_v43 = vpop.f32.mrf.mxu1 }
0x10fa   : > { %v2193_v44 = vrot.slane %v2186_v43, 7  ;;  %v2148_v51 = vrot.slane %v2141_v41, 7 }
0x10fb   : > { %v4629_v45 = vpop.f32.mrf.mxu0  ;;  %v4637_v46 = vpop.f32.mrf.mxu1 }
0x10fc   : > { %v2195_v50 = vadd.f32 %v2193_v44, %v6071_v56  ;;  %v2150_v55 = vadd.f32 %v2148_v51, %v6077_v62 }
0x10fd   : > { %v2144_v47 = vpop.f32.mrf.mxu0  ;;  %v2189_v49 = vpop.f32.mrf.mxu1 }
0x10fe   : > { %v4178_v54 = vmul.f32 -1.442695, %v2195_v50 }
0x10ff   : > { %v4630_v52 = vpop.f32.mrf.mxu0  ;;  %v4638_v53 = vpop.f32.mrf.mxu1 }
0x1100   : > { %5013 = vpow2.f32 %v4178_v54 }
0x1101   : > { %5015 = vtanh.f32 %v2150_v55 }
0x1105   : > { %v5010_v57 = vpop.eup %5009 }
0x1106   : > { %v5012_v58 = vpop.eup %5011  ;;  %v2054_v59 = vadd.f32 1.0, %v5010_v57 }
0x1107   : > { %v2104_v60 = vadd.f32 1.0, %v5012_v58 }
0x1108   : > { %5017 = vrcp.f32 %v2054_v59 }
0x1109   : > { %5019 = vrcp.f32 %v2104_v60 }
0x110d   : > { %v5014_v61 = vpop.eup %5013 }
0x110e   : > { %v5016_v63 = vpop.eup %5015  ;;  %v2199_v6 = vadd.f32 1.0, %v5014_v61 }
0x1110   : > { %5021 = vrcp.f32 %v2199_v6 }
0x1115   : > { %v5018_v1 = vpop.eup %5017 }
0x1116   : > { %v5020_v3 = vpop.eup %5019  ;;  %v2206_v4 = vmul.f32 %v5018_v1, %v5016_v63 }
0x1117   : > { %v2205_v8 = vmul.f32 %v5020_v3, %v2203_v2 }
0x1119   : > { %v6120_v11 = vadd.f32 %v2206_v4, %v2205_v8 }
0x111b   : > { %5023 = vtanh.f32 %v6120_v11  ;;  %v2413_v59 = vrot.slane %v6120_v11, 7 }
0x111d   : > { %v5022_v12 = vpop.eup %5021 }
0x1128   : > { %v5024_v14 = vpop.eup %5023 }
0x1129   : > { %v6123_v10 = vmul.f32 %v5024_v14, %v5022_v12 }
0x112b   : > { %v2210_v16 = vpack.c.bf16 %v6123_v10, %v6123_v10  ;;  %v3470_v8 = vsel %vm3469_vm9, %v6083_v21, %v6123_v10 }
0x112d   : > { %v2212_v17 = vshrl.u32 %v2210_v16, 16 }
0x112f   : > { %4644 = vmatmul.mubr.msk.bf16.vlgmr.msra.gmra.mxu0 %vm832_vm1, %v2212_v17  ;;  %4652 = vmatmul.mubr.msk.bf16.vlgmr.msra.gmra.mxu1 %vm832_vm1, %v2212_v17 }
0x1130   : > { %4656 = vmatpush3.bf16.msra.mxu0 %v5931_v39  ;;  %4664 = vmatpush3.bf16.msra.mxu1 %v6031_v13 }
0x1131   : > { %4657 = vmatprep.subr.bf16.mxu0 %v5320_v0  ;;  %4665 = vmatprep.subr.bf16.mxu1 %v5320_v0 }
0x1132   : > { %4659 = vmatprep.mubr.msk.bf16.mxu0 %vm5321_vm0, %v5320_v0  ;;  %4667 = vmatprep.mubr.msk.bf16.mxu1 %vm5321_vm0, %v5320_v0 }
0x1134   : > { %4658 = vmatpush3.bf16.msra.mxu0 %v5941_v42  ;;  %4666 = vmatpush3.bf16.msra.mxu1 %v6042_v15 }
0x1135   : > { %4671 = vmatprep.subr.bf16.mxu0 %v5320_v0  ;;  %4679 = vmatprep.subr.bf16.mxu1 %v5320_v0 }
0x1137   : > { %4660 = vmatmul.mubr.msk.bf16.vlgmr.msra.gmra.mxu0 %vm832_vm1, %v2212_v17  ;;  %4668 = vmatmul.mubr.msk.bf16.vlgmr.msra.gmra.mxu1 %vm832_vm1, %v2212_v17 }
0x1138   : > { %4672 = vmatpush3.bf16.msra.mxu0 %v5897_v28  ;;  %4680 = vmatpush3.bf16.msra.mxu1 %v6008_v5 }
0x1139   : > { %4673 = vmatprep.subr.bf16.mxu0 %v5320_v0  ;;  %4681 = vmatprep.subr.bf16.mxu1 %v5320_v0 }
0x113a   : > { %4675 = vmatprep.mubr.msk.bf16.mxu0 %vm5321_vm0, %v5320_v0  ;;  %4683 = vmatprep.mubr.msk.bf16.mxu1 %vm5321_vm0, %v5320_v0 }
0x113c   : > { %4674 = vmatpush3.bf16.msra.mxu0 %v5915_v35  ;;  %4682 = vmatpush3.bf16.msra.mxu1 %v6019_v9 }
0x113d   : > { %4687 = vmatprep.subr.bf16.mxu0 %v5320_v0  ;;  %4695 = vmatprep.subr.bf16.mxu1 %v5320_v0 }
0x11ef   : > { %v2251_v18 = vpop.f32.mrf.mxu0  ;;  %v2301_v19 = vpop.f32.mrf.mxu1 }
0x11f0   : > { %v2258_v7 = vrot.slane %v2251_v18, 6  ;;  %v2308_v20 = vrot.slane %v2301_v19, 6 }
0x11f1   : > { %v4645_v22 = vpop.f32.mrf.mxu0  ;;  %v4653_v23 = vpop.f32.mrf.mxu1 }
0x11f2   : > { %v2260_v24 = vadd.f32 %v2258_v7, %v6059_v36  ;;  %v2310_v25 = vadd.f32 %v2308_v20, %v6065_v48 }
0x11f3   : > { %v2254_v26 = vpop.f32.mrf.mxu0  ;;  %v2304_v27 = vpop.f32.mrf.mxu1 }
0x11f4   : > { %v4180_v29 = vmul.f32 -1.442695, %v2260_v24  ;;  %v4182_v30 = vmul.f32 -1.442695, %v2310_v25 }
0x11f5   : > { %v4646_v31 = vpop.f32.mrf.mxu0  ;;  %v4654_v32 = vpop.f32.mrf.mxu1 }
0x11f6   : > { %5025 = vpow2.f32 %v4180_v29 }
0x11f7   : > { %5027 = vpow2.f32 %v4182_v30  ;;  %v2351_v33 = vpop.f32.mrf.mxu0  ;;  %v2396_v34 = vpop.f32.mrf.mxu1 }
0x11f8   : > { %v2403_v37 = vrot.slane %v2396_v34, 6  ;;  %v2358_v45 = vrot.slane %v2351_v33, 6 }
0x11f9   : > { %v4661_v38 = vpop.f32.mrf.mxu0  ;;  %v4669_v40 = vpop.f32.mrf.mxu1 }
0x11fa   : > { %v2405_v44 = vadd.f32 %v2403_v37, %v6071_v56  ;;  %v2360_v50 = vadd.f32 %v2358_v45, %v6077_v62 }
0x11fb   : > { %v2354_v41 = vpop.f32.mrf.mxu0  ;;  %v2399_v43 = vpop.f32.mrf.mxu1 }
0x11fc   : > { %v4185_v49 = vmul.f32 -1.442695, %v2405_v44 }
0x11fd   : > { %v4662_v46 = vpop.f32.mrf.mxu0  ;;  %v4670_v47 = vpop.f32.mrf.mxu1 }
0x11fe   : > { %5029 = vpow2.f32 %v4185_v49 }
0x11ff   : > { %5031 = vtanh.f32 %v2360_v50 }
0x1203   : > { %v5026_v51 = vpop.eup %5025 }
0x1204   : > { %v5028_v52 = vpop.eup %5027  ;;  %v2264_v53 = vadd.f32 1.0, %v5026_v51 }
0x1205   : > { %v2314_v54 = vadd.f32 1.0, %v5028_v52 }
0x1206   : > { %5033 = vrcp.f32 %v2264_v53 }
0x1207   : > { %5035 = vrcp.f32 %v2314_v54 }
0x120b   : > { %v5030_v55 = vpop.eup %5029 }
0x120c   : > { %v5032_v57 = vpop.eup %5031  ;;  %v2409_v63 = vadd.f32 1.0, %v5030_v55 }
0x120e   : > { %5037 = vrcp.f32 %v2409_v63 }
0x1213   : > { %v5034_v58 = vpop.eup %5033 }
0x1214   : > { %v5036_v60 = vpop.eup %5035  ;;  %v2416_v61 = vmul.f32 %v5034_v58, %v5032_v57 }
0x1215   : > { %v2415_v1 = vmul.f32 %v5036_v60, %v2413_v59 }
0x1217   : > { %v6160_v2 = vadd.f32 %v2416_v61, %v2415_v1 }
0x1219   : > { %5039 = vtanh.f32 %v6160_v2  ;;  %v2622_v54 = vrot.slane %v6160_v2, 7 }
0x121b   : > { %v5038_v3 = vpop.eup %5037 }
0x1226   : > { %v5040_v4 = vpop.eup %5039 }
0x1227   : > { %v2419_v6 = vmul.f32 %v5040_v4, %v5038_v3 }
0x1229   : > { %v2420_v12 = vpack.c.bf16 %v2419_v6, %v2419_v6  ;;  %v6167_v11 = vsel %vm780_vm2, %v3470_v8, %v2419_v6 }
0x122b   : > { %v2422_v14 = vrot.slane %v2420_v12, 1 }
0x122d   : > { %4676 = vmatmul.mubr.msk.bf16.vlgmr.msra.gmra.mxu0 %vm832_vm1, %v2422_v14  ;;  %4684 = vmatmul.mubr.msk.bf16.vlgmr.msra.gmra.mxu1 %vm832_vm1, %v2422_v14 }
0x122e   : > { %4688 = vmatpush3.bf16.msra.mxu0 %v5931_v39  ;;  %4696 = vmatpush3.bf16.msra.mxu1 %v6031_v13 }
0x122f   : > { %4689 = vmatprep.subr.bf16.mxu0 %v5320_v0  ;;  %4697 = vmatprep.subr.bf16.mxu1 %v5320_v0 }
0x1230   : > { %4691 = vmatprep.mubr.msk.bf16.mxu0 %vm5321_vm0, %v5320_v0  ;;  %4699 = vmatprep.mubr.msk.bf16.mxu1 %vm5321_vm0, %v5320_v0 }
0x1232   : > { %4690 = vmatpush3.bf16.msra.mxu0 %v5941_v42  ;;  %4698 = vmatpush3.bf16.msra.mxu1 %v6042_v15 }
0x1233   : > { %4703 = vmatprep.subr.bf16.mxu0 %v5320_v0  ;;  %4711 = vmatprep.subr.bf16.mxu1 %v5320_v0 }
0x1235   : > { %4692 = vmatmul.mubr.msk.bf16.vlgmr.msra.gmra.mxu0 %vm832_vm1, %v2422_v14  ;;  %4700 = vmatmul.mubr.msk.bf16.vlgmr.msra.gmra.mxu1 %vm832_vm1, %v2422_v14 }
0x1236   : > { %4704 = vmatpush3.bf16.msra.mxu0 %v5897_v28  ;;  %4712 = vmatpush3.bf16.msra.mxu1 %v6008_v5 }
0x1237   : > { %4705 = vmatprep.subr.bf16.mxu0 %v5320_v0  ;;  %4713 = vmatprep.subr.bf16.mxu1 %v5320_v0 }
0x1238   : > { %4707 = vmatprep.mubr.msk.bf16.mxu0 %vm5321_vm0, %v5320_v0  ;;  %4715 = vmatprep.mubr.msk.bf16.mxu1 %vm5321_vm0, %v5320_v0 }
0x123a   : > { %4706 = vmatpush3.bf16.msra.mxu0 %v5915_v35  ;;  %4714 = vmatpush3.bf16.msra.mxu1 %v6019_v9 }
0x123b   : > { %4719 = vmatprep.subr.bf16.mxu0 %v5320_v0  ;;  %4727 = vmatprep.subr.bf16.mxu1 %v5320_v0 }
0x12ed   : > { %v2460_v21 = vpop.f32.mrf.mxu0  ;;  %v2510_v10 = vpop.f32.mrf.mxu1 }
0x12ee   : > { %v2467_v16 = vrot.slane %v2460_v21, 5  ;;  %v2517_v17 = vrot.slane %v2510_v10, 5 }
0x12ef   : > { %v4677_v18 = vpop.f32.mrf.mxu0  ;;  %v4685_v19 = vpop.f32.mrf.mxu1 }
0x12f0   : > { %v2469_v7 = vadd.f32 %v2467_v16, %v6059_v36  ;;  %v2519_v20 = vadd.f32 %v2517_v17, %v6065_v48 }
0x12f1   : > { %v2463_v22 = vpop.f32.mrf.mxu0  ;;  %v2513_v23 = vpop.f32.mrf.mxu1 }
0x12f2   : > { %v4187_v24 = vmul.f32 -1.442695, %v2469_v7  ;;  %v4189_v25 = vmul.f32 -1.442695, %v2519_v20 }
0x12f3   : > { %v4678_v26 = vpop.f32.mrf.mxu0  ;;  %v4686_v27 = vpop.f32.mrf.mxu1 }
0x12f4   : > { %5041 = vpow2.f32 %v4187_v24 }
0x12f5   : > { %5043 = vpow2.f32 %v4189_v25  ;;  %v2560_v29 = vpop.f32.mrf.mxu0  ;;  %v2605_v30 = vpop.f32.mrf.mxu1 }
0x12f6   : > { %v2612_v31 = vrot.slane %v2605_v30, 5  ;;  %v2567_v40 = vrot.slane %v2560_v29, 5 }
0x12f7   : > { %v4693_v32 = vpop.f32.mrf.mxu0  ;;  %v4701_v33 = vpop.f32.mrf.mxu1 }
0x12f8   : > { %v2614_v38 = vadd.f32 %v2612_v31, %v6071_v56  ;;  %v2569_v45 = vadd.f32 %v2567_v40, %v6077_v62 }
0x12f9   : > { %v2563_v34 = vpop.f32.mrf.mxu0  ;;  %v2608_v37 = vpop.f32.mrf.mxu1 }
0x12fa   : > { %v4192_v44 = vmul.f32 -1.442695, %v2614_v38 }
0x12fb   : > { %v4694_v41 = vpop.f32.mrf.mxu0  ;;  %v4702_v43 = vpop.f32.mrf.mxu1 }
0x12fc   : > { %5045 = vpow2.f32 %v4192_v44 }
0x12fd   : > { %5047 = vtanh.f32 %v2569_v45 }
0x1301   : > { %v5042_v46 = vpop.eup %5041 }
0x1302   : > { %v5044_v47 = vpop.eup %5043  ;;  %v2473_v49 = vadd.f32 1.0, %v5042_v46 }
0x1303   : > { %v2523_v50 = vadd.f32 1.0, %v5044_v47 }
0x1304   : > { %5049 = vrcp.f32 %v2473_v49 }
0x1305   : > { %5051 = vrcp.f32 %v2523_v50 }
0x1309   : > { %v5046_v51 = vpop.eup %5045 }
0x130a   : > { %v5048_v52 = vpop.eup %5047  ;;  %v2618_v58 = vadd.f32 1.0, %v5046_v51 }
0x130c   : > { %5053 = vrcp.f32 %v2618_v58 }
0x1311   : > { %v5050_v53 = vpop.eup %5049 }
0x1312   : > { %v5052_v55 = vpop.eup %5051  ;;  %v2625_v57 = vmul.f32 %v5050_v53, %v5048_v52 }
0x1313   : > { %v2624_v59 = vmul.f32 %v5052_v55, %v2622_v54 }
0x1315   : > { %v6202_v60 = vadd.f32 %v2625_v57, %v2624_v59 }
0x1317   : > { %5055 = vtanh.f32 %v6202_v60  ;;  %v2833_v50 = vrot.slane %v6202_v60, 7 }
0x1319   : > { %v5054_v61 = vpop.eup %5053 }
0x1324   : > { %v5056_v63 = vpop.eup %5055 }
0x1325   : > { %v2628_v1 = vmul.f32 %v5056_v63, %v5054_v61 }
0x1327   : > { %v2629_v3 = vpack.c.bf16 %v2628_v1, %v2628_v1  ;;  %v6207_v4 = vsel %vm3472_vm10, %v6167_v11, %v2628_v1 }
0x1329   : > { %v2631_v6 = vshrl.u32 %v2629_v3, 16 }
0x132b   : > { %v2633_v2 = vrot.slane %v2631_v6, 1 }
0x132d   : > { %4708 = vmatmul.mubr.msk.bf16.vlgmr.msra.gmra.mxu0 %vm832_vm1, %v2633_v2  ;;  %4716 = vmatmul.mubr.msk.bf16.vlgmr.msra.gmra.mxu1 %vm832_vm1, %v2633_v2 }
0x132e   : > { %4720 = vmatpush3.bf16.msra.mxu0 %v5931_v39  ;;  %4728 = vmatpush3.bf16.msra.mxu1 %v6031_v13 }
0x132f   : > { %4721 = vmatprep.subr.bf16.mxu0 %v5320_v0  ;;  %4729 = vmatprep.subr.bf16.mxu1 %v5320_v0 }
0x1330   : > { %4723 = vmatprep.mubr.msk.bf16.mxu0 %vm5321_vm0, %v5320_v0  ;;  %4731 = vmatprep.mubr.msk.bf16.mxu1 %vm5321_vm0, %v5320_v0 }
0x1332   : > { %4722 = vmatpush3.bf16.msra.mxu0 %v5941_v42  ;;  %4730 = vmatpush3.bf16.msra.mxu1 %v6042_v15 }
0x1333   : > { %4735 = vmatprep.subr.bf16.mxu0 %v5320_v0  ;;  %4743 = vmatprep.subr.bf16.mxu1 %v5320_v0 }
0x1335   : > { %4724 = vmatmul.mubr.msk.bf16.vlgmr.msra.gmra.mxu0 %vm832_vm1, %v2633_v2  ;;  %4732 = vmatmul.mubr.msk.bf16.vlgmr.msra.gmra.mxu1 %vm832_vm1, %v2633_v2 }
0x1336   : > { %4736 = vmatpush3.bf16.msra.mxu0 %v5897_v28  ;;  %4744 = vmatpush3.bf16.msra.mxu1 %v6008_v5 }
0x1337   : > { %4737 = vmatprep.subr.bf16.mxu0 %v5320_v0  ;;  %4745 = vmatprep.subr.bf16.mxu1 %v5320_v0 }
0x1338   : > { %4739 = vmatprep.mubr.msk.bf16.mxu0 %vm5321_vm0, %v5320_v0  ;;  %4747 = vmatprep.mubr.msk.bf16.mxu1 %vm5321_vm0, %v5320_v0 }
0x133a   : > { %4738 = vmatpush3.bf16.msra.mxu0 %v5915_v35  ;;  %4746 = vmatpush3.bf16.msra.mxu1 %v6019_v9 }
0x133b   : > { %4751 = vmatprep.subr.bf16.mxu0 %v5320_v0  ;;  %4759 = vmatprep.subr.bf16.mxu1 %v5320_v0 }
0x13ed   : > { %v2671_v8 = vpop.f32.mrf.mxu0  ;;  %v2721_v12 = vpop.f32.mrf.mxu1 }
0x13ee   : > { %v2678_v11 = vrot.slane %v2671_v8, 4  ;;  %v2728_v14 = vrot.slane %v2721_v12, 4 }
0x13ef   : > { %v4709_v21 = vpop.f32.mrf.mxu0  ;;  %v4717_v10 = vpop.f32.mrf.mxu1 }
0x13f0   : > { %v2680_v16 = vadd.f32 %v2678_v11, %v6059_v36  ;;  %v2730_v17 = vadd.f32 %v2728_v14, %v6065_v48 }
0x13f1   : > { %v2674_v18 = vpop.f32.mrf.mxu0  ;;  %v2724_v19 = vpop.f32.mrf.mxu1 }
0x13f2   : > { %v4194_v7 = vmul.f32 -1.442695, %v2680_v16  ;;  %v4196_v20 = vmul.f32 -1.442695, %v2730_v17 }
0x13f3   : > { %v4710_v22 = vpop.f32.mrf.mxu0  ;;  %v4718_v23 = vpop.f32.mrf.mxu1 }
0x13f4   : > { %5057 = vpow2.f32 %v4194_v7 }
0x13f5   : > { %5059 = vpow2.f32 %v4196_v20  ;;  %v2771_v24 = vpop.f32.mrf.mxu0  ;;  %v2816_v25 = vpop.f32.mrf.mxu1 }
0x13f6   : > { %v2823_v26 = vrot.slane %v2816_v25, 4  ;;  %v2778_v33 = vrot.slane %v2771_v24, 4 }
0x13f7   : > { %v4725_v27 = vpop.f32.mrf.mxu0  ;;  %v4733_v29 = vpop.f32.mrf.mxu1 }
0x13f8   : > { %v2825_v32 = vadd.f32 %v2823_v26, %v6071_v56  ;;  %v2780_v40 = vadd.f32 %v2778_v33, %v6077_v62 }
0x13f9   : > { %v2774_v30 = vpop.f32.mrf.mxu0  ;;  %v2819_v31 = vpop.f32.mrf.mxu1 }
0x13fa   : > { %v4199_v38 = vmul.f32 -1.442695, %v2825_v32 }
0x13fb   : > { %v4726_v34 = vpop.f32.mrf.mxu0  ;;  %v4734_v37 = vpop.f32.mrf.mxu1 }
0x13fc   : > { %5061 = vpow2.f32 %v4199_v38 }
0x13fd   : > { %5063 = vtanh.f32 %v2780_v40 }
0x1401   : > { %v5058_v41 = vpop.eup %5057 }
0x1402   : > { %v5060_v43 = vpop.eup %5059  ;;  %v2684_v44 = vadd.f32 1.0, %v5058_v41 }
0x1403   : > { %v2734_v45 = vadd.f32 1.0, %v5060_v43 }
0x1404   : > { %5065 = vrcp.f32 %v2684_v44 }
0x1405   : > { %5067 = vrcp.f32 %v2734_v45 }
0x1409   : > { %v5062_v46 = vpop.eup %5061 }
0x140a   : > { %v5064_v47 = vpop.eup %5063  ;;  %v2829_v53 = vadd.f32 1.0, %v5062_v46 }
0x140c   : > { %5069 = vrcp.f32 %v2829_v53 }
0x1411   : > { %v5066_v49 = vpop.eup %5065 }
0x1412   : > { %v5068_v51 = vpop.eup %5067  ;;  %v2836_v52 = vmul.f32 %v5066_v49, %v5064_v47 }
0x1413   : > { %v2835_v54 = vmul.f32 %v5068_v51, %v2833_v50 }
0x1415   : > { %v6242_v55 = vadd.f32 %v2836_v52, %v2835_v54 }
0x1417   : > { %5071 = vtanh.f32 %v6242_v55  ;;  %v3042_v44 = vrot.slane %v6242_v55, 7 }
0x1419   : > { %v5070_v57 = vpop.eup %5069 }
0x1424   : > { %v5072_v58 = vpop.eup %5071 }
0x1425   : > { %v2839_v59 = vmul.f32 %v5072_v58, %v5070_v57 }
0x1427   : > { %v2840_v61 = vpack.c.bf16 %v2839_v59, %v2839_v59  ;;  %v6247_v63 = vsel %vm951_vm6, %v6207_v4, %v2839_v59 }
0x1429   : > { %v2842_v1 = vrot.slane %v2840_v61, 2 }
0x142b   : > { %4740 = vmatmul.mubr.msk.bf16.vlgmr.msra.gmra.mxu0 %vm832_vm1, %v2842_v1  ;;  %4748 = vmatmul.mubr.msk.bf16.vlgmr.msra.gmra.mxu1 %vm832_vm1, %v2842_v1 }
0x142c   : > { %4752 = vmatpush3.bf16.msra.mxu0 %v5931_v39  ;;  %4760 = vmatpush3.bf16.msra.mxu1 %v6031_v13 }
0x142d   : > { %4753 = vmatprep.subr.bf16.mxu0 %v5320_v0  ;;  %4761 = vmatprep.subr.bf16.mxu1 %v5320_v0 }
0x142e   : > { %4755 = vmatprep.mubr.msk.bf16.mxu0 %vm5321_vm0, %v5320_v0  ;;  %4763 = vmatprep.mubr.msk.bf16.mxu1 %vm5321_vm0, %v5320_v0 }
0x1430   : > { %4754 = vmatpush3.bf16.msra.mxu0 %v5941_v42  ;;  %4762 = vmatpush3.bf16.msra.mxu1 %v6042_v15 }
0x1431   : > { %4767 = vmatprep.subr.bf16.mxu0 %v5320_v0  ;;  %4775 = vmatprep.subr.bf16.mxu1 %v5320_v0 }
0x1433   : > { %4756 = vmatmul.mubr.msk.bf16.vlgmr.msra.gmra.mxu0 %vm832_vm1, %v2842_v1  ;;  %4764 = vmatmul.mubr.msk.bf16.vlgmr.msra.gmra.mxu1 %vm832_vm1, %v2842_v1 }
0x1434   : > { %4768 = vmatpush3.bf16.msra.mxu0 %v5897_v28  ;;  %4776 = vmatpush3.bf16.msra.mxu1 %v6008_v5 }
0x1435   : > { %4769 = vmatprep.subr.bf16.mxu0 %v5320_v0  ;;  %4777 = vmatprep.subr.bf16.mxu1 %v5320_v0 }
0x1436   : > { %4771 = vmatprep.mubr.msk.bf16.mxu0 %vm5321_vm0, %v5320_v0  ;;  %4779 = vmatprep.mubr.msk.bf16.mxu1 %vm5321_vm0, %v5320_v0 }
0x1438   : > { %4770 = vmatpush3.bf16.msra.mxu0 %v5915_v35  ;;  %4778 = vmatpush3.bf16.msra.mxu1 %v6019_v9 }
0x1439   : > { %4783 = vmatprep.subr.bf16.mxu0 %v5320_v0  ;;  %4791 = vmatprep.subr.bf16.mxu1 %v5320_v0 }
0x14eb   : > { %v2880_v60 = vpop.f32.mrf.mxu0  ;;  %v2930_v3 = vpop.f32.mrf.mxu1 }
0x14ec   : > { %v2887_v4 = vrot.slane %v2880_v60, 3  ;;  %v2937_v6 = vrot.slane %v2930_v3, 3 }
0x14ed   : > { %v4741_v2 = vpop.f32.mrf.mxu0  ;;  %v4749_v8 = vpop.f32.mrf.mxu1 }
0x14ee   : > { %v2889_v12 = vadd.f32 %v2887_v4, %v6059_v36  ;;  %v2939_v11 = vadd.f32 %v2937_v6, %v6065_v48 }
0x14ef   : > { %v2883_v14 = vpop.f32.mrf.mxu0  ;;  %v2933_v21 = vpop.f32.mrf.mxu1 }
0x14f0   : > { %v4201_v10 = vmul.f32 -1.442695, %v2889_v12  ;;  %v4203_v16 = vmul.f32 -1.442695, %v2939_v11 }
0x14f1   : > { %v4742_v17 = vpop.f32.mrf.mxu0  ;;  %v4750_v18 = vpop.f32.mrf.mxu1 }
0x14f2   : > { %5073 = vpow2.f32 %v4201_v10 }
0x14f3   : > { %5075 = vpow2.f32 %v4203_v16  ;;  %v2980_v19 = vpop.f32.mrf.mxu0  ;;  %v3025_v7 = vpop.f32.mrf.mxu1 }
0x14f4   : > { %v3032_v20 = vrot.slane %v3025_v7, 3  ;;  %v2987_v27 = vrot.slane %v2980_v19, 3 }
0x14f5   : > { %v4757_v22 = vpop.f32.mrf.mxu0  ;;  %v4765_v23 = vpop.f32.mrf.mxu1 }
0x14f6   : > { %v3034_v26 = vadd.f32 %v3032_v20, %v6071_v56  ;;  %v2989_v32 = vadd.f32 %v2987_v27, %v6077_v62 }
0x14f7   : > { %v2983_v24 = vpop.f32.mrf.mxu0  ;;  %v3028_v25 = vpop.f32.mrf.mxu1 }
0x14f8   : > { %v4206_v31 = vmul.f32 -1.442695, %v3034_v26 }
0x14f9   : > { %v4758_v29 = vpop.f32.mrf.mxu0  ;;  %v4766_v30 = vpop.f32.mrf.mxu1 }
0x14fa   : > { %5077 = vpow2.f32 %v4206_v31 }
0x14fb   : > { %5079 = vtanh.f32 %v2989_v32 }
0x14ff   : > { %v5074_v33 = vpop.eup %5073 }
0x1500   : > { %v5076_v34 = vpop.eup %5075  ;;  %v2893_v37 = vadd.f32 1.0, %v5074_v33 }
0x1501   : > { %v2943_v38 = vadd.f32 1.0, %v5076_v34 }
0x1502   : > { %5081 = vrcp.f32 %v2893_v37 }
0x1503   : > { %5083 = vrcp.f32 %v2943_v38 }
0x1507   : > { %v5078_v40 = vpop.eup %5077 }
0x1508   : > { %v5080_v41 = vpop.eup %5079  ;;  %v3038_v47 = vadd.f32 1.0, %v5078_v40 }
0x150a   : > { %5085 = vrcp.f32 %v3038_v47 }
0x150f   : > { %v5082_v43 = vpop.eup %5081 }
0x1510   : > { %v5084_v45 = vpop.eup %5083  ;;  %v3045_v46 = vmul.f32 %v5082_v43, %v5080_v41 }
0x1511   : > { %v3044_v49 = vmul.f32 %v5084_v45, %v3042_v44 }
0x1513   : > { %v6282_v50 = vadd.f32 %v3045_v46, %v3044_v49  ;;  %v3482_v49 = vld [vmem:[%s6655_s1 + $0x8] sm:$0xff] }
0x1515   : > { %5087 = vtanh.f32 %v6282_v50  ;;  %v3253_v32 = vrot.slane %v6282_v50, 7 }
0x1517   : > { %v5086_v51 = vpop.eup %5085 }
0x1522   : > { %v5088_v52 = vpop.eup %5087 }
0x1523   : > { %v3048_v53 = vmul.f32 %v5088_v52, %v5086_v51  ;;  %v3546_v51 = vld [vmem:[%s6656_s30 + $0x70] sm:$0xff]  ;;  %v3547_v52 = vld [vmem:[%s6656_s30 + $0x78] sm:$0xff] }
0x1525   : > { %v3049_v54 = vpack.c.bf16 %v3048_v53, %v3048_v53  ;;  %v6286_v57 = vsel %vm3475_vm11, %v6247_v63, %v3048_v53  ;;  %v3544_v53 = vld [vmem:[%s6656_s30 + $0x60] sm:$0xff] }
0x1527   : > { %v3051_v58 = vshrl.u32 %v3049_v54, 16  ;;  %v3556_v54 = vpack.c.bf16 %v3547_v52, %v3546_v51  ;;  %v3534_v52 = vld [vmem:[%s6656_s30 + $0x10] sm:$0xff] }
0x1529   : > { %v3053_v59 = vrot.slane %v3051_v58, 2 }
0x152b   : > { %4772 = vmatmul.mubr.msk.bf16.vlgmr.msra.gmra.mxu0 %vm832_vm1, %v3053_v59  ;;  %4780 = vmatmul.mubr.msk.bf16.vlgmr.msra.gmra.mxu1 %vm832_vm1, %v3053_v59 }
0x152c   : > { %4784 = vmatpush3.bf16.msra.mxu0 %v5931_v39  ;;  %4792 = vmatpush3.bf16.msra.mxu1 %v6031_v13 }
0x152d   : > { %4785 = vmatprep.subr.bf16.mxu0 %v5320_v0  ;;  %4793 = vmatprep.subr.bf16.mxu1 %v5320_v0 }
0x152e   : > { %4787 = vmatprep.mubr.msk.bf16.mxu0 %vm5321_vm0, %v5320_v0  ;;  %4795 = vmatprep.mubr.msk.bf16.mxu1 %vm5321_vm0, %v5320_v0 }
0x1530   : > { %4786 = vmatpush3.bf16.msra.mxu0 %v5941_v42  ;;  %4794 = vmatpush3.bf16.msra.mxu1 %v6042_v15 }
0x1531   : > { %4799 = vmatprep.subr.bf16.mxu0 %v5320_v0  ;;  %4807 = vmatprep.subr.bf16.mxu1 %v5320_v0 }
0x1533   : > { %4788 = vmatmul.mubr.msk.bf16.vlgmr.msra.gmra.mxu0 %vm832_vm1, %v3053_v59  ;;  %4796 = vmatmul.mubr.msk.bf16.vlgmr.msra.gmra.mxu1 %vm832_vm1, %v3053_v59  ;;  %v3542_v59 = vld [vmem:[%s6656_s30 + $0x50] sm:$0xff] }
0x1534   : > { %4800 = vmatpush3.bf16.msra.mxu0 %v5897_v28  ;;  %4808 = vmatpush3.bf16.msra.mxu1 %v6008_v5 }
0x1535   : > { %4801 = vmatprep.subr.bf16.mxu0 %v5320_v0  ;;  %4809 = vmatprep.subr.bf16.mxu1 %v5320_v0 }
0x1536   : > { %4803 = vmatprep.mubr.msk.bf16.mxu0 %vm5321_vm0, %v5320_v0  ;;  %4811 = vmatprep.mubr.msk.bf16.mxu1 %vm5321_vm0, %v5320_v0 }
0x1538   : > { %4802 = vmatpush3.bf16.msra.mxu0 %v5915_v35  ;;  %4810 = vmatpush3.bf16.msra.mxu1 %v6019_v9 }
0x1539   : > { %4815 = vmatprep.subr.bf16.mxu0 %v5320_v0  ;;  %4823 = vmatprep.subr.bf16.mxu1 %v5320_v0 }
0x15eb   : > { %v3091_v28 = vpop.f32.mrf.mxu0  ;;  %v3141_v5 = vpop.f32.mrf.mxu1 }
0x15ec   : > { %v3098_v55 = vrot.slane %v3091_v28, 2  ;;  %v3148_v61 = vrot.slane %v3141_v5, 2  ;;  %v3543_v28 = vld [vmem:[%s6656_s30 + $0x58] sm:$0xff] }
0x15ed   : > { %v4773_v63 = vpop.f32.mrf.mxu0  ;;  %v4781_v1 = vpop.f32.mrf.mxu1  ;;  %v3554_v5 = vpack.c.bf16 %v3543_v28, %v3542_v59  ;;  %v3557_v28 = vld [vmem:[%s768_s17] sm:$0xff] }
0x15ee   : > { %v3100_v60 = vadd.f32 %v3098_v55, %v6059_v36  ;;  %v3150_v3 = vadd.f32 %v3148_v61, %v6065_v48  ;;  %v3540_v55 = vld [vmem:[%s6656_s30 + $0x40] sm:$0xff]  ;;  %v3541_v61 = vld [vmem:[%s6656_s30 + $0x48] sm:$0xff]  ;;  %3560 = vperm.xlu1 %4969, %v3557_v28  }
0x15ef   : > { %v3094_v4 = vpop.f32.mrf.mxu0  ;;  %v3144_v6 = vpop.f32.mrf.mxu1  ;;  %v3553_v63 = vpack.c.bf16 %v3541_v61, %v3540_v55  ;;  %v4230_v28 = vld [vmem:[%s6658_s21 + $0x48] sm:$0xff] }
0x15f0   : > { %v4208_v2 = vmul.f32 -1.442695, %v3100_v60  ;;  %v4210_v35 = vmul.f32 -1.442695, %v3150_v3 }
0x15f1   : > { %v4774_v8 = vpop.f32.mrf.mxu0  ;;  %v4782_v9 = vpop.f32.mrf.mxu1 }
0x15f2   : > { %5089 = vpow2.f32 %v4208_v2 }
0x15f3   : > { %5091 = vpow2.f32 %v4210_v35  ;;  %v3191_v12 = vpop.f32.mrf.mxu0  ;;  %v3236_v11 = vpop.f32.mrf.mxu1 }
0x15f4   : > { %v3243_v14 = vrot.slane %v3236_v11, 2  ;;  %v3198_v19 = vrot.slane %v3191_v12, 2 }
0x15f5   : > { %v4789_v21 = vpop.f32.mrf.mxu0  ;;  %v4797_v10 = vpop.f32.mrf.mxu1 }
0x15f6   : > { %v3245_v18 = vadd.f32 %v3243_v14, %v6071_v56  ;;  %v3200_v23 = vadd.f32 %v3198_v19, %v6077_v62 }
0x15f7   : > { %v3194_v16 = vpop.f32.mrf.mxu0  ;;  %v3239_v17 = vpop.f32.mrf.mxu1 }
0x15f8   : > { %v4213_v22 = vmul.f32 -1.442695, %v3245_v18 }
0x15f9   : > { %v4790_v7 = vpop.f32.mrf.mxu0  ;;  %v4798_v20 = vpop.f32.mrf.mxu1 }
0x15fa   : > { %5093 = vpow2.f32 %v4213_v22 }
0x15fb   : > { %5095 = vtanh.f32 %v3200_v23 }
0x15ff   : > { %v5090_v24 = vpop.eup %5089 }
0x1600   : > { %v5092_v25 = vpop.eup %5091  ;;  %v3104_v26 = vadd.f32 1.0, %v5090_v24 }
0x1601   : > { %v3154_v27 = vadd.f32 1.0, %v5092_v25 }
0x1602   : > { %5097 = vrcp.f32 %v3104_v26 }
0x1603   : > { %5099 = vrcp.f32 %v3154_v27 }
0x1607   : > { %v5094_v29 = vpop.eup %5093 }
0x1608   : > { %v5096_v30 = vpop.eup %5095  ;;  %v3249_v37 = vadd.f32 1.0, %v5094_v29 }
0x160a   : > { %5101 = vrcp.f32 %v3249_v37 }
0x160f   : > { %v5098_v31 = vpop.eup %5097 }
0x1610   : > { %v5100_v33 = vpop.eup %5099  ;;  %v3256_v34 = vmul.f32 %v5098_v31, %v5096_v30 }
0x1611   : > { %v3255_v38 = vmul.f32 %v5100_v33, %v3253_v32 }
0x1613   : > { %v6321_v40 = vadd.f32 %v3256_v34, %v3255_v38 }
0x1615   : > { %5103 = vtanh.f32 %v6321_v40  ;;  %v3462_v37 = vrot.slane %v6321_v40, 7  ;;  %v3538_v40 = vld [vmem:[%s6656_s30 + $0x30] sm:$0xff] }
0x1617   : > { %v5102_v41 = vpop.eup %5101 }
0x1622   : > { %v5104_v43 = vpop.eup %5103 }
0x1623   : > { %v3259_v44 = vmul.f32 %v5104_v43, %v5102_v41 }
0x1625   : > { %v3260_v45 = vpack.c.bf16 %v3259_v44, %v3259_v44  ;;  %v6325_v46 = vsel %vm3477_vm12, %v6286_v57, %v3259_v44  ;;  %v3545_v57 = vld [vmem:[%s6656_s30 + $0x68] sm:$0xff] }
0x1626   : > { %v3555_v58 = vpack.c.bf16 %v3545_v57, %v3544_v53  ;;  %v3535_v53 = vld [vmem:[%s6656_s30 + $0x18] sm:$0xff]  ;;  %v3532_v57 = vld [vmem:[%s6656_s30] sm:$0xff] }
0x1627   : > { %v3262_v47 = vrot.slane %v3260_v45, 3 }
0x1629   : > { %4804 = vmatmul.mubr.msk.bf16.vlgmr.msra.gmra.mxu0 %vm832_vm1, %v3262_v47  ;;  %4812 = vmatmul.mubr.msk.bf16.vlgmr.msra.gmra.mxu1 %vm832_vm1, %v3262_v47 }
0x162a   : > { %4816 = vmatpush3.bf16.msra.mxu0 %v5931_v39  ;;  %4824 = vmatpush3.bf16.msra.mxu1 %v6031_v13  ;;  %v3483_v39 = vld [vmem:[%s6655_s1 + $0x10] sm:$0xff]  ;;  %v3481_v13 = vld [vmem:[%s6655_s1] sm:$0xff] }
0x162b   : > { %4817 = vmatprep.subr.bf16.mxu0 %v5320_v0  ;;  %4825 = vmatprep.subr.bf16.mxu1 %v5320_v0  ;;  %v3486_v50 = vpack.c.bf16 %v3482_v49, %v3481_v13  ;;  %v3536_v49 = vld [vmem:[%s6656_s30 + $0x20] sm:$0xff] }
0x162c   : > { %4819 = vmatprep.mubr.msk.bf16.mxu0 %vm5321_vm0, %v5320_v0  ;;  %4827 = vmatprep.mubr.msk.bf16.mxu1 %vm5321_vm0, %v5320_v0 }
0x162e   : > { %4818 = vmatpush3.bf16.msra.mxu0 %v5941_v42  ;;  %4826 = vmatpush3.bf16.msra.mxu1 %v6042_v15  ;;  %v3484_v42 = vld [vmem:[%s6655_s1 + $0x18] sm:$0xff]  ;;  %s5325_s1 = smov [#allocation8]  }
0x162f   : > { %4831 = vmatprep.subr.bf16.mxu0 %v5320_v0  ;;  %4839 = vmatprep.subr.bf16.mxu1 %v5320_v0  ;;  %v3487_v15 = vpack.c.bf16 %v3484_v42, %v3483_v39  ;;  %s5217_s5 = sshll.u32 %s5325_s1, 4  ;;  %s5218_s5 = int_to_ptr.vmem [resolvable:$false] %s5217_s5 }
0x1630   : > { %s5219_s6 = scalar_lea.vmem %s5218_s5, 256  ;;  %p5220_p3 = scmp.lt.s32.totalorder %s3934_s20, %s5218_s5 }
0x1631   : > { %4820 = vmatmul.mubr.msk.bf16.vlgmr.msra.gmra.mxu0 %vm832_vm1, %v3262_v47  ;;  %4828 = vmatmul.mubr.msk.bf16.vlgmr.msra.gmra.mxu1 %vm832_vm1, %v3262_v47  ;;  %p5221_p12 = scmp.lt.s32.totalorder %s5219_s6, %s5213_s0 }
0x1632   : > { %4835 = vmatprep.mubr.msk.bf16.mxu0 %vm5321_vm0, %v5320_v0  ;;  %4855 = vmatprep.mubr.msk.bf16.mxu1 %vm5321_vm0, %v5320_v0 }
0x1633   : > { %4832 = vmatpush3.bf16.msra.mxu0 %v3487_v15  ;;  %4840 = vmatpush3.bf16.msra.mxu1 %v3556_v54  ;;  %v3539_v15 = vld [vmem:[%s6656_s30 + $0x38] sm:$0xff]  ;;  %v3550_v54 = vpack.c.bf16 %v3535_v53, %v3534_v52  ;;  %v4231_v53 = vld [vmem:[%s6658_s21 + $0x50] sm:$0xff]  ;;  %p5222_p5 = por %p5221_p12, %p5220_p3 }
0x1634   : > { %4833 = vmatprep.subr.bf16.mxu0 %v5320_v0  ;;  %4841 = vmatprep.subr.bf16.mxu1 %v5320_v0 }
0x1635   : > { %p5223_p6 = pnand %p5222_p5, %p5216_p0 }
0x1637   : > { %4834 = vmatpush3.bf16.msra.mxu0 %v3486_v50  ;;  %4842 = vmatpush3.bf16.msra.mxu1 %v3555_v58  ;;  %v3537_v50 = vld [vmem:[%s6656_s30 + $0x28] sm:$0xff] }
0x1638   : > { %4859 = vmatprep.subr.bf16.mxu0 %v5320_v0  ;;  %4843 = vmatprep.subr.bf16.mxu1 %v5320_v0  ;;  %v3551_v51 = vpack.c.bf16 %v3537_v50, %v3536_v49  ;;  %v3533_v58 = vld [vmem:[%s6656_s30 + $0x8] sm:$0xff] }
0x1639   : > { %v3549_v59 = vpack.c.bf16 %v3533_v58, %v3532_v57 }
0x163b   : > { %4844 = vmatpush3.bf16.msra.mxu1 %v3554_v5 }
0x163c   : > { %4845 = vmatprep.subr.bf16.mxu1 %v5320_v0 }
0x163f   : > { %4846 = vmatpush3.bf16.msra.mxu1 %v3553_v63 }
0x1640   : > { %4847 = vmatprep.subr.bf16.mxu1 %v5320_v0 }
0x16e9   : > { %v3300_v1 = vpop.f32.mrf.mxu0  ;;  %v3350_v60 = vpop.f32.mrf.mxu1 }
0x16ea   : > { %v3307_v3 = vrot.slane %v3300_v1, 1  ;;  %v3357_v4 = vrot.slane %v3350_v60, 1 }
0x16eb   : > { %v4805_v6 = vpop.f32.mrf.mxu0  ;;  %v4813_v2 = vpop.f32.mrf.mxu1 }
0x16ec   : > { %v3309_v35 = vadd.f32 %v3307_v3, %v6059_v36  ;;  %v3359_v8 = vadd.f32 %v3357_v4, %v6065_v48  ;;  %v3561_v3 = vpop.permute.xlu1 %3560 }
0x16ed   : > { %v3303_v9 = vpop.f32.mrf.mxu0  ;;  %v3353_v12 = vpop.f32.mrf.mxu1 }
0x16ee   : > { %v4215_v11 = vmul.f32 -1.442695, %v3309_v35  ;;  %v4217_v14 = vmul.f32 -1.442695, %v3359_v8 }
0x16ef   : > { %v4806_v21 = vpop.f32.mrf.mxu0  ;;  %v4814_v10 = vpop.f32.mrf.mxu1 }
0x16f0   : > { %5105 = vpow2.f32 %v4215_v11 }
0x16f1   : > { %5107 = vpow2.f32 %v4217_v14  ;;  %v3400_v16 = vpop.f32.mrf.mxu0  ;;  %v3445_v17 = vpop.f32.mrf.mxu1 }
0x16f2   : > { %v3452_v18 = vrot.slane %v3445_v17, 1  ;;  %v3407_v36 = vrot.slane %v3400_v16, 1 }
0x16f3   : > { %v4821_v19 = vpop.f32.mrf.mxu0  ;;  %v4829_v7 = vpop.f32.mrf.mxu1 }
0x16f4   : > { %v3454_v23 = vadd.f32 %v3452_v18, %v6071_v56  ;;  %v3409_v26 = vadd.f32 %v3407_v36, %v6077_v62 }
0x16f5   : > { %v3403_v20 = vpop.f32.mrf.mxu0  ;;  %v3448_v22 = vpop.f32.mrf.mxu1 }
0x16f6   : > { %v4220_v25 = vmul.f32 -1.442695, %v3454_v23 }
0x16f7   : > { %v4822_v24 = vpop.f32.mrf.mxu0  ;;  %v4830_v48 = vpop.f32.mrf.mxu1 }
0x16f8   : > { %5109 = vpow2.f32 %v4220_v25 }
0x16f9   : > { %5111 = vtanh.f32 %v3409_v26 }
0x16fd   : > { %v5106_v27 = vpop.eup %5105 }
0x16fe   : > { %v5108_v29 = vpop.eup %5107  ;;  %v3313_v30 = vadd.f32 1.0, %v5106_v27 }
0x16ff   : > { %v3363_v31 = vadd.f32 1.0, %v5108_v29  ;;  %v3686_v29 = vld [vmem:[%s6658_s21 + $0x10] sm:$0xff] }
0x1700   : > { %5113 = vrcp.f32 %v3313_v30  ;;  %v3687_v30 = vld [vmem:[%s6658_s21 + $0x18] sm:$0xff] }
0x1701   : > { %5115 = vrcp.f32 %v3363_v31  ;;  %v3690_v31 = vpack.c.bf16 %v3687_v30, %v3686_v29 }
0x1705   : > { %v5110_v32 = vpop.eup %5109 }
0x1706   : > { %v5112_v33 = vpop.eup %5111  ;;  %v3458_v41 = vadd.f32 1.0, %v5110_v32 }
0x1708   : > { %5117 = vrcp.f32 %v3458_v41 }
0x170d   : > { %v5114_v34 = vpop.eup %5113 }
0x170e   : > { %v5116_v56 = vpop.eup %5115  ;;  %v3465_v38 = vmul.f32 %v5114_v34, %v5112_v33  ;;  %v3684_v33 = vld [vmem:[%s6658_s21] sm:$0xff]  ;;  %v3685_v34 = vld [vmem:[%s6658_s21 + $0x8] sm:$0xff] }
0x170f   : > { %v3464_v43 = vmul.f32 %v5116_v56, %v3462_v37  ;;  %v4236_v37 = vld [vmem:[%s6658_s21 + $0x70] sm:$0xff]  ;;  %v3689_v56 = vpack.c.bf16 %v3685_v34, %v3684_v33 }
0x1711   : > { %v3466_v44 = vadd.f32 %v3465_v38, %v3464_v43  ;;  %v4237_v38 = vld [vmem:[%s6658_s21 + $0x78] sm:$0xff]  ;;  %v4234_v43 = vld [vmem:[%s6658_s21 + $0x60] sm:$0xff] }
0x1712   : > { %v3844_v41 = vpack.c.bf16 %v4237_v38, %v4236_v37 }
0x1713   : > { %5119 = vtanh.f32 %v3466_v44  ;;  %v4235_v44 = vld [vmem:[%s6658_s21 + $0x68] sm:$0xff] }
0x1715   : > { %v5118_v62 = vpop.eup %5117 }
0x1720   : > { %v5120_v45 = vpop.eup %5119 }
0x1721   : > { %v3468_v47 = vmul.f32 %v5120_v45, %v5118_v62  ;;  %v3843_v62 = vpack.c.bf16 %v4235_v44, %v4234_v43  ;;  %v4226_v45 = vld [vmem:[%s6658_s21 + $0x30] sm:$0xff] }
0x1723   : > { %v3480_v39 = vsel %vm3479_vm13, %v6325_v46, %v3468_v47  ;;  %v3552_v46 = vpack.c.bf16 %v3539_v15, %v3538_v40  ;;  %v4227_v47 = vld [vmem:[%s6658_s21 + $0x38] sm:$0xff]  ;;  %v4224_v40 = vld [vmem:[%s6658_s21 + $0x20] sm:$0xff]  ;;  %v4225_v15 = vld [vmem:[%s6658_s21 + $0x28] sm:$0xff] }
0x1724   : > { %v3485_v42 = vpack.c.bf16 %v3480_v39, %v3480_v39 }
0x1725   : > { %4848 = vmatpush3.bf16.msra.mxu1 %v3552_v46 }
0x1726   : > { %4836 = vmatmul.mubr.msk.bf16.vlgmr.msra.gmra.mxu0 %vm832_vm1, %v3485_v42  ;;  %v3642_v13 = vsel %vm951_vm6, %v3485_v42, 0  ;;  %4849 = vmatprep.subr.bf16.mxu1 %v5320_v0  ;;  %v3740_v42 = vpack.c.bf16 %v4227_v47, %v4226_v45 }
0x1727   : > { %4860 = vmatpush3.bf16.msra.mxu0 %v3642_v13  ;;  %4861 = vmatprep.mubr.msk.bf16.mxu0 %vm5321_vm0, %v5320_v0 }
0x1728   : > { %4865 = vmatprep.subr.bf16.mxu0 %v5320_v0 }
0x1729   : > { %4850 = vmatpush3.bf16.msra.mxu1 %v3551_v51  ;;  %v3739_v51 = vpack.c.bf16 %v4225_v15, %v4224_v40 }
0x172a   : > { %4851 = vmatprep.subr.bf16.mxu1 %v5320_v0 }
0x172d   : > { %4852 = vmatpush3.bf16.msra.mxu1 %v3550_v54  ;;  %v4232_v54 = vld [vmem:[%s6658_s21 + $0x58] sm:$0xff] }
0x172e   : > { %4853 = vmatprep.subr.bf16.mxu1 %v5320_v0  ;;  %v3792_v58 = vpack.c.bf16 %v4232_v54, %v4231_v53 }
0x1731   : > { %4854 = vmatpush3.bf16.msra.mxu1 %v3549_v59  ;;  %v4229_v59 = vld [vmem:[%s6658_s21 + $0x40] sm:$0xff] }
0x1732   : > { %4889 = vmatprep.subr.bf16.mxu1 %v5320_v0 }
0x17e6   : > { %v3525_v5 = vpop.f32.mrf.mxu0 }
0x17e7   : > { %5121 = vtanh.f32 %v3525_v5  ;;  %v3791_v5 = vpack.c.bf16 %v4230_v28, %v4229_v59 }
0x17e8   : > { %v4837_v55 = vpop.f32.mrf.mxu0 }
0x17ea   : > { %v3528_v61 = vpop.f32.mrf.mxu0 }
0x17ec   : > { %v4838_v63 = vpop.f32.mrf.mxu0 }
0x17f4   : > { %v5122_v1 = vpop.eup %5121 }
0x17f5   : > { %v3548_v60 = vpack.c.bf16 %v5122_v1, %v5122_v1 }
0x17f7   : > { %4856 = vmatmul.mubr.bf16.vlgmr.msra.gmra.mxu1 %v3548_v60 }
0x17f8   : > { %4893 = vmatprep.mubr.msk.bf16.mxu1 %vm5321_vm0, %v5320_v0  ;;  %4890 = vmatpush3.bf16.msra.mxu1 %v3844_v41 }
0x17f9   : > { %4891 = vmatprep.subr.bf16.mxu1 %v5320_v0 }
0x17fc   : > { %4892 = vmatpush3.bf16.msra.mxu1 %v3843_v62 }
0x18b7   : > { %v3597_v4 = vpop.f32.mrf.mxu1 }
0x18b8   : > { %v3598_v6 = vadd.f32 %v3597_v4, %v3561_v3 }
0x18b9   : > { %v4857_v2 = vpop.f32.mrf.mxu1 }
0x18ba   : > { %v3603_v35 = vsel %vm776_vm3, %v3598_v6, -inf }
0x18bb   : > { %v3604_v8 = vrot.slane %v3603_v35, 4  ;;  %v3600_v9 = vpop.f32.mrf.mxu1 }
0x18bd   : > { %v3605_v12 = vmax.f32 %v3603_v35, %v3604_v8  ;;  %v4858_v11 = vpop.f32.mrf.mxu1 }
0x18bf   : > { %v3606_v14 = vrot.slane %v3605_v12, 2 }
0x18c1   : > { %v3607_v21 = vmax.f32 %v3605_v12, %v3606_v14 }
0x18c3   : > { %v3608_v10 = vrot.slane %v3607_v21, 1 }
0x18c5   : > { %v3609_v16 = vmax.f32 %v3607_v21, %v3608_v10 }
0x18c7   : > { %v3610_v17 = vsub.f32 %v3598_v6, %v3609_v16 }
0x18c9   : > { %v3611_v18 = vmul.f32 1.442695, %v3610_v17 }
0x18cb   : > { %5123 = vpow2.f32 %v3611_v18 }
0x18d8   : > { %v5124_v19 = vpop.eup %5123 }
0x18d9   : > { %v3613_v7 = vsel %vm776_vm3, %v5124_v19, 0.0 }
0x18da   : > { %v3614_v20 = vrot.slane %v3613_v7, 4 }
0x18dc   : > { %v3615_v22 = vadd.f32 %v3614_v20, %v3613_v7 }
0x18de   : > { %v3616_v23 = vrot.slane %v3615_v22, 2 }
0x18e0   : > { %v3617_v36 = vadd.f32 %v3616_v23, %v3615_v22 }
0x18e2   : > { %v3618_v24 = vrot.slane %v3617_v36, 1 }
0x18e4   : > { %v3619_v48 = vadd.f32 %v3618_v24, %v3617_v36 }
0x18e6   : > { %5125 = vrcp.f32 %v3619_v48 }
0x18f3   : > { %v5126_v25 = vpop.eup %5125 }
0x18f4   : > { %v3621_v26 = vmul.f32 %v5126_v25, %v5124_v19 }
0x18f6   : > { %v3622_v27 = vpack.c.bf16 %v3621_v26, %v3621_v26 }
0x18f8   : > { %3623 = vxpose.xlu1.c.b16.start.end [1/1] (short) (narrow) %v3622_v27, 16 }
0x195a   : > { %v3631_v32 = vpop.trf.xlu1 }
0x195b   : > { %4862 = vmatmul.mubr.msk.bf16.vlgmr.msra.gmra.mxu0 %vm933_vm5, %v3631_v32 }
0x195c   : > { %4866 = vmatpush3.bf16.msra.mxu0 %v3690_v31  ;;  %4869 = vmatprep.mubr.msk.bf16.mxu0 %vm5321_vm0, %v5320_v0 }
0x195d   : > { %4867 = vmatprep.subr.bf16.mxu0 %v5320_v0 }
0x1960   : > { %4868 = vmatpush3.bf16.msra.mxu0 %v3689_v56 }
0x1961   : > { %4873 = vmatprep.subr.bf16.mxu0 %v5320_v0 }
0x1a1b   : > { %v3678_v39 = vpop.f32.mrf.mxu0 }
0x1a1c   : > { %v3688_v13 = vpack.c.bf16 %v3678_v39, %v3678_v39 }
0x1a1d   : > { %v4863_v46 = vpop.f32.mrf.mxu0 }
0x1a1e   : > { %v3741_v49 = vshrl.u32 %v3688_v13, 16  ;;  %4870 = vmatmul.mubr.msk.bf16.vlgmr.msra.gmra.mxu0 %vm832_vm1, %v3688_v13  ;;  %v3794_v55 = vrot.slane %v3688_v13, 1 }
0x1a1f   : > { %v3681_v50 = vpop.f32.mrf.mxu0  ;;  %4874 = vmatpush3.bf16.msra.mxu0 %v3740_v42  ;;  %4877 = vmatprep.mubr.msk.bf16.mxu0 %vm5321_vm0, %v5320_v0 }
0x1a20   : > { %v3845_v52 = vrot.slane %v3741_v49, 1  ;;  %4875 = vmatprep.subr.bf16.mxu0 %v5320_v0 }
0x1a21   : > { %v4864_v57 = vpop.f32.mrf.mxu0 }
0x1a22   : > { %4894 = vmatmul.mubr.msk.bf16.vlgmr.msra.gmra.mxu1 %vm832_vm1, %v3845_v52 }
0x1a23   : > { %4876 = vmatpush3.bf16.msra.mxu0 %v3739_v51 }
0x1a24   : > { %4881 = vmatprep.subr.bf16.mxu0 %v5320_v0 }
0x1a26   : > { %4878 = vmatmul.mubr.msk.bf16.vlgmr.msra.gmra.mxu0 %vm832_vm1, %v3741_v49 }
0x1a27   : > { %4882 = vmatpush3.bf16.msra.mxu0 %v3792_v58  ;;  %4885 = vmatprep.mubr.msk.bf16.mxu0 %vm5321_vm0, %v5320_v0 }
0x1a28   : > { %4883 = vmatprep.subr.bf16.mxu0 %v5320_v0 }
0x1a2b   : > { %4884 = vmatpush3.bf16.msra.mxu0 %v3791_v5 }
0x1a2e   : > { %4886 = vmatmul.mubr.msk.bf16.vlgmr.msra.gmra.mxu0 %vm832_vm1, %v3794_v55 }
0x1ade   : > { %v3728_v61 = vpop.f32.mrf.mxu0 }
0x1ae0   : > { %v4871_v63 = vpop.f32.mrf.mxu0 }
0x1ae2   : > { %v3731_v1 = vpop.f32.mrf.mxu0  ;;  %v3883_v60 = vpop.f32.mrf.mxu1 }
0x1ae3   : > { %v3896_v0 = vrot.slane %v3883_v60, 5 }
0x1ae4   : > { %v4872_v3 = vpop.f32.mrf.mxu0  ;;  %v4895_v4 = vpop.f32.mrf.mxu1 }
0x1ae6   : > { %v3780_v6 = vpop.f32.mrf.mxu0  ;;  %v3886_v2 = vpop.f32.mrf.mxu1 }
0x1ae7   : > { %v3890_v12 = vrot.slane %v3780_v6, 7 }
0x1ae8   : > { %v4879_v35 = vpop.f32.mrf.mxu0  ;;  %v4896_v8 = vpop.f32.mrf.mxu1 }
0x1ae9   : > { %v3898_v10 = vsel %vm3469_vm9, %v3728_v61, %v3890_v12 }
0x1aea   : > { %v3783_v9 = vpop.f32.mrf.mxu0 }
0x1aec   : > { %v4880_v11 = vpop.f32.mrf.mxu0 }
0x1aee   : > { %v3832_v14 = vpop.f32.mrf.mxu0 }
0x1aef   : > { %v3893_v21 = vrot.slane %v3832_v14, 6 }
0x1af0   : > { %v4887_v16 = vpop.f32.mrf.mxu0 }
0x1af1   : > { %v3899_v17 = vsel %vm780_vm2, %v3898_v10, %v3893_v21 }
0x1af2   : > { %v3835_v18 = vpop.f32.mrf.mxu0  ;;  %v3900_v19 = vsel %vm3472_vm10, %v3899_v17, %v3896_v0 }
0x1af3   : > { %v3902_v7 = vsel %vm3901_vm14, %v3900_v19, -inf }
0x1af4   : > { %v4888_v20 = vpop.f32.mrf.mxu0  ;;  %3903 = vmax.xlane.f32.xlu0 %v3902_v7 }
0x1b7d   : > { %v3904_v22 = vpop.xlane.xlu0 %3903 }
0x1b7e   : > { %v3905_v23 = vsub.f32 %v3900_v19, %v3904_v22 }
0x1b80   : > { %v3906_v36 = vmul.f32 1.442695, %v3905_v23 }
0x1b82   : > { %5127 = vpow2.f32 %v3906_v36 }
0x1b8f   : > { %v5128_v24 = vpop.eup %5127 }
0x1b90   : > { %v3908_v48 = vsel %vm3901_vm14, %v5128_v24, 0.0 }
0x1b91   : > { %3909 = vadd.xlane.f32.xlu0 %v3908_v48 }
0x1b92   : > { %5226 = shalt.err (!%p5223_p6)
}
0x1b93   : > { %s5227_s26 = scalar_lea.hbm %s3931_s29, 128  ;;  %s5231_s17 = scalar_lea.hbm %s6660_s24, 256 }
0x1b94   : > { %p5228_p4 = scmp.ne.s32.totalorder %s3931_s29, %s5227_s26  ;;  %p5232_p11 = scmp.lt.s32.totalorder %s3931_s29, %s6660_s24 }
0x1b95   : > { %p5233_p9 = scmp.lt.s32.totalorder %s5231_s17, %s5227_s26 }
0x1b96   : > { %p5229_p8 = pnand %p5228_p4, %p6662_p1 }
0x1b97   : > { %p5234_p7 = por %p5233_p9, %p5232_p11 }
0x1b98   : > { %p5230_p13 = pneg %p5229_p8 }
0x1b9a   : > { %p5235_p10 = pnand %p5234_p7, %p5230_p13 }
0x1b9c   : > { %5238 = shalt.err (!%p5235_p10)
}
0x1b9d   : > { %4905 = dma.vmem_to_hbm [thread:$0]  (%p6662_p1), %s3934_s20, 128, %s3931_s29, %s3915_s16  }
0x1b9e   : > { %s4117_s6 = sshll.u32 %s5590_s14, 2  ;;  %s4242_s5 = sshll.u32 %s5458_s3, 6 }
0x1b9f   : > { %s759_s0 = scalar_lea.vmem [#allocation9], %s4117_s6  ;;  %s6663_s15 = sld [smem:[#allocation37_spill]] }
0x1ba0   : > { %s3946_s1 = sshll.u32 %s759_s0, 4  ;;  %s3920_s17 = scalar_lea.sflag [#allocation10], %s5590_s14  ;;  %s3947_s1 = int_to_ptr.vmem [resolvable:$true] %s3946_s1 }
0x1ba1   : > { %s5239_s18 = scalar_lea.vmem %s3947_s1, 64  ;;  %s5326_s29 = smov [#allocation9]  }
0x1ba2   : > { %p5240_p2 = scmp.ne.s32.totalorder %s3947_s1, %s5239_s18  ;;  %s5243_s20 = sshll.u32 %s5326_s29, 4  ;;  %s5244_s20 = int_to_ptr.vmem [resolvable:$false] %s5243_s20 }
0x1ba3   : > { %s5245_s3 = scalar_lea.vmem %s5244_s20, 128  ;;  %p5246_p12 = scmp.lt.s32.totalorder %s3947_s1, %s5244_s20 }
0x1ba4   : > { %p5241_p0 = pnand %p5240_p2, %p6662_p1  ;;  %p5247_p5 = scmp.lt.s32.totalorder %s5245_s3, %s5239_s18 }
0x1ba5   : > { %s3944_s4 = scalar_lea.hbm %s6663_s15, %s4242_s5 }
0x1ba6   : > { %p5242_p3 = pneg %p5241_p0  ;;  %p5248_p6 = por %p5247_p5, %p5246_p12 }
0x1ba8   : > { %p5249_p4 = pnand %p5248_p6, %p5242_p3 }
0x1c1a   : > { %v3910_v25 = vpop.xlane.xlu0 %3909 }
0x1c1b   : > { %5129 = vrcp.f32 %v3910_v25 }
0x1c28   : > { %v5130_v26 = vpop.eup %5129 }
0x1c29   : > { %v3912_v27 = vmul.f32 %v5130_v26, %v5128_v24 }
0x1c2b   : > { %3913 = vst.msk [vmem:[%s759_s0] sm:$0xf] %vm3901_vm14, %v3912_v27 }
0x1c2c   : > { %5252 = shalt.err (!%p5249_p4)
}
0x1c2d   : > { %s5253_s16 = scalar_lea.hbm %s3944_s4, 64  ;;  %s5257_s5 = scalar_lea.hbm %s6663_s15, 128 }
0x1c2e   : > { %p5254_p8 = scmp.ne.s32.totalorder %s3944_s4, %s5253_s16  ;;  %p5258_p9 = scmp.lt.s32.totalorder %s3944_s4, %s6663_s15 }
0x1c2f   : > { %p5259_p7 = scmp.lt.s32.totalorder %s5257_s5, %s5253_s16 }
0x1c30   : > { %p5255_p13 = pnand %p5254_p8, %p6662_p1 }
0x1c31   : > { %p5260_p10 = por %p5259_p7, %p5258_p9 }
0x1c32   : > { %p5256_p11 = pneg %p5255_p13 }
0x1c34   : > { %p5261_p2 = pnand %p5260_p10, %p5256_p11 }
0x1c36   : > { %5264 = shalt.err (!%p5261_p2)
}
0x1c37   : > { %4906 = dma.vmem_to_hbm [thread:$0]  (%p6662_p1), %s3947_s1, 64, %s3944_s4, %s3920_s17  }
0x1c38 PF: > { %s6664_s26 = sld [smem:[#allocation16_spill]]  ;;  %p6667_p3 = scmp.ge.s32.totalorder %s5315_s27, 2 }
0x1c39   : > { %s6665_s18 = sld [smem:[#allocation18_spill]] }
0x1c3e   : > { %s3958_s29 = sand.u32 1, %s6664_s26  }
0x1c3f   : > { %p6666_p0 = scmp.ne.s32.totalorder %s6665_s18, 0  ;;  %s3959_s20 = scalar_lea.sflag [#allocation4], %s3958_s29 }
0x1c41   : > { %p4921_p12 = pnand %p6667_p3, %p6666_p0 }
0x1c43   : > { %p4922_p5 = pneg %p4921_p12 }
0x1c45   : > { %5294 = dma.done.wait (%p4922_p5), %s3959_s20, 128  }
0x1c46   : > { %5296 = vsyncadd (%p4922_p5), %s3959_s20, 4294967168  ;;  %s3968_s3 = scalar_lea.sflag [#allocation10], %s3958_s29 }
0x1c47   : > { %5298 = dma.done.wait (%p4922_p5), %s3968_s3, 64  }
0x1c48   : > { %5300 = vsyncadd (%p4922_p5), %s3968_s3, 4294967232  ;;  %s6668_s27 = sld [smem:[#allocation19_spill]]  ;;  %s6671_s2 = smov %s5307_s25 }
0x1c49   : > { %s6669_s16 = sld [smem:[#allocation17_spill]] }
0x1c4a   : > { %s6670_s26 = sld [smem:[#allocation20_spill]] }
0x1c4e   : > { %p41_p1 = scmp.ge.s32.totalorder %s6668_s27, 4  }
0x1c4f   : > { %s6672_s25 = smov %s6669_s16 }
0x1c50   :  { %43 = sbr.rel (!%p41_p1) target bundleno = 26 (0x1a), region = 197 }
0x1c55   :  { %3973 = vsyncpa [#allocation3], 1 }
0x1c56   :  { %3975 = vsyncpa [#allocation3 + $0x1], 1 }
0x1c57   :  { %3976 = vsyncpa [#allocation6], 1 }
0x1c58   :  { %3978 = vsyncpa [#allocation6 + $0x1], 1 }
0x1c59   :  { %3979 = vsyncpa [#allocation4], 1 }
0x1c5a   :  { %3981 = vsyncpa [#allocation4 + $0x1], 1 }
0x1c5b   :  { %3982 = vsyncpa [#allocation10], 1 }
0x1c5c   :  { %3984 = vsyncpa [#allocation10 + $0x1], 1 }

</bundles_post_ra>
